<compile_context>
chip_gen: v7x
topology: tpu7x:2x2x1
jax: 0.10.0
libtpu: 0.0.40
codegen_flags: <defaults>
</compile_context>

<pallas_src>
import numpy as np
import jax
import jax.numpy as jnp
from jax.experimental import pallas as pl
from jax.experimental.pallas import tpu as pltpu


def _pick_batch_tile(N, per_image_bytes, budget_bytes=4 << 20):
    """Largest batch tile Nb dividing N that fits the VMEM budget; prefer an even
    grid length (balanced work across the two v7x TensorCores)."""
    divisors = [d for d in range(1, N + 1) if N % d == 0]
    fits = [d for d in divisors if d * per_image_bytes <= budget_bytes] or [1]
    even_grid = [d for d in fits if (N // d) % 2 == 0]
    return max(even_grid) if even_grid else max(fits)


def _stride2_operators(H, W, Ho, Wo):
    """Dense operators on row-major flattened (H*W) spatial indices (one image):
    `sub`  : 0/1 matrix selecting the stride-2 positions of a stride-1 conv result.
    `pool` : AvgPool2d(2, ceil_mode=True) pooling matrix."""
    sub = np.zeros((Ho * Wo, H * W), np.float32)
    pool = np.zeros((Ho * Wo, H * W), np.float32)
    for yo in range(Ho):
        for xo in range(Wo):
            row = yo * Wo + xo
            sub[row, (2 * yo) * W + (2 * xo)] = 1.0
            ys = [y for y in (2 * yo, 2 * yo + 1) if y < H]
            xs = [x for x in (2 * xo, 2 * xo + 1) if x < W]
            # TODO(synk): odd-size ceil_mode AvgPool divisor assumed = clipped window.
            val = 1.0 / (len(ys) * len(xs))
            for y in ys:
                for x in xs:
                    pool[row, y * W + x] = val
    return sub, pool


def _make_block_kernel(Nb, H, W, Cin, Cout, stride, p_drop, compute_dtype):
    """One grid step processes a tile of Nb batch elements (NHWC, channels on lanes)."""
    Ho = (H - 1) // stride + 1
    Wo = (W - 1) // stride + 1
    rows_in = Nb * H * W
    rows_out = Nb * Ho * Wo

    def body(x_ref, w1_ref, w2_ref, s1_ref, b1_ref, s2_ref, b2_ref,
             s3_ref, b3_ref, sub_ref, pool_ref, o_ref, pad1_ref, pad2_ref):
        x2d = x_ref[...].reshape(rows_in, Cin)               # channels on lanes

        # ---- BN1 (eval mode, folded to per-channel scale/bias rows) ----
        h = x2d * s1_ref[...] + b1_ref[...]

        # ---- conv1: halo-only zeroing of the padded scratch, every step ----
        pad1_ref[:, pl.ds(0, 1), :, :] = jnp.zeros((Nb, 1, W + 2, Cin), jnp.float32)
        pad1_ref[:, pl.ds(H + 1, 1), :, :] = jnp.zeros((Nb, 1, W + 2, Cin), jnp.float32)
        pad1_ref[:, :, pl.ds(0, 1), :] = jnp.zeros((Nb, H + 2, 1, Cin), jnp.float32)
        pad1_ref[:, :, pl.ds(W + 1, 1), :] = jnp.zeros((Nb, H + 2, 1, Cin), jnp.float32)
        pad1_ref[:, pl.ds(1, H), pl.ds(1, W), :] = h.reshape(Nb, H, W, Cin)

        # im2col: 9 shifted slabs concatenated on the lane axis -> ONE MXU matmul
        # (K = 9*Cin instead of 9 separate K=Cin contractions), bf16 operands.
        taps = [pad1_ref[:, pl.ds(dy, H), pl.ds(dx, W), :].reshape(rows_in, Cin)
                for dy in range(3) for dx in range(3)]
        col1 = jnp.concatenate(taps, axis=-1).astype(compute_dtype)   # (rows_in, 9*Cin)
        acc1 = jnp.dot(col1, w1_ref[...], preferred_element_type=jnp.float32)

        if stride == 2:
            # TODO(synk): replace the dense 0/1 row-selection matmul with a strided
            # im2col gather; the dense operator is O((H*W)^2) and only acceptable at
            # CIFAR-scale spatial maps.
            out1 = jnp.dot(sub_ref[...], acc1, preferred_element_type=jnp.float32)
        else:
            out1 = acc1                                               # (rows_out, Cout)

        # ---- BN2 + ReLU ----
        r = jnp.maximum(out1 * s2_ref[...] + b2_ref[...], 0.0)

        # ---- conv2: 3x3, stride 1 (same halo-pad + fused im2col matmul) ----
        pad2_ref[:, pl.ds(0, 1), :, :] = jnp.zeros((Nb, 1, Wo + 2, Cout), jnp.float32)
        pad2_ref[:, pl.ds(Ho + 1, 1), :, :] = jnp.zeros((Nb, 1, Wo + 2, Cout), jnp.float32)
        pad2_ref[:, :, pl.ds(0, 1), :] = jnp.zeros((Nb, Ho + 2, 1, Cout), jnp.float32)
        pad2_ref[:, :, pl.ds(Wo + 1, 1), :] = jnp.zeros((Nb, Ho + 2, 1, Cout), jnp.float32)
        pad2_ref[:, pl.ds(1, Ho), pl.ds(1, Wo), :] = r.reshape(Nb, Ho, Wo, Cout)

        taps2 = [pad2_ref[:, pl.ds(dy, Ho), pl.ds(dx, Wo), :].reshape(rows_out, Cout)
                 for dy in range(3) for dx in range(3)]
        col2 = jnp.concatenate(taps2, axis=-1).astype(compute_dtype)  # (rows_out, 9*Cout)
        acc2 = jnp.dot(col2, w2_ref[...], preferred_element_type=jnp.float32)

        # ---- BN3 + ShakeDrop (eval mode: deterministic scale by p_drop) ----
        out2 = (acc2 * s3_ref[...] + b3_ref[...]) * p_drop

        # ---- shortcut: (ceil-mode 2x2 avg-pool if stride 2) + zero channel pad ----
        if stride == 2:
            # TODO(synk): make the pool separable (row-pool then col-pool) before using
            # this kernel at large spatial extents (dense matrix is O((H*W)^2) VMEM).
            sc = jnp.dot(pool_ref[...], x2d, preferred_element_type=jnp.float32)
        else:
            sc = x2d                                                  # (rows_out, Cin)
        if Cin == Cout:
            out = out2 + sc
        else:
            # zero channel-pad on the VPU (lane concat) instead of an eye-matrix matmul
            out = out2 + jnp.concatenate(
                [sc, jnp.zeros((rows_out, Cout - Cin), jnp.float32)], axis=-1)

        o_ref[...] = out.reshape(Nb, Ho, Wo, Cout)

    if stride == 2:
        kernel = body
    else:
        def kernel(x_ref, w1_ref, w2_ref, s1_ref, b1_ref, s2_ref, b2_ref,
                   s3_ref, b3_ref, o_ref, pad1_ref, pad2_ref):
            body(x_ref, w1_ref, w2_ref, s1_ref, b1_ref, s2_ref, b2_ref,
                 s3_ref, b3_ref, None, None, o_ref, pad1_ref, pad2_ref)

    return kernel


def basic_block_forward(x_nchw, params, *, stride, p_drop, eps=1e-5,
                        compute_dtype=jnp.bfloat16):
    """Eval-mode forward of the PyramidNet BasicBlock.

    x_nchw : (N, Cin, H, W) float32 (PyTorch layout)
    params : conv1_w (Cout,Cin,3,3), conv2_w (Cout,Cout,3,3),
             bn{1,2,3}_{gamma,beta,mean,var}
    returns: (N, Cout, Ho, Wo) float32
    """
    assert stride in (1, 2)
    N, Cin, H, W = x_nchw.shape
    w1 = params["conv1_w"]
    w2 = params["conv2_w"]
    Cout = w1.shape[0]
    assert Cout >= Cin, "PyramidNet blocks only grow channels"

    def fold_bn(prefix):
        g = params[prefix + "_gamma"].astype(jnp.float32)
        b = params[prefix + "_beta"].astype(jnp.float32)
        m = params[prefix + "_mean"].astype(jnp.float32)
        v = params[prefix + "_var"].astype(jnp.float32)
        scale = g / jnp.sqrt(v + eps)
        bias = b - m * scale
        return scale.reshape(1, -1), bias.reshape(1, -1)

    s1, b1 = fold_bn("bn1")
    s2, b2 = fold_bn("bn2")
    s3, b3 = fold_bn("bn3")

    # One-time layout plumbing (XLA side): NCHW -> NHWC so channels ride lanes,
    # conv weights OIHW -> (ky,kx,Cin,Cout) flattened to (9*Cin,Cout) im2col matrices
    # in bf16 (MXU fast path; f32 accumulation inside the kernel).
    x_nhwc = jnp.transpose(x_nchw, (0, 2, 3, 1)).astype(jnp.float32)
    w1_mat = jnp.transpose(w1, (2, 3, 1, 0)).reshape(9 * Cin, Cout).astype(compute_dtype)
    w2_mat = jnp.transpose(w2, (2, 3, 1, 0)).reshape(9 * Cout, Cout).astype(compute_dtype)

    Ho = (H - 1) // stride + 1
    Wo = (W - 1) // stride + 1

    # Batch tile: amortize the ~0.35us/step grid overhead; keep the grid even so both
    # v7x TensorCores get balanced work (moot on v5e/v6e with one TC).
    per_image_bytes = 4 * H * W * (Cin + 4 * Cout)
    Nb = _pick_batch_tile(N, per_image_bytes)
    grid = (N // Nb,)

    kernel = _make_block_kernel(Nb, H, W, Cin, Cout, stride, float(p_drop),
                                compute_dtype)

    inputs = [x_nhwc, w1_mat, w2_mat, s1, b1, s2, b2, s3, b3]
    in_specs = [
        pl.BlockSpec((Nb, H, W, Cin), lambda n: (n, 0, 0, 0)),
        pl.BlockSpec((9 * Cin, Cout), lambda n: (0, 0)),
        pl.BlockSpec((9 * Cout, Cout), lambda n: (0, 0)),
        pl.BlockSpec((1, Cin), lambda n: (0, 0)),
        pl.BlockSpec((1, Cin), lambda n: (0, 0)),
        pl.BlockSpec((1, Cout), lambda n: (0, 0)),
        pl.BlockSpec((1, Cout), lambda n: (0, 0)),
        pl.BlockSpec((1, Cout), lambda n: (0, 0)),
        pl.BlockSpec((1, Cout), lambda n: (0, 0)),
    ]
    sub_pool_flops = 0
    sub_pool_bytes = 0
    if stride == 2:
        sub1, pool1 = _stride2_operators(H, W, Ho, Wo)
        eye = np.eye(Nb, dtype=np.float32)
        sub = jnp.asarray(np.kron(eye, sub1))        # block-diagonal over the batch tile
        pool = jnp.asarray(np.kron(eye, pool1))
        inputs += [sub, pool]
        in_specs += [
            pl.BlockSpec((Nb * Ho * Wo, Nb * H * W), lambda n: (0, 0)),
            pl.BlockSpec((Nb * Ho * Wo, Nb * H * W), lambda n: (0, 0)),
        ]
        sub_pool_flops = 2 * N * Nb * Ho * Wo * H * W * (Cout + Cin)
        sub_pool_bytes = 2 * 4 * (Nb * Ho * Wo) * (Nb * H * W)

    # CostEstimate now includes the stride-2 selection/pool matmuls (review item).
    flops = (2 * N * 9 * (H * W * Cin * Cout + Ho * Wo * Cout * Cout)
             + 2 * N * Ho * Wo * Cin
             + sub_pool_flops)
    bytes_accessed = (4 * N * (H * W * Cin + Ho * Wo * Cout)
                      + 2 * 9 * (Cin * Cout + Cout * Cout)
                      + 4 * 2 * (Cin + 3 * Cout)
                      + sub_pool_bytes)

    out_nhwc = pl.pallas_call(
        kernel,
        out_shape=jax.ShapeDtypeStruct((N, Ho, Wo, Cout), jnp.float32),
        grid_spec=pltpu.PrefetchScalarGridSpec(
            num_scalar_prefetch=0,
            grid=grid,
            in_specs=in_specs,
            # TODO(synk): a lane-dense output layout (Wo*Cout on lanes) needs a
            # lane-changing in-kernel reshape; kept channels-on-lanes for robustness.
            out_specs=pl.BlockSpec((Nb, Ho, Wo, Cout), lambda n: (n, 0, 0, 0)),
            scratch_shapes=[
                pltpu.VMEM((Nb, H + 2, W + 2, Cin), jnp.float32),     # padded conv1 in
                pltpu.VMEM((Nb, Ho + 2, Wo + 2, Cout), jnp.float32),  # padded conv2 in
            ],
        ),
        compiler_params=pltpu.CompilerParams(
            dimension_semantics=("parallel",),
            vmem_limit_bytes=32 * 1024 * 1024,   # tiles are small; fits all generations
        ),
        cost_estimate=pl.CostEstimate(
            flops=flops, transcendentals=0, bytes_accessed=bytes_accessed),
    )(*inputs)

    return jnp.transpose(out_nhwc, (0, 3, 1, 2))   # back to NCHW


def _reference_forward(x, params, *, stride, p_drop, eps=1e-5):
    """Pure-JAX (XLA, f32) reference with eval-mode BatchNorm / ShakeDrop semantics."""
    hp = jax.lax.Precision.HIGHEST

    def bn(v, prefix):
        g = params[prefix + "_gamma"][None, :, None, None]
        b = params[prefix + "_beta"][None, :, None, None]
        m = params[prefix + "_mean"][None, :, None, None]
        var = params[prefix + "_var"][None, :, None, None]
        return (v - m) / jnp.sqrt(var + eps) * g + b

    out = bn(x, "bn1")
    out = jax.lax.conv_general_dilated(
        out, params["conv1_w"], (stride, stride), ((1, 1), (1, 1)),
        dimension_numbers=("NCHW", "OIHW", "NCHW"), precision=hp)
    out = jnp.maximum(bn(out, "bn2"), 0.0)
    out = jax.lax.conv_general_dilated(
        out, params["conv2_w"], (1, 1), ((1, 1), (1, 1)),
        dimension_numbers=("NCHW", "OIHW", "NCHW"), precision=hp)
    out = bn(out, "bn3") * p_drop
    if stride == 2:
        shortcut = jax.lax.reduce_window(
            x, 0.0, jax.lax.add, (1, 1, 2, 2), (1, 1, 2, 2), "VALID") / 4.0
    else:
        shortcut = x
    cpad = out.shape[1] - shortcut.shape[1]
    shortcut = jnp.pad(shortcut, ((0, 0), (0, cpad), (0, 0), (0, 0)))
    return out + shortcut


if __name__ == "__main__":
    key = jax.random.PRNGKey(0)
    N, Cin, Cout, H, W = 2, 4, 8, 16, 16
    p_drop = 0.7

    ks = list(jax.random.split(key, 16))

    def bn_params(prefix, c, k1, k2, k3, k4):
        return {
            prefix + "_gamma": 0.5 + jax.random.uniform(k1, (c,), jnp.float32),
            prefix + "_beta": 0.1 * jax.random.normal(k2, (c,), jnp.float32),
            prefix + "_mean": 0.1 * jax.random.normal(k3, (c,), jnp.float32),
            prefix + "_var": 0.5 + jax.random.uniform(k4, (c,), jnp.float32),
        }

    params = {
        "conv1_w": 0.1 * jax.random.normal(ks[0], (Cout, Cin, 3, 3), jnp.float32),
        "conv2_w": 0.1 * jax.random.normal(ks[1], (Cout, Cout, 3, 3), jnp.float32),
    }
    params.update(bn_params("bn1", Cin, *ks[2:6]))
    params.update(bn_params("bn2", Cout, *ks[6:10]))
    params.update(bn_params("bn3", Cout, *ks[10:14]))

    x = jax.random.normal(ks[14], (N, Cin, H, W), jnp.float32)

    for stride in (1, 2):
        y = basic_block_forward(x, params, stride=stride, p_drop=p_drop)
        y = jax.block_until_ready(y)
        y_ref = _reference_forward(x, params, stride=stride, p_drop=p_drop)
        assert y.shape == y_ref.shape, (y.shape, y_ref.shape)
        max_err = float(jnp.max(jnp.abs(y - y_ref)))
        mean_err = float(jnp.mean(jnp.abs(y - y_ref)))
        # Tolerance allows for bf16 MXU conv operands (f32 accumulation) vs the f32
        # XLA reference; structural errors would be O(0.1-1).
        assert jnp.allclose(y, y_ref, atol=5e-2, rtol=5e-2), (stride, max_err)
        assert mean_err < 1e-2, (stride, mean_err)

    print("KERNEL_OK")
</pallas_src>

<mosaic_0001>
module attributes {stable_mosaic.version = 11 : i64} {
  func.func @kernel(%arg0: i32, %arg1: memref<1x16x16x4xf32, #tpu.memory_space<vmem>>, %arg2: memref<36x8xbf16, #tpu.memory_space<vmem>>, %arg3: memref<72x8xbf16, #tpu.memory_space<vmem>>, %arg4: memref<1x4xf32, #tpu.memory_space<vmem>>, %arg5: memref<1x4xf32, #tpu.memory_space<vmem>>, %arg6: memref<1x8xf32, #tpu.memory_space<vmem>>, %arg7: memref<1x8xf32, #tpu.memory_space<vmem>>, %arg8: memref<1x8xf32, #tpu.memory_space<vmem>>, %arg9: memref<1x8xf32, #tpu.memory_space<vmem>>, %arg10: memref<1x16x16x8xf32, #tpu.memory_space<vmem>>, %arg11: memref<1x18x18x4xf32, #tpu.memory_space<vmem>>, %arg12: memref<1x18x18x8xf32, #tpu.memory_space<vmem>>) attributes {dimension_semantics = [#tpu.dimension_semantics<parallel>], iteration_bounds = array<i64: 2>, scalar_prefetch = 0 : i64, scratch_operands = 2 : i64, tpu.core_type = #tpu.core_type<tc>, window_params = [{transform_indices = @transform_0, window_bounds = array<i64: 1, 16, 16, 4>}, {pipeline_mode = #tpu.pipeline_mode<synchronous>, transform_indices = @transform_1, window_bounds = array<i64: 36, 8>}, {pipeline_mode = #tpu.pipeline_mode<synchronous>, transform_indices = @transform_2, window_bounds = array<i64: 72, 8>}, {pipeline_mode = #tpu.pipeline_mode<synchronous>, transform_indices = @transform_3, window_bounds = array<i64: 1, 4>}, {pipeline_mode = #tpu.pipeline_mode<synchronous>, transform_indices = @transform_4, window_bounds = array<i64: 1, 4>}, {pipeline_mode = #tpu.pipeline_mode<synchronous>, transform_indices = @transform_5, window_bounds = array<i64: 1, 8>}, {pipeline_mode = #tpu.pipeline_mode<synchronous>, transform_indices = @transform_6, window_bounds = array<i64: 1, 8>}, {pipeline_mode = #tpu.pipeline_mode<synchronous>, transform_indices = @transform_7, window_bounds = array<i64: 1, 8>}, {pipeline_mode = #tpu.pipeline_mode<synchronous>, transform_indices = @transform_8, window_bounds = array<i64: 1, 8>}, {transform_indices = @transform_9, window_bounds = array<i64: 1, 16, 16, 8>}]} {
    %c0 = arith.constant 0 : index
    %c0_0 = arith.constant 0 : index
    %c0_1 = arith.constant 0 : index
    %c0_2 = arith.constant 0 : index
    %0 = vector.load %arg1[%c0, %c0_0, %c0_1, %c0_2] : memref<1x16x16x4xf32, #tpu.memory_space<vmem>>, vector<1x16x16x4xf32>
    %1 = vector.shape_cast %0 : vector<1x16x16x4xf32> to vector<256x4xf32>
    %c0_3 = arith.constant 0 : index
    %c0_4 = arith.constant 0 : index
    %2 = vector.load %arg4[%c0_3, %c0_4] : memref<1x4xf32, #tpu.memory_space<vmem>>, vector<1x4xf32>
    %3 = vector.broadcast %2 : vector<1x4xf32> to vector<256x4xf32>
    %4 = arith.mulf %1, %3 : vector<256x4xf32>
    %c0_5 = arith.constant 0 : index
    %c0_6 = arith.constant 0 : index
    %5 = vector.load %arg5[%c0_5, %c0_6] : memref<1x4xf32, #tpu.memory_space<vmem>>, vector<1x4xf32>
    %6 = vector.broadcast %5 : vector<1x4xf32> to vector<256x4xf32>
    %7 = arith.addf %4, %6 : vector<256x4xf32>
    %cst = arith.constant 0.000000e+00 : f32
    %8 = vector.broadcast %cst : f32 to vector<1x1x18x4xf32>
    %c0_7 = arith.constant 0 : index
    %c0_8 = arith.constant 0 : index
    %c0_9 = arith.constant 0 : index
    %c0_10 = arith.constant 0 : index
    %9 = vector.load %arg11[%c0_7, %c0_8, %c0_9, %c0_10] : memref<1x18x18x4xf32, #tpu.memory_space<vmem>>, vector<1x1x18x4xf32>
    tpu.vector_store %arg11[%c0_7, %c0_8, %c0_9, %c0_10], %8 {strides = array<i32>} : memref<1x18x18x4xf32, #tpu.memory_space<vmem>>, vector<1x1x18x4xf32>,
    %cst_11 = arith.constant 0.000000e+00 : f32
    %10 = vector.broadcast %cst_11 : f32 to vector<1x1x18x4xf32>
    %c0_12 = arith.constant 0 : index
    %c17 = arith.constant 17 : index
    %c0_13 = arith.constant 0 : index
    %c0_14 = arith.constant 0 : index
    %11 = vector.load %arg11[%c0_12, %c17, %c0_13, %c0_14] : memref<1x18x18x4xf32, #tpu.memory_space<vmem>>, vector<1x1x18x4xf32>
    tpu.vector_store %arg11[%c0_12, %c17, %c0_13, %c0_14], %10 {strides = array<i32>} : memref<1x18x18x4xf32, #tpu.memory_space<vmem>>, vector<1x1x18x4xf32>,
    %cst_15 = arith.constant 0.000000e+00 : f32
    %12 = vector.broadcast %cst_15 : f32 to vector<1x18x1x4xf32>
    %c0_16 = arith.constant 0 : index
    %c0_17 = arith.constant 0 : index
    %c0_18 = arith.constant 0 : index
    %c0_19 = arith.constant 0 : index
    %13 = vector.load %arg11[%c0_16, %c0_17, %c0_18, %c0_19] : memref<1x18x18x4xf32, #tpu.memory_space<vmem>>, vector<1x18x1x4xf32>
    tpu.vector_store %arg11[%c0_16, %c0_17, %c0_18, %c0_19], %12 {strides = array<i32>} : memref<1x18x18x4xf32, #tpu.memory_space<vmem>>, vector<1x18x1x4xf32>,
    %cst_20 = arith.constant 0.000000e+00 : f32
    %14 = vector.broadcast %cst_20 : f32 to vector<1x18x1x4xf32>
    %c0_21 = arith.constant 0 : index
    %c0_22 = arith.constant 0 : index
    %c17_23 = arith.constant 17 : index
    %c0_24 = arith.constant 0 : index
    %15 = vector.load %arg11[%c0_21, %c0_22, %c17_23, %c0_24] : memref<1x18x18x4xf32, #tpu.memory_space<vmem>>, vector<1x18x1x4xf32>
    tpu.vector_store %arg11[%c0_21, %c0_22, %c17_23, %c0_24], %14 {strides = array<i32>} : memref<1x18x18x4xf32, #tpu.memory_space<vmem>>, vector<1x18x1x4xf32>,
    %16 = vector.shape_cast %7 : vector<256x4xf32> to vector<1x16x16x4xf32>
    %c0_25 = arith.constant 0 : index
    %c1 = arith.constant 1 : index
    %c1_26 = arith.constant 1 : index
    %c0_27 = arith.constant 0 : index
    %17 = vector.load %arg11[%c0_25, %c1, %c1_26, %c0_27] : memref<1x18x18x4xf32, #tpu.memory_space<vmem>>, vector<1x16x16x4xf32>
    tpu.vector_store %arg11[%c0_25, %c1, %c1_26, %c0_27], %16 {strides = array<i32>} : memref<1x18x18x4xf32, #tpu.memory_space<vmem>>, vector<1x16x16x4xf32>,
    %c0_28 = arith.constant 0 : index
    %c0_29 = arith.constant 0 : index
    %c0_30 = arith.constant 0 : index
    %c0_31 = arith.constant 0 : index
    %18 = vector.load %arg11[%c0_28, %c0_29, %c0_30, %c0_31] : memref<1x18x18x4xf32, #tpu.memory_space<vmem>>, vector<1x16x16x4xf32>
    %19 = vector.shape_cast %18 : vector<1x16x16x4xf32> to vector<256x4xf32>
    %c0_32 = arith.constant 0 : index
    %c0_33 = arith.constant 0 : index
    %c1_34 = arith.constant 1 : index
    %c0_35 = arith.constant 0 : index
    %20 = vector.load %arg11[%c0_32, %c0_33, %c1_34, %c0_35] : memref<1x18x18x4xf32, #tpu.memory_space<vmem>>, vector<1x16x16x4xf32>
    %21 = vector.shape_cast %20 : vector<1x16x16x4xf32> to vector<256x4xf32>
    %c0_36 = arith.constant 0 : index
    %c0_37 = arith.constant 0 : index
    %c2 = arith.constant 2 : index
    %c0_38 = arith.constant 0 : index
    %22 = vector.load %arg11[%c0_36, %c0_37, %c2, %c0_38] : memref<1x18x18x4xf32, #tpu.memory_space<vmem>>, vector<1x16x16x4xf32>
    %23 = vector.shape_cast %22 : vector<1x16x16x4xf32> to vector<256x4xf32>
    %c0_39 = arith.constant 0 : index
    %c1_40 = arith.constant 1 : index
    %c0_41 = arith.constant 0 : index
    %c0_42 = arith.constant 0 : index
    %24 = vector.load %arg11[%c0_39, %c1_40, %c0_41, %c0_42] : memref<1x18x18x4xf32, #tpu.memory_space<vmem>>, vector<1x16x16x4xf32>
    %25 = vector.shape_cast %24 : vector<1x16x16x4xf32> to vector<256x4xf32>
    %c0_43 = arith.constant 0 : index
    %c1_44 = arith.constant 1 : index
    %c1_45 = arith.constant 1 : index
    %c0_46 = arith.constant 0 : index
    %26 = vector.load %arg11[%c0_43, %c1_44, %c1_45, %c0_46] : memref<1x18x18x4xf32, #tpu.memory_space<vmem>>, vector<1x16x16x4xf32>
    %27 = vector.shape_cast %26 : vector<1x16x16x4xf32> to vector<256x4xf32>
    %c0_47 = arith.constant 0 : index
    %c1_48 = arith.constant 1 : index
    %c2_49 = arith.constant 2 : index
    %c0_50 = arith.constant 0 : index
    %28 = vector.load %arg11[%c0_47, %c1_48, %c2_49, %c0_50] : memref<1x18x18x4xf32, #tpu.memory_space<vmem>>, vector<1x16x16x4xf32>
    %29 = vector.shape_cast %28 : vector<1x16x16x4xf32> to vector<256x4xf32>
    %c0_51 = arith.constant 0 : index
    %c2_52 = arith.constant 2 : index
    %c0_53 = arith.constant 0 : index
    %c0_54 = arith.constant 0 : index
    %30 = vector.load %arg11[%c0_51, %c2_52, %c0_53, %c0_54] : memref<1x18x18x4xf32, #tpu.memory_space<vmem>>, vector<1x16x16x4xf32>
    %31 = vector.shape_cast %30 : vector<1x16x16x4xf32> to vector<256x4xf32>
    %c0_55 = arith.constant 0 : index
    %c2_56 = arith.constant 2 : index
    %c1_57 = arith.constant 1 : index
    %c0_58 = arith.constant 0 : index
    %32 = vector.load %arg11[%c0_55, %c2_56, %c1_57, %c0_58] : memref<1x18x18x4xf32, #tpu.memory_space<vmem>>, vector<1x16x16x4xf32>
    %33 = vector.shape_cast %32 : vector<1x16x16x4xf32> to vector<256x4xf32>
    %c0_59 = arith.constant 0 : index
    %c2_60 = arith.constant 2 : index
    %c2_61 = arith.constant 2 : index
    %c0_62 = arith.constant 0 : index
    %34 = vector.load %arg11[%c0_59, %c2_60, %c2_61, %c0_62] : memref<1x18x18x4xf32, #tpu.memory_space<vmem>>, vector<1x16x16x4xf32>
    %35 = vector.shape_cast %34 : vector<1x16x16x4xf32> to vector<256x4xf32>
    %36 = tpu.concatenate %19, %21, %23, %25, %27, %29, %31, %33, %35 in 1 : vector<256x4xf32>, vector<256x4xf32>, vector<256x4xf32>, vector<256x4xf32>, vector<256x4xf32>, vector<256x4xf32>, vector<256x4xf32>, vector<256x4xf32>, vector<256x4xf32> -> vector<256x36xf32>
    %37 = arith.truncf %36 : vector<256x36xf32> to vector<256x36xbf16>
    %c0_63 = arith.constant 0 : index
    %c0_64 = arith.constant 0 : index
    %38 = vector.load %arg2[%c0_63, %c0_64] : memref<36x8xbf16, #tpu.memory_space<vmem>>, vector<36x8xbf16>
    %cst_65 = arith.constant dense<0.000000e+00> : vector<256x8xf32>
    %39 = tpu.matmul %37, %38, %cst_65 {dimension_numbers = #tpu.dot_dimension_numbers<[1], [0], [0], [1], [0, 0, 1, 1], [], []>} : vector<256x36xbf16>, vector<36x8xbf16>, vector<256x8xf32> -> vector<256x8xf32>
    %c0_66 = arith.constant 0 : index
    %c0_67 = arith.constant 0 : index
    %40 = vector.load %arg6[%c0_66, %c0_67] : memref<1x8xf32, #tpu.memory_space<vmem>>, vector<1x8xf32>
    %41 = vector.broadcast %40 : vector<1x8xf32> to vector<256x8xf32>
    %42 = arith.mulf %39, %41 : vector<256x8xf32>
    %c0_68 = arith.constant 0 : index
    %c0_69 = arith.constant 0 : index
    %43 = vector.load %arg7[%c0_68, %c0_69] : memref<1x8xf32, #tpu.memory_space<vmem>>, vector<1x8xf32>
    %44 = vector.broadcast %43 : vector<1x8xf32> to vector<256x8xf32>
    %45 = arith.addf %42, %44 : vector<256x8xf32>
    %cst_70 = arith.constant 0.000000e+00 : f32
    %46 = vector.broadcast %cst_70 : f32 to vector<256x8xf32>
    %47 = arith.maximumf %45, %46 : vector<256x8xf32>
    %cst_71 = arith.constant 0.000000e+00 : f32
    %48 = vector.broadcast %cst_71 : f32 to vector<1x1x18x8xf32>
    %c0_72 = arith.constant 0 : index
    %c0_73 = arith.constant 0 : index
    %c0_74 = arith.constant 0 : index
    %c0_75 = arith.constant 0 : index
    %49 = vector.load %arg12[%c0_72, %c0_73, %c0_74, %c0_75] : memref<1x18x18x8xf32, #tpu.memory_space<vmem>>, vector<1x1x18x8xf32>
    tpu.vector_store %arg12[%c0_72, %c0_73, %c0_74, %c0_75], %48 {strides = array<i32>} : memref<1x18x18x8xf32, #tpu.memory_space<vmem>>, vector<1x1x18x8xf32>,
    %cst_76 = arith.constant 0.000000e+00 : f32
    %50 = vector.broadcast %cst_76 : f32 to vector<1x1x18x8xf32>
    %c0_77 = arith.constant 0 : index
    %c17_78 = arith.constant 17 : index
    %c0_79 = arith.constant 0 : index
    %c0_80 = arith.constant 0 : index
    %51 = vector.load %arg12[%c0_77, %c17_78, %c0_79, %c0_80] : memref<1x18x18x8xf32, #tpu.memory_space<vmem>>, vector<1x1x18x8xf32>
    tpu.vector_store %arg12[%c0_77, %c17_78, %c0_79, %c0_80], %50 {strides = array<i32>} : memref<1x18x18x8xf32, #tpu.memory_space<vmem>>, vector<1x1x18x8xf32>,
    %cst_81 = arith.constant 0.000000e+00 : f32
    %52 = vector.broadcast %cst_81 : f32 to vector<1x18x1x8xf32>
    %c0_82 = arith.constant 0 : index
    %c0_83 = arith.constant 0 : index
    %c0_84 = arith.constant 0 : index
    %c0_85 = arith.constant 0 : index
    %53 = vector.load %arg12[%c0_82, %c0_83, %c0_84, %c0_85] : memref<1x18x18x8xf32, #tpu.memory_space<vmem>>, vector<1x18x1x8xf32>
    tpu.vector_store %arg12[%c0_82, %c0_83, %c0_84, %c0_85], %52 {strides = array<i32>} : memref<1x18x18x8xf32, #tpu.memory_space<vmem>>, vector<1x18x1x8xf32>,
    %cst_86 = arith.constant 0.000000e+00 : f32
    %54 = vector.broadcast %cst_86 : f32 to vector<1x18x1x8xf32>
    %c0_87 = arith.constant 0 : index
    %c0_88 = arith.constant 0 : index
    %c17_89 = arith.constant 17 : index
    %c0_90 = arith.constant 0 : index
    %55 = vector.load %arg12[%c0_87, %c0_88, %c17_89, %c0_90] : memref<1x18x18x8xf32, #tpu.memory_space<vmem>>, vector<1x18x1x8xf32>
    tpu.vector_store %arg12[%c0_87, %c0_88, %c17_89, %c0_90], %54 {strides = array<i32>} : memref<1x18x18x8xf32, #tpu.memory_space<vmem>>, vector<1x18x1x8xf32>,
    %56 = vector.shape_cast %47 : vector<256x8xf32> to vector<1x16x16x8xf32>
    %c0_91 = arith.constant 0 : index
    %c1_92 = arith.constant 1 : index
    %c1_93 = arith.constant 1 : index
    %c0_94 = arith.constant 0 : index
    %57 = vector.load %arg12[%c0_91, %c1_92, %c1_93, %c0_94] : memref<1x18x18x8xf32, #tpu.memory_space<vmem>>, vector<1x16x16x8xf32>
    tpu.vector_store %arg12[%c0_91, %c1_92, %c1_93, %c0_94], %56 {strides = array<i32>} : memref<1x18x18x8xf32, #tpu.memory_space<vmem>>, vector<1x16x16x8xf32>,
    %c0_95 = arith.constant 0 : index
    %c0_96 = arith.constant 0 : index
    %c0_97 = arith.constant 0 : index
    %c0_98 = arith.constant 0 : index
    %58 = vector.load %arg12[%c0_95, %c0_96, %c0_97, %c0_98] : memref<1x18x18x8xf32, #tpu.memory_space<vmem>>, vector<1x16x16x8xf32>
    %59 = vector.shape_cast %58 : vector<1x16x16x8xf32> to vector<256x8xf32>
    %c0_99 = arith.constant 0 : index
    %c0_100 = arith.constant 0 : index
    %c1_101 = arith.constant 1 : index
    %c0_102 = arith.constant 0 : index
    %60 = vector.load %arg12[%c0_99, %c0_100, %c1_101, %c0_102] : memref<1x18x18x8xf32, #tpu.memory_space<vmem>>, vector<1x16x16x8xf32>
    %61 = vector.shape_cast %60 : vector<1x16x16x8xf32> to vector<256x8xf32>
    %c0_103 = arith.constant 0 : index
    %c0_104 = arith.constant 0 : index
    %c2_105 = arith.constant 2 : index
    %c0_106 = arith.constant 0 : index
    %62 = vector.load %arg12[%c0_103, %c0_104, %c2_105, %c0_106] : memref<1x18x18x8xf32, #tpu.memory_space<vmem>>, vector<1x16x16x8xf32>
    %63 = vector.shape_cast %62 : vector<1x16x16x8xf32> to vector<256x8xf32>
    %c0_107 = arith.constant 0 : index
    %c1_108 = arith.constant 1 : index
    %c0_109 = arith.constant 0 : index
    %c0_110 = arith.constant 0 : index
    %64 = vector.load %arg12[%c0_107, %c1_108, %c0_109, %c0_110] : memref<1x18x18x8xf32, #tpu.memory_space<vmem>>, vector<1x16x16x8xf32>
    %65 = vector.shape_cast %64 : vector<1x16x16x8xf32> to vector<256x8xf32>
    %c0_111 = arith.constant 0 : index
    %c1_112 = arith.constant 1 : index
    %c1_113 = arith.constant 1 : index
    %c0_114 = arith.constant 0 : index
    %66 = vector.load %arg12[%c0_111, %c1_112, %c1_113, %c0_114] : memref<1x18x18x8xf32, #tpu.memory_space<vmem>>, vector<1x16x16x8xf32>
    %67 = vector.shape_cast %66 : vector<1x16x16x8xf32> to vector<256x8xf32>
    %c0_115 = arith.constant 0 : index
    %c1_116 = arith.constant 1 : index
    %c2_117 = arith.constant 2 : index
    %c0_118 = arith.constant 0 : index
    %68 = vector.load %arg12[%c0_115, %c1_116, %c2_117, %c0_118] : memref<1x18x18x8xf32, #tpu.memory_space<vmem>>, vector<1x16x16x8xf32>
    %69 = vector.shape_cast %68 : vector<1x16x16x8xf32> to vector<256x8xf32>
    %c0_119 = arith.constant 0 : index
    %c2_120 = arith.constant 2 : index
    %c0_121 = arith.constant 0 : index
    %c0_122 = arith.constant 0 : index
    %70 = vector.load %arg12[%c0_119, %c2_120, %c0_121, %c0_122] : memref<1x18x18x8xf32, #tpu.memory_space<vmem>>, vector<1x16x16x8xf32>
    %71 = vector.shape_cast %70 : vector<1x16x16x8xf32> to vector<256x8xf32>
    %c0_123 = arith.constant 0 : index
    %c2_124 = arith.constant 2 : index
    %c1_125 = arith.constant 1 : index
    %c0_126 = arith.constant 0 : index
    %72 = vector.load %arg12[%c0_123, %c2_124, %c1_125, %c0_126] : memref<1x18x18x8xf32, #tpu.memory_space<vmem>>, vector<1x16x16x8xf32>
    %73 = vector.shape_cast %72 : vector<1x16x16x8xf32> to vector<256x8xf32>
    %c0_127 = arith.constant 0 : index
    %c2_128 = arith.constant 2 : index
    %c2_129 = arith.constant 2 : index
    %c0_130 = arith.constant 0 : index
    %74 = vector.load %arg12[%c0_127, %c2_128, %c2_129, %c0_130] : memref<1x18x18x8xf32, #tpu.memory_space<vmem>>, vector<1x16x16x8xf32>
    %75 = vector.shape_cast %74 : vector<1x16x16x8xf32> to vector<256x8xf32>
    %76 = tpu.concatenate %59, %61, %63, %65, %67, %69, %71, %73, %75 in 1 : vector<256x8xf32>, vector<256x8xf32>, vector<256x8xf32>, vector<256x8xf32>, vector<256x8xf32>, vector<256x8xf32>, vector<256x8xf32>, vector<256x8xf32>, vector<256x8xf32> -> vector<256x72xf32>
    %77 = arith.truncf %76 : vector<256x72xf32> to vector<256x72xbf16>
    %c0_131 = arith.constant 0 : index
    %c0_132 = arith.constant 0 : index
    %78 = vector.load %arg3[%c0_131, %c0_132] : memref<72x8xbf16, #tpu.memory_space<vmem>>, vector<72x8xbf16>
    %cst_133 = arith.constant dense<0.000000e+00> : vector<256x8xf32>
    %79 = tpu.matmul %77, %78, %cst_133 {dimension_numbers = #tpu.dot_dimension_numbers<[1], [0], [0], [1], [0, 0, 1, 1], [], []>} : vector<256x72xbf16>, vector<72x8xbf16>, vector<256x8xf32> -> vector<256x8xf32>
    %c0_134 = arith.constant 0 : index
    %c0_135 = arith.constant 0 : index
    %80 = vector.load %arg8[%c0_134, %c0_135] : memref<1x8xf32, #tpu.memory_space<vmem>>, vector<1x8xf32>
    %81 = vector.broadcast %80 : vector<1x8xf32> to vector<256x8xf32>
    %82 = arith.mulf %79, %81 : vector<256x8xf32>
    %c0_136 = arith.constant 0 : index
    %c0_137 = arith.constant 0 : index
    %83 = vector.load %arg9[%c0_136, %c0_137] : memref<1x8xf32, #tpu.memory_space<vmem>>, vector<1x8xf32>
    %84 = vector.broadcast %83 : vector<1x8xf32> to vector<256x8xf32>
    %85 = arith.addf %82, %84 : vector<256x8xf32>
    %cst_138 = arith.constant 0.699999988 : f32
    %86 = vector.broadcast %cst_138 : f32 to vector<256x8xf32>
    %87 = arith.mulf %85, %86 : vector<256x8xf32>
    %cst_139 = arith.constant 0.000000e+00 : f32
    %88 = vector.broadcast %cst_139 : f32 to vector<256x4xf32>
    %89 = tpu.concatenate %1, %88 in 1 : vector<256x4xf32>, vector<256x4xf32> -> vector<256x8xf32>
    %90 = arith.addf %87, %89 : vector<256x8xf32>
    %91 = vector.shape_cast %90 : vector<256x8xf32> to vector<1x16x16x8xf32>
    %c0_140 = arith.constant 0 : index
    %c0_141 = arith.constant 0 : index
    %c0_142 = arith.constant 0 : index
    %c0_143 = arith.constant 0 : index
    %92 = vector.load %arg10[%c0_140, %c0_141, %c0_142, %c0_143] : memref<1x16x16x8xf32, #tpu.memory_space<vmem>>, vector<1x16x16x8xf32>
    tpu.vector_store %arg10[%c0_140, %c0_141, %c0_142, %c0_143], %91 {strides = array<i32>} : memref<1x16x16x8xf32, #tpu.memory_space<vmem>>, vector<1x16x16x8xf32>,
    return
  }
  func.func @transform_0(%arg0: i32) -> (i32, i32, i32, i32) {
    %c0_i32 = arith.constant 0 : i32
    %c0_i32_0 = arith.constant 0 : i32
    %c0_i32_1 = arith.constant 0 : i32
    %c0_i32_2 = arith.constant 0 : i32
    return %arg0, %c0_i32, %c0_i32_0, %c0_i32_1 : i32, i32, i32, i32
  }
  func.func @transform_1(%arg0: i32) -> (i32, i32) {
    %c0_i32 = arith.constant 0 : i32
    %c0_i32_0 = arith.constant 0 : i32
    %c0_i32_1 = arith.constant 0 : i32
    return %c0_i32, %c0_i32_0 : i32, i32
  }
  func.func @transform_2(%arg0: i32) -> (i32, i32) {
    %c0_i32 = arith.constant 0 : i32
    %c0_i32_0 = arith.constant 0 : i32
    %c0_i32_1 = arith.constant 0 : i32
    return %c0_i32, %c0_i32_0 : i32, i32
  }
  func.func @transform_3(%arg0: i32) -> (i32, i32) {
    %c0_i32 = arith.constant 0 : i32
    %c0_i32_0 = arith.constant 0 : i32
    %c0_i32_1 = arith.constant 0 : i32
    return %c0_i32, %c0_i32_0 : i32, i32
  }
  func.func @transform_4(%arg0: i32) -> (i32, i32) {
    %c0_i32 = arith.constant 0 : i32
    %c0_i32_0 = arith.constant 0 : i32
    %c0_i32_1 = arith.constant 0 : i32
    return %c0_i32, %c0_i32_0 : i32, i32
  }
  func.func @transform_5(%arg0: i32) -> (i32, i32) {
    %c0_i32 = arith.constant 0 : i32
    %c0_i32_0 = arith.constant 0 : i32
    %c0_i32_1 = arith.constant 0 : i32
    return %c0_i32, %c0_i32_0 : i32, i32
  }
  func.func @transform_6(%arg0: i32) -> (i32, i32) {
    %c0_i32 = arith.constant 0 : i32
    %c0_i32_0 = arith.constant 0 : i32
    %c0_i32_1 = arith.constant 0 : i32
    return %c0_i32, %c0_i32_0 : i32, i32
  }
  func.func @transform_7(%arg0: i32) -> (i32, i32) {
    %c0_i32 = arith.constant 0 : i32
    %c0_i32_0 = arith.constant 0 : i32
    %c0_i32_1 = arith.constant 0 : i32
    return %c0_i32, %c0_i32_0 : i32, i32
  }
  func.func @transform_8(%arg0: i32) -> (i32, i32) {
    %c0_i32 = arith.constant 0 : i32
    %c0_i32_0 = arith.constant 0 : i32
    %c0_i32_1 = arith.constant 0 : i32
    return %c0_i32, %c0_i32_0 : i32, i32
  }
  func.func @transform_9(%arg0: i32) -> (i32, i32, i32, i32) {
    %c0_i32 = arith.constant 0 : i32
    %c0_i32_0 = arith.constant 0 : i32
    %c0_i32_1 = arith.constant 0 : i32
    %c0_i32_2 = arith.constant 0 : i32
    return %arg0, %c0_i32, %c0_i32_0, %c0_i32_1 : i32, i32, i32, i32
  }
}

</mosaic_0001>

<bundles_post_ra>
// kernel: tpu_custom_call.1
= control target key start
LH: loop header
LB: loop body
LE: loop exit
PB: predicated region body
PF: predicated region fallthrough
CT: control target
= control target key end

     0   :  { %s6232_s30 = smov 0   ;;  %s9206_s0 = inlined_call_operand.vmem [shape: f32[2,16,16,4], index: 0, kind: input, shape index: {}]   ;;  %s9207_s1 = inlined_call_operand.vmem [shape: bf16[36,8], index: 1, kind: input, shape index: {}]   ;;  %s9208_s2 = inlined_call_operand.vmem [shape: bf16[72,8], index: 2, kind: input, shape index: {}]   ;;  %s9209_s3 = inlined_call_operand.vmem [shape: f32[1,4], index: 3, kind: input, shape index: {}]   ;;  %s9210_s4 = inlined_call_operand.vmem [shape: f32[1,4], index: 4, kind: input, shape index: {}]   ;;  %s9211_s5 = inlined_call_operand.vmem [shape: f32[1,8], index: 5, kind: input, shape index: {}]   ;;  %s9212_s6 = inlined_call_operand.vmem [shape: f32[1,8], index: 6, kind: input, shape index: {}]   ;;  %s9213_s7 = inlined_call_operand.vmem [shape: f32[1,8], index: 7, kind: input, shape index: {}]   ;;  %s9214_s8 = inlined_call_operand.vmem [shape: f32[1,8], index: 8, kind: input, shape index: {}]   ;;  %s9215_s9 = inlined_call_operand.vmem [shape: f32[2,16,16,8], index: 9, kind: output, shape index: {}]  }
   0x1 LB: > { %s4637_s10 = sadd.s32 4294967295, %s6167_s30   ;;  %p4641_p0 = scmp.ge.s32.totalorder %s6167_s30, 1  ;;  %s6167_s30 = sphi %s6232_s30, %s19_s30  }
   0x2   : > { %p287_p1 = scmp.lt.s32.totalorder %s6167_s30, 3 }
   0x4   : > { %p288_p2 = pnand %p4641_p0, %p287_p1 }
   0x6   : > { %291 = sbr.rel (%p288_p2) target bundleno = 1187 (0x4a3), region = 56 }
   0xd   : > { %vm444_vm0 = vcmask 31744   ;;  %vm447_vm1 = vcmask 25600   ;;  %vm453_vm2 = vcmask 24576   ;;  %p6242_p3 = scmp.lt.s32.totalorder %s4637_s10, 1  ;;  %v9216_v0 = vmov 0.0   ;;  %s6170_s20 = smov 4  }
   0xe   : > { %445 = vst.msk [vmem:[#allocation2] sm:$0xff] %vm444_vm0, %v9216_v0  ;;  %446 = vst.msk [vmem:[#allocation2 + $0x8] sm:$0xff] %vm444_vm0, %v9216_v0  ;;  %v6337_v1 = vld [vmem:[%s9209_s3] ss:$0 sm:$0xff]  ;;  %vm1868_vm3 = vcmask 64512   ;;  %s6171_s21 = smov 8  }
   0xf   : > { %448 = vst.msk [vmem:[#allocation2 + $0x10] sm:$0x3] %vm447_vm1, %v9216_v0  ;;  %452 = vst.msk [vmem:[#allocation2 + $0x1a8] sm:$0x3] %vm447_vm1, %v9216_v0  ;;  %s9435_s10 = smov (!%p6242_p3, %s4637_s10), 1  ;;  %s6172_s22 = smov 12  }
  0x10   : > { %450 = vst.msk [vmem:[#allocation2 + $0x198] sm:$0xff] %vm444_vm0, %v9216_v0  ;;  %451 = vst.msk [vmem:[#allocation2 + $0x1a0] sm:$0xff] %vm444_vm0, %v9216_v0  ;;  %s4694_s14 = sshll.u32 %s9435_s10, 8  ;;  %v6343_v2 = vld [vmem:[%s9210_s4] ss:$0 sm:$0xff]  ;;  %s6173_s23 = smov 16  }
  0x11   : > { %455 = vst.msk [vmem:[#allocation2 + $0x18] sm:$0x1] %vm453_vm2, %v9216_v0  ;;  %456 = vst.msk [vmem:[#allocation2 + $0x30] sm:$0x1] %vm453_vm2, %v9216_v0  ;;  %s6350_s19 = scalar_lea.vmem %s9206_s0, %s4694_s14  ;;  %s6174_s24 = smov 20   ;;  %vm2184_vm4 = vcmask 1041408  }
  0x12   : > { %457 = vst.msk [vmem:[#allocation2 + $0x48] sm:$0x1] %vm453_vm2, %v9216_v0  ;;  %458 = vst.msk [vmem:[#allocation2 + $0x60] sm:$0x1] %vm453_vm2, %v9216_v0  ;;  %v336_v3 = vld [vmem:[%s6350_s19 + $0x10] sm:$0xff]  ;;  %v337_v4 = vld [vmem:[%s6350_s19 + $0x18] sm:$0xff] }
  0x13   : > { %459 = vst.msk [vmem:[#allocation2 + $0x78] sm:$0x1] %vm453_vm2, %v9216_v0  ;;  %460 = vst.msk [vmem:[#allocation2 + $0x90] sm:$0x1] %vm453_vm2, %v9216_v0  ;;  %v334_v5 = vld [vmem:[%s6350_s19] sm:$0xff]  ;;  %v375_v6 = vmul.f32 %v6337_v1, %v336_v3  ;;  %v376_v7 = vmul.f32 %v6337_v1, %v337_v4  ;;  %v335_v8 = vld [vmem:[%s6350_s19 + $0x8] sm:$0xff] }
  0x14   : > { %461 = vst.msk [vmem:[#allocation2 + $0xa8] sm:$0x1] %vm453_vm2, %v9216_v0  ;;  %462 = vst.msk [vmem:[#allocation2 + $0xc0] sm:$0x1] %vm453_vm2, %v9216_v0  ;;  %v373_v9 = vmul.f32 %v6337_v1, %v334_v5  ;;  %v338_v10 = vld [vmem:[%s6350_s19 + $0x20] sm:$0xff]  ;;  %v339_v11 = vld [vmem:[%s6350_s19 + $0x28] sm:$0xff]  ;;  %v374_v14 = vmul.f32 %v6337_v1, %v335_v8 }
  0x15   : > { %463 = vst.msk [vmem:[#allocation2 + $0xd8] sm:$0x1] %vm453_vm2, %v9216_v0  ;;  %464 = vst.msk [vmem:[#allocation2 + $0xf0] sm:$0x1] %vm453_vm2, %v9216_v0  ;;  %v555_v12 = vld [vmem:[#allocation2 + $0x1] sm:$0xff]  ;;  %v377_v15 = vmul.f32 %v6337_v1, %v338_v10  ;;  %v378_v16 = vmul.f32 %v6337_v1, %v339_v11  ;;  %v340_v17 = vld [vmem:[%s6350_s19 + $0x30] sm:$0xff]  ;;  %v414_v19 = vadd.f32 %v6343_v2, %v375_v6 }
  0x16   : > { %465 = vst.msk [vmem:[#allocation2 + $0x108] sm:$0x1] %vm453_vm2, %v9216_v0  ;;  %466 = vst.msk [vmem:[#allocation2 + $0x120] sm:$0x1] %vm453_vm2, %v9216_v0  ;;  %v556_v13 = vld [vmem:[#allocation2 + $0x9] sm:$0xff]  ;;  %v415_v20 = vadd.f32 %v6343_v2, %v376_v7  ;;  %v412_v21 = vadd.f32 %v6343_v2, %v373_v9  ;;  %v341_v22 = vld [vmem:[%s6350_s19 + $0x38] sm:$0xff]  ;;  %v413_v25 = vadd.f32 %v6343_v2, %v374_v14 }
  0x17   : > { %467 = vst.msk [vmem:[#allocation2 + $0x138] sm:$0x1] %vm453_vm2, %v9216_v0  ;;  %468 = vst.msk [vmem:[#allocation2 + $0x150] sm:$0x1] %vm453_vm2, %v9216_v0  ;;  %v4839_v18 = vpack.i.bf16 %v556_v13, %v555_v12  ;;  %v342_v23 = vld [vmem:[%s6350_s19 + $0x40] sm:$0xff]  ;;  %v343_v24 = vld [vmem:[%s6350_s19 + $0x48] sm:$0xff]  ;;  %v416_v26 = vadd.f32 %v6343_v2, %v377_v15  ;;  %v417_v27 = vadd.f32 %v6343_v2, %v378_v16 }
  0x18   : > { %469 = vst.msk [vmem:[#allocation2 + $0x168] sm:$0x1] %vm453_vm2, %v9216_v0  ;;  %470 = vst.msk [vmem:[#allocation2 + $0x180] sm:$0x1] %vm453_vm2, %v9216_v0  ;;  %v379_v28 = vmul.f32 %v6337_v1, %v340_v17  ;;  %v344_v29 = vld [vmem:[%s6350_s19 + $0x50] sm:$0xff]  ;;  %v345_v30 = vld [vmem:[%s6350_s19 + $0x58] sm:$0xff]  ;;  %v380_v32 = vmul.f32 %v6337_v1, %v341_v22  ;;  %v381_v33 = vmul.f32 %v6337_v1, %v342_v23 }
  0x19   : > { %473 = vst.msk [vmem:[#allocation2 + $0x29] sm:$0x1] %vm453_vm2, %v9216_v0  ;;  %474 = vst.msk [vmem:[#allocation2 + $0x41] sm:$0x1] %vm453_vm2, %v9216_v0  ;;  %v346_v31 = vld [vmem:[%s6350_s19 + $0x60] sm:$0xff]  ;;  %4840 = vrot.lane.b32.xlu0 %v4839_v18, %s6170_s20  ;;  %v382_v34 = vmul.f32 %v6337_v1, %v343_v24  ;;  %v383_v35 = vmul.f32 %v6337_v1, %v344_v29  ;;  %v347_v36 = vld [vmem:[%s6350_s19 + $0x68] sm:$0xff]  ;;  %v384_v40 = vmul.f32 %v6337_v1, %v345_v30 }
  0x1a   : > { %475 = vst.msk [vmem:[#allocation2 + $0x59] sm:$0x1] %vm453_vm2, %v9216_v0  ;;  %476 = vst.msk [vmem:[#allocation2 + $0x71] sm:$0x1] %vm453_vm2, %v9216_v0  ;;  %v348_v37 = vld [vmem:[%s6350_s19 + $0x70] sm:$0xff]  ;;  %v349_v38 = vld [vmem:[%s6350_s19 + $0x78] sm:$0xff]  ;;  %v418_v39 = vadd.f32 %v6343_v2, %v379_v28  ;;  %v385_v41 = vmul.f32 %v6337_v1, %v346_v31  ;;  %v386_v42 = vmul.f32 %v6337_v1, %v347_v36 }
  0x1b   : > { %477 = vst.msk [vmem:[#allocation2 + $0x89] sm:$0x1] %vm453_vm2, %v9216_v0  ;;  %478 = vst.msk [vmem:[#allocation2 + $0xa1] sm:$0x1] %vm453_vm2, %v9216_v0  ;;  %v350_v43 = vld [vmem:[%s6350_s19 + $0x80] sm:$0xff]  ;;  %v351_v44 = vld [vmem:[%s6350_s19 + $0x88] sm:$0xff]  ;;  %v419_v46 = vadd.f32 %v6343_v2, %v380_v32  ;;  %v420_v47 = vadd.f32 %v6343_v2, %v381_v33  ;;  %v421_v48 = vadd.f32 %v6343_v2, %v382_v34 }
  0x1c   : > { %479 = vst.msk [vmem:[#allocation2 + $0xb9] sm:$0x1] %vm453_vm2, %v9216_v0  ;;  %480 = vst.msk [vmem:[#allocation2 + $0xd1] sm:$0x1] %vm453_vm2, %v9216_v0  ;;  %v352_v45 = vld [vmem:[%s6350_s19 + $0x90] sm:$0xff]  ;;  %v422_v49 = vadd.f32 %v6343_v2, %v383_v35  ;;  %v353_v50 = vld [vmem:[%s6350_s19 + $0x98] sm:$0xff]  ;;  %v423_v53 = vadd.f32 %v6343_v2, %v384_v40  ;;  %v424_v54 = vadd.f32 %v6343_v2, %v385_v41 }
  0x1d   : > { %481 = vst.msk [vmem:[#allocation2 + $0xe9] sm:$0x1] %vm453_vm2, %v9216_v0  ;;  %482 = vst.msk [vmem:[#allocation2 + $0x101] sm:$0x1] %vm453_vm2, %v9216_v0  ;;  %v354_v51 = vld [vmem:[%s6350_s19 + $0xa0] sm:$0xff]  ;;  %v355_v52 = vld [vmem:[%s6350_s19 + $0xa8] sm:$0xff]  ;;  %v425_v55 = vadd.f32 %v6343_v2, %v386_v42  ;;  %v387_v56 = vmul.f32 %v6337_v1, %v348_v37  ;;  %v388_v57 = vmul.f32 %v6337_v1, %v349_v38 }
  0x1e   : > { %483 = vst.msk [vmem:[#allocation2 + $0x119] sm:$0x1] %vm453_vm2, %v9216_v0  ;;  %484 = vst.msk [vmem:[#allocation2 + $0x131] sm:$0x1] %vm453_vm2, %v9216_v0  ;;  %v389_v58 = vmul.f32 %v6337_v1, %v350_v43  ;;  %v390_v59 = vmul.f32 %v6337_v1, %v351_v44  ;;  %v391_v60 = vmul.f32 %v6337_v1, %v352_v45  ;;  %v356_v61 = vld [vmem:[%s6350_s19 + $0xb0] sm:$0xff]  ;;  %v357_v62 = vld [vmem:[%s6350_s19 + $0xb8] sm:$0xff] }
  0x1f   : > { %485 = vst.msk [vmem:[#allocation2 + $0x149] sm:$0x1] %vm453_vm2, %v9216_v0  ;;  %486 = vst.msk [vmem:[#allocation2 + $0x161] sm:$0x1] %vm453_vm2, %v9216_v0  ;;  %v426_v63 = vadd.f32 %v6343_v2, %v387_v56  ;;  %v392_v3 = vmul.f32 %v6337_v1, %v353_v50  ;;  %v393_v4 = vmul.f32 %v6337_v1, %v354_v51  ;;  %v358_v6 = vld [vmem:[%s6350_s19 + $0xc0] sm:$0xff]  ;;  %v359_v7 = vld [vmem:[%s6350_s19 + $0xc8] sm:$0xff] }
  0x20   : > { %487 = vst.msk [vmem:[#allocation2 + $0x179] sm:$0x1] %vm453_vm2, %v9216_v0  ;;  %488 = vst.msk [vmem:[#allocation2 + $0x191] sm:$0x1] %vm453_vm2, %v9216_v0  ;;  %v394_v5 = vmul.f32 %v6337_v1, %v355_v52  ;;  %v360_v8 = vld [vmem:[%s6350_s19 + $0xd0] sm:$0xff]  ;;  %v427_v9 = vadd.f32 %v6343_v2, %v388_v57  ;;  %v428_v10 = vadd.f32 %v6343_v2, %v389_v58  ;;  %v361_v13 = vld [vmem:[%s6350_s19 + $0xd8] sm:$0xff] }
  0x21   : > { %472 = vst.msk [vmem:[#allocation2 + $0x11] sm:$0x1] %vm453_vm2, %v9216_v0  ;;  %489 = vst.msk [vmem:[#allocation2 + $0x1a9] sm:$0x1] %vm453_vm2, %v9216_v0  ;;  %v429_v11 = vadd.f32 %v6343_v2, %v390_v59  ;;  %v430_v12 = vadd.f32 %v6343_v2, %v391_v60  ;;  %v362_v14 = vld [vmem:[%s6350_s19 + $0xe0] sm:$0xff]  ;;  %v363_v15 = vld [vmem:[%s6350_s19 + $0xe8] sm:$0xff]  ;;  %v395_v22 = vmul.f32 %v6337_v1, %v356_v61 }
  0x22   : > { %454 = vst.msk [vmem:[#allocation2] sm:$0x1] %vm453_vm2, %v9216_v0  ;;  %471 = vst.msk [vmem:[#allocation2 + $0x198] sm:$0x1] %vm453_vm2, %v9216_v0  ;;  %v397_v28 = vmul.f32 %v6337_v1, %v358_v6  ;;  %v398_v29 = vmul.f32 %v6337_v1, %v359_v7  ;;  %v399_v33 = vmul.f32 %v6337_v1, %v360_v8  ;;  %v365_v40 = vld [vmem:[%s6350_s19 + $0xf8] sm:$0xff]  ;;  %s6175_s25 = smov 24  }
  0x23   : > { %493 = vst.msk [vmem:[#allocation2 + $0x31] sm:$0xff] %vm444_vm0, %v414_v19  ;;  %494 = vst.msk [vmem:[#allocation2 + $0x39] sm:$0xff] %vm444_vm0, %v415_v20  ;;  %v431_v19 = vadd.f32 %v6343_v2, %v392_v3  ;;  %v432_v20 = vadd.f32 %v6343_v2, %v393_v4  ;;  %v434_v32 = vadd.f32 %v6343_v2, %v395_v22  ;;  %v587_v22 = vld [vmem:[#allocation2 + $0x2] sm:$0xff]  ;;  %s6176_s13 = smov 28   ;;  %s6177_s15 = smov 32   ;;  %vm1901_vm5 = vcmask 97280  }
  0x24   : > { %491 = vst.msk [vmem:[#allocation2 + $0x19] sm:$0xff] %vm444_vm0, %v412_v21  ;;  %492 = vst.msk [vmem:[#allocation2 + $0x21] sm:$0xff] %vm444_vm0, %v413_v25  ;;  %v433_v21 = vadd.f32 %v6343_v2, %v394_v5  ;;  %v436_v36 = vadd.f32 %v6343_v2, %v397_v28  ;;  %v437_v37 = vadd.f32 %v6343_v2, %v398_v29  ;;  %vm1934_vm6 = vcmask 130048   ;;  %s6180_s26 = smov 56   ;;  %s6181_s27 = smov 64  }
  0x25   : > { %495 = vst.msk [vmem:[#allocation2 + $0x49] sm:$0xff] %vm444_vm0, %v416_v26  ;;  %496 = vst.msk [vmem:[#allocation2 + $0x51] sm:$0xff] %vm444_vm0, %v417_v27  ;;  %v396_v27 = vmul.f32 %v6337_v1, %v357_v62  ;;  %v400_v38 = vmul.f32 %v6337_v1, %v361_v13  ;;  %v438_v44 = vadd.f32 %v6343_v2, %v399_v33  ;;  %vm1967_vm7 = vcmask 162816  }
  0x26   : > { %497 = vst.msk [vmem:[#allocation2 + $0x61] sm:$0xff] %vm444_vm0, %v418_v39  ;;  %498 = vst.msk [vmem:[#allocation2 + $0x69] sm:$0xff] %vm444_vm0, %v419_v46  ;;  %v364_v39 = vld [vmem:[%s6350_s19 + $0xf0] sm:$0xff]  ;;  %v401_v45 = vmul.f32 %v6337_v1, %v362_v14  ;;  %v402_v46 = vmul.f32 %v6337_v1, %v363_v15  ;;  %vm2000_vm8 = vcmask 195584   ;;  %vm2033_vm9 = vcmask 228352  }
  0x27   : > { %499 = vst.msk [vmem:[#allocation2 + $0x79] sm:$0xff] %vm444_vm0, %v420_v47  ;;  %500 = vst.msk [vmem:[#allocation2 + $0x81] sm:$0xff] %vm444_vm0, %v421_v48  ;;  %v435_v35 = vadd.f32 %v6343_v2, %v396_v27  ;;  %v439_v50 = vadd.f32 %v6343_v2, %v400_v38  ;;  %vm2066_vm10 = vcmask 261120   ;;  %vm2135_vm11 = vcmask 293888  }
  0x28   : > { %501 = vst.msk [vmem:[#allocation2 + $0x91] sm:$0xff] %vm444_vm0, %v422_v49  ;;  %502 = vst.msk [vmem:[#allocation2 + $0x99] sm:$0xff] %vm444_vm0, %v423_v53  ;;  %v440_v51 = vadd.f32 %v6343_v2, %v401_v45  ;;  %v441_v52 = vadd.f32 %v6343_v2, %v402_v46  ;;  %vm2461_vm12 = vcmask 58368   ;;  %vm2467_vm13 = vcmask 57344  }
  0x29   : > { %503 = vst.msk [vmem:[#allocation2 + $0xa9] sm:$0xff] %vm444_vm0, %v424_v54  ;;  %504 = vst.msk [vmem:[#allocation2 + $0xb1] sm:$0xff] %vm444_vm0, %v425_v55  ;;  %v403_v54 = vmul.f32 %v6337_v1, %v364_v39  ;;  %v404_v55 = vmul.f32 %v6337_v1, %v365_v40  ;;  %vm4211_vm14 = vcmask 1043456   ;;  %vm3978_vm15 = vcmask 326656  }
  0x2a   : > { %v559_v16 = vld [vmem:[#allocation2 + $0x31] sm:$0xff]  ;;  %v560_v17 = vld [vmem:[#allocation2 + $0x39] sm:$0xff]  ;;  %505 = vst.msk [vmem:[#allocation2 + $0xc1] sm:$0xff] %vm444_vm0, %v426_v63  ;;  %506 = vst.msk [vmem:[#allocation2 + $0xc9] sm:$0xff] %vm444_vm0, %v427_v9  ;;  %vm4011_vm1 = vcmask 392192   ;;  %vm4044_vm2 = vcmask 457728  }
  0x2b   : > { %v557_v18 = vld [vmem:[#allocation2 + $0x19] sm:$0xff]  ;;  %v6443_v23 = vpack.i.bf16 %v560_v17, %v559_v16  ;;  %v558_v24 = vld [vmem:[#allocation2 + $0x21] sm:$0xff]  ;;  %507 = vst.msk [vmem:[#allocation2 + $0xd9] sm:$0xff] %vm444_vm0, %v428_v10  ;;  %508 = vst.msk [vmem:[#allocation2 + $0xe1] sm:$0xff] %vm444_vm0, %v429_v11  ;;  %v442_v61 = vadd.f32 %v6343_v2, %v403_v54  ;;  %v443_v62 = vadd.f32 %v6343_v2, %v404_v55 }
  0x2c   : > { %v561_v25 = vld [vmem:[#allocation2 + $0x49] sm:$0xff]  ;;  %v562_v26 = vld [vmem:[#allocation2 + $0x51] sm:$0xff]  ;;  %509 = vst.msk [vmem:[#allocation2 + $0xf1] sm:$0xff] %vm444_vm0, %v430_v12  ;;  %v6452_v30 = vpack.i.bf16 %v558_v24, %v557_v18  ;;  %510 = vst.msk [vmem:[#allocation2 + $0xf9] sm:$0xff] %vm444_vm0, %v431_v19 }
  0x2d   : > { %v6454_v31 = vpack.i.bf16 %v562_v26, %v561_v25  ;;  %511 = vst.msk [vmem:[#allocation2 + $0x109] sm:$0xff] %vm444_vm0, %v432_v20  ;;  %512 = vst.msk [vmem:[#allocation2 + $0x111] sm:$0xff] %vm444_vm0, %v433_v21  ;;  %4850 = vrot.lane.b32.xlu1 %v6443_v23, %s6170_s20  ;;  %v563_v34 = vld [vmem:[#allocation2 + $0x61] sm:$0xff]  ;;  %v564_v41 = vld [vmem:[#allocation2 + $0x69] sm:$0xff] }
  0x2e   : > { %4845 = vrot.lane.b32.xlu0 %v6452_v30, %s6170_s20  ;;  %v565_v42 = vld [vmem:[#allocation2 + $0x79] sm:$0xff]  ;;  %v566_v43 = vld [vmem:[#allocation2 + $0x81] sm:$0xff]  ;;  %513 = vst.msk [vmem:[#allocation2 + $0x121] sm:$0xff] %vm444_vm0, %v434_v32  ;;  %v6475_v47 = vpack.i.bf16 %v564_v41, %v563_v34  ;;  %514 = vst.msk [vmem:[#allocation2 + $0x129] sm:$0xff] %vm444_vm0, %v435_v35 }
  0x2f   : > { %v567_v48 = vld [vmem:[#allocation2 + $0x91] sm:$0xff]  ;;  %v568_v49 = vld [vmem:[#allocation2 + $0x99] sm:$0xff]  ;;  %515 = vst.msk [vmem:[#allocation2 + $0x139] sm:$0xff] %vm444_vm0, %v436_v36  ;;  %516 = vst.msk [vmem:[#allocation2 + $0x141] sm:$0xff] %vm444_vm0, %v437_v37  ;;  %v6486_v53 = vpack.i.bf16 %v566_v43, %v565_v42 }
  0x30   : > { %517 = vst.msk [vmem:[#allocation2 + $0x151] sm:$0xff] %vm444_vm0, %v438_v44  ;;  %518 = vst.msk [vmem:[#allocation2 + $0x159] sm:$0xff] %vm444_vm0, %v439_v50  ;;  %v6493_v56 = vpack.i.bf16 %v568_v49, %v567_v48  ;;  %v569_v57 = vld [vmem:[#allocation2 + $0xa9] sm:$0xff]  ;;  %v570_v58 = vld [vmem:[#allocation2 + $0xb1] sm:$0xff] }
  0x31   : > { %4855 = vrot.lane.b32.xlu1 %v6454_v31, %s6170_s20  ;;  %519 = vst.msk [vmem:[#allocation2 + $0x169] sm:$0xff] %vm444_vm0, %v440_v51  ;;  %520 = vst.msk [vmem:[#allocation2 + $0x171] sm:$0xff] %vm444_vm0, %v441_v52  ;;  %v571_v59 = vld [vmem:[#allocation2 + $0xc1] sm:$0xff]  ;;  %v572_v60 = vld [vmem:[#allocation2 + $0xc9] sm:$0xff]  ;;  %v6501_v1 = vpack.i.bf16 %v570_v58, %v569_v57 }
  0x32   : > { %4860 = vrot.lane.b32.xlu0 %v6475_v47, %s6170_s20  ;;  %521 = vst.msk [vmem:[#allocation2 + $0x181] sm:$0xff] %vm444_vm0, %v442_v61  ;;  %522 = vst.msk [vmem:[#allocation2 + $0x189] sm:$0xff] %vm444_vm0, %v443_v62  ;;  %v6507_v63 = vpack.i.bf16 %v572_v60, %v571_v59  ;;  %v573_v3 = vld [vmem:[#allocation2 + $0xd9] sm:$0xff]  ;;  %v574_v4 = vld [vmem:[#allocation2 + $0xe1] sm:$0xff] }
  0x33   : > { %v575_v5 = vld [vmem:[#allocation2 + $0xf1] sm:$0xff]  ;;  %v576_v6 = vld [vmem:[#allocation2 + $0xf9] sm:$0xff]  ;;  %v6511_v2 = vpack.i.bf16 %v574_v4, %v573_v3  ;;  %2459 = vst.msk [vmem:[#allocation3] sm:$0xff] %vm1868_vm3, %v9216_v0  ;;  %2460 = vst.msk [vmem:[#allocation3 + $0x8] sm:$0xff] %vm1868_vm3, %v9216_v0 }
  0x34   : > { %v6515_v7 = vpack.i.bf16 %v576_v6, %v575_v5  ;;  %v577_v8 = vld [vmem:[#allocation2 + $0x109] sm:$0xff]  ;;  %v578_v9 = vld [vmem:[#allocation2 + $0x111] sm:$0xff]  ;;  %2464 = vst.msk [vmem:[#allocation3 + $0x198] sm:$0xff] %vm1868_vm3, %v9216_v0  ;;  %2465 = vst.msk [vmem:[#allocation3 + $0x1a0] sm:$0xff] %vm1868_vm3, %v9216_v0 }
  0x35   : > { %4865 = vrot.lane.b32.xlu1 %v6486_v53, %s6170_s20  ;;  %v579_v10 = vld [vmem:[#allocation2 + $0x121] sm:$0xff]  ;;  %v580_v11 = vld [vmem:[#allocation2 + $0x129] sm:$0xff]  ;;  %v6519_v12 = vpack.i.bf16 %v578_v9, %v577_v8  ;;  %v591_v29 = vld [vmem:[#allocation2 + $0x32] sm:$0xff] }
  0x36   : > { %4870 = vrot.lane.b32.xlu0 %v6493_v56, %s6170_s20  ;;  %v6523_v13 = vpack.i.bf16 %v580_v11, %v579_v10  ;;  %v581_v14 = vld [vmem:[#allocation2 + $0x139] sm:$0xff]  ;;  %v582_v15 = vld [vmem:[#allocation2 + $0x141] sm:$0xff]  ;;  %v588_v24 = vld [vmem:[#allocation2 + $0xa] sm:$0xff] }
  0x37   : > { %v583_v16 = vld [vmem:[#allocation2 + $0x151] sm:$0xff]  ;;  %v584_v17 = vld [vmem:[#allocation2 + $0x159] sm:$0xff]  ;;  %v6535_v18 = vpack.i.bf16 %v582_v15, %v581_v14  ;;  %v4919_v26 = vpack.i.bf16 %v588_v24, %v587_v22  ;;  %v590_v28 = vld [vmem:[#allocation2 + $0x22] sm:$0xff] }
  0x38   : > { %v6539_v19 = vpack.i.bf16 %v584_v17, %v583_v16  ;;  %v585_v20 = vld [vmem:[#allocation2 + $0x169] sm:$0xff]  ;;  %v586_v21 = vld [vmem:[#allocation2 + $0x171] sm:$0xff]  ;;  %v589_v27 = vld [vmem:[#allocation2 + $0x1a] sm:$0xff] }
  0x39   : > { %4875 = vrot.lane.b32.xlu1 %v6501_v1, %s6170_s20  ;;  %v6543_v25 = vpack.i.bf16 %v586_v21, %v585_v20  ;;  %v592_v32 = vld [vmem:[#allocation2 + $0x3a] sm:$0xff]  ;;  %v6549_v33 = vpack.i.bf16 %v590_v28, %v589_v27  ;;  %v593_v34 = vld [vmem:[#allocation2 + $0x4a] sm:$0xff]  ;;  %v594_v35 = vld [vmem:[#allocation2 + $0x52] sm:$0xff] }
  0x3a   : > { %4880 = vrot.lane.b32.xlu0 %v6507_v63, %s6170_s20  ;;  %v6552_v36 = vpack.i.bf16 %v592_v32, %v591_v29  ;;  %v595_v37 = vld [vmem:[#allocation2 + $0x62] sm:$0xff]  ;;  %v596_v38 = vld [vmem:[#allocation2 + $0x6a] sm:$0xff]  ;;  %v6556_v39 = vpack.i.bf16 %v594_v35, %v593_v34  ;;  %v597_v41 = vld [vmem:[#allocation2 + $0x7a] sm:$0xff] }
  0x3b   : > { %v6560_v40 = vpack.i.bf16 %v596_v38, %v595_v37  ;;  %v598_v42 = vld [vmem:[#allocation2 + $0x82] sm:$0xff]  ;;  %v599_v43 = vld [vmem:[#allocation2 + $0x92] sm:$0xff]  ;;  %v600_v44 = vld [vmem:[#allocation2 + $0x9a] sm:$0xff] }
  0x3c   : > { %v6564_v45 = vpack.i.bf16 %v598_v42, %v597_v41  ;;  %v6568_v46 = vpack.i.bf16 %v600_v44, %v599_v43  ;;  %v601_v48 = vld [vmem:[#allocation2 + $0xaa] sm:$0xff]  ;;  %v602_v49 = vld [vmem:[#allocation2 + $0xb2] sm:$0xff]  ;;  %v603_v50 = vld [vmem:[#allocation2 + $0xc2] sm:$0xff] }
  0x3d   : > { %4885 = vrot.lane.b32.xlu1 %v6511_v2, %s6170_s20  ;;  %v604_v51 = vld [vmem:[#allocation2 + $0xca] sm:$0xff]  ;;  %v6572_v52 = vpack.i.bf16 %v602_v49, %v601_v48  ;;  %v605_v55 = vld [vmem:[#allocation2 + $0xda] sm:$0xff]  ;;  %v606_v57 = vld [vmem:[#allocation2 + $0xe2] sm:$0xff] }
  0x3e   : > { %4890 = vrot.lane.b32.xlu0 %v6515_v7, %s6170_s20  ;;  %v6576_v54 = vpack.i.bf16 %v604_v51, %v603_v50  ;;  %v607_v58 = vld [vmem:[#allocation2 + $0xf2] sm:$0xff]  ;;  %v608_v59 = vld [vmem:[#allocation2 + $0xfa] sm:$0xff]  ;;  %v6580_v60 = vpack.i.bf16 %v606_v57, %v605_v55  ;;  %v609_v62 = vld [vmem:[#allocation2 + $0x10a] sm:$0xff] }
  0x3f   : > { %v6584_v61 = vpack.i.bf16 %v608_v59, %v607_v58  ;;  %v610_v3 = vld [vmem:[#allocation2 + $0x112] sm:$0xff]  ;;  %v611_v4 = vld [vmem:[#allocation2 + $0x122] sm:$0xff]  ;;  %v612_v5 = vld [vmem:[#allocation2 + $0x12a] sm:$0xff] }
  0x40   : > { %v6588_v6 = vpack.i.bf16 %v610_v3, %v609_v62  ;;  %v6592_v8 = vpack.i.bf16 %v612_v5, %v611_v4  ;;  %v613_v9 = vld [vmem:[#allocation2 + $0x13a] sm:$0xff]  ;;  %v614_v10 = vld [vmem:[#allocation2 + $0x142] sm:$0xff]  ;;  %v615_v11 = vld [vmem:[#allocation2 + $0x152] sm:$0xff] }
  0x41   : > { %4895 = vrot.lane.b32.xlu1 %v6519_v12, %s6170_s20  ;;  %v616_v14 = vld [vmem:[#allocation2 + $0x15a] sm:$0xff]  ;;  %v6596_v15 = vpack.i.bf16 %v614_v10, %v613_v9  ;;  %v617_v17 = vld [vmem:[#allocation2 + $0x16a] sm:$0xff]  ;;  %v618_v20 = vld [vmem:[#allocation2 + $0x172] sm:$0xff] }
  0x42   : > { %4900 = vrot.lane.b32.xlu0 %v6523_v13, %s6170_s20  ;;  %v6600_v16 = vpack.i.bf16 %v616_v14, %v615_v11  ;;  %v6602_v21 = vld [vmem:[#allocation2 + $0x18] sm:$0xff]  ;;  %v6604_v22 = vld [vmem:[#allocation2 + $0x20] sm:$0xff]  ;;  %v6608_v24 = vpack.i.bf16 %v618_v20, %v617_v17  ;;  %v6614_v27 = vld [vmem:[#allocation2 + $0x30] sm:$0xff] }
  0x43   : > { %v6616_v28 = vld [vmem:[#allocation2 + $0x38] sm:$0xff]  ;;  %v6618_v29 = vld [vmem:[#allocation2 + $0x48] sm:$0xff]  ;;  %v6620_v32 = vld [vmem:[#allocation2 + $0x50] sm:$0xff] }
  0x44   : > { %v6626_v34 = vpack.i.bf16 %v6616_v28, %v6614_v27  ;;  %v6631_v35 = vpack.i.bf16 %v6620_v32, %v6618_v29  ;;  %v6633_v37 = vld [vmem:[#allocation2 + $0x60] sm:$0xff]  ;;  %v6635_v38 = vld [vmem:[#allocation2 + $0x68] sm:$0xff]  ;;  %v6637_v41 = vld [vmem:[#allocation2 + $0x78] sm:$0xff] }
  0x45   : > { %4905 = vrot.lane.b32.xlu1 %v6535_v18, %s6170_s20  ;;  %v6639_v42 = vld [vmem:[#allocation2 + $0x80] sm:$0xff]  ;;  %v6645_v43 = vpack.i.bf16 %v6635_v38, %v6633_v37  ;;  %v6653_v48 = vld [vmem:[#allocation2 + $0x90] sm:$0xff]  ;;  %v6655_v49 = vld [vmem:[#allocation2 + $0x98] sm:$0xff] }
  0x46   : > { %4910 = vrot.lane.b32.xlu0 %v6539_v19, %s6170_s20  ;;  %v6651_v44 = vpack.i.bf16 %v6639_v42, %v6637_v41  ;;  %v6657_v50 = vld [vmem:[#allocation2 + $0xa8] sm:$0xff]  ;;  %v6659_v51 = vld [vmem:[#allocation2 + $0xb0] sm:$0xff]  ;;  %v6665_v55 = vpack.i.bf16 %v6655_v49, %v6653_v48  ;;  %v6673_v58 = vld [vmem:[#allocation2 + $0xc0] sm:$0xff] }
  0x47   : > { %9289 = vst [vmem:[#allocation4_spill] sm:$0xff] %v6657_v50  ;;  %v6671_v57 = vpack.i.bf16 %v6659_v51, %v6657_v50  ;;  %9290 = vst [vmem:[#allocation5_spill] sm:$0xff] %v6673_v58  ;;  %v6675_v59 = vld [vmem:[#allocation2 + $0xc8] sm:$0xff]  ;;  %v6677_v62 = vld [vmem:[#allocation2 + $0xd8] sm:$0xff] }
  0x48   : > { %9291 = vst [vmem:[#allocation6_spill] sm:$0xff] %v6675_v59  ;;  %9292 = vst [vmem:[#allocation7_spill] sm:$0xff] %v6677_v62  ;;  %v6679_v3 = vld [vmem:[#allocation2 + $0xe0] sm:$0xff]  ;;  %v6685_v4 = vpack.i.bf16 %v6675_v59, %v6673_v58  ;;  %v6693_v9 = vld [vmem:[#allocation2 + $0xf0] sm:$0xff] }
  0x49   : > { %4915 = vrot.lane.b32.xlu1 %v6543_v25, %s6170_s20  ;;  %9293 = vst [vmem:[#allocation8_spill] sm:$0xff] %v6679_v3  ;;  %v6691_v5 = vpack.i.bf16 %v6679_v3, %v6677_v62  ;;  %9294 = vst [vmem:[#allocation9_spill] sm:$0xff] %v6693_v9  ;;  %v6695_v10 = vld [vmem:[#allocation2 + $0xf8] sm:$0xff]  ;;  %v6697_v11 = vld [vmem:[#allocation2 + $0x108] sm:$0xff] }
  0x4a   : > { %4920 = vrot.lane.b32.xlu0 %v4919_v26, %s6171_s21  ;;  %v4999_v26 = vpack.i.bf16 %v6604_v22, %v6602_v21  ;;  %9295 = vst [vmem:[#allocation10_spill] sm:$0xff] %v6695_v10  ;;  %9296 = vst [vmem:[#allocation11_spill] sm:$0xff] %v6697_v11  ;;  %v6699_v14 = vld [vmem:[#allocation2 + $0x110] sm:$0xff]  ;;  %v6705_v17 = vpack.i.bf16 %v6695_v10, %v6693_v9  ;;  %v6715_v0 = vld [vmem:[#allocation2 + $0x128] sm:$0xff] }
  0x4b   : > { %9297 = vst [vmem:[#allocation12_spill] sm:$0xff] %v6699_v14  ;;  %v6711_v20 = vpack.i.bf16 %v6699_v14, %v6697_v11  ;;  %9299 = vst [vmem:[#allocation14_spill] sm:$0xff] %v6715_v0  ;;  %v6717_v62 = vld [vmem:[#allocation2 + $0x138] sm:$0xff]  ;;  %v6719_v3 = vld [vmem:[#allocation2 + $0x140] sm:$0xff] }
  0x4c   : > { %9300 = vst [vmem:[#allocation15_spill] sm:$0xff] %v6717_v62  ;;  %9301 = vst [vmem:[#allocation16_spill] sm:$0xff] %v6719_v3  ;;  %v6731_v11 = vpack.i.bf16 %v6719_v3, %v6717_v62  ;;  %v6733_v14 = vld [vmem:[#allocation2 + $0x150] sm:$0xff]  ;;  %v6735_v10 = vld [vmem:[#allocation2 + $0x158] sm:$0xff] }
  0x4d   : > { %4925 = vrot.lane.b32.xlu1 %v6549_v33, %s6171_s21  ;;  %v6737_v58 = vld [vmem:[#allocation2 + $0x168] sm:$0xff]  ;;  %v6739_v59 = vld [vmem:[#allocation2 + $0x170] sm:$0xff]  ;;  %v649_v3 = vld [vmem:[#allocation2 + $0x180] sm:$0xff] }
  0x4e   : > { %4930 = vrot.lane.b32.xlu0 %v6552_v36, %s6171_s21  ;;  %v6751_v62 = vpack.i.bf16 %v6739_v59, %v6737_v58 }
  0x51   : > { %4935 = vrot.lane.b32.xlu1 %v6556_v39, %s6171_s21 }
  0x52   : > { %4940 = vrot.lane.b32.xlu0 %v6560_v40, %s6171_s21 }
  0x55   : > { %4945 = vrot.lane.b32.xlu1 %v6564_v45, %s6171_s21 }
  0x56   : > { %4950 = vrot.lane.b32.xlu0 %v6568_v46, %s6171_s21 }
  0x59   : > { %4955 = vrot.lane.b32.xlu1 %v6572_v52, %s6171_s21 }
  0x5a   : > { %4960 = vrot.lane.b32.xlu0 %v6576_v54, %s6171_s21 }
  0x5d   : > { %4965 = vrot.lane.b32.xlu1 %v6580_v60, %s6171_s21 }
  0x5e   : > { %4970 = vrot.lane.b32.xlu0 %v6584_v61, %s6171_s21 }
  0x61   : > { %4975 = vrot.lane.b32.xlu1 %v6588_v6, %s6171_s21 }
  0x62   : > { %4980 = vrot.lane.b32.xlu0 %v6592_v8, %s6171_s21 }
  0x65   : > { %4985 = vrot.lane.b32.xlu1 %v6596_v15, %s6171_s21 }
  0x66   : > { %4990 = vrot.lane.b32.xlu0 %v6600_v16, %s6171_s21 }
  0x69   : > { %4995 = vrot.lane.b32.xlu1 %v6608_v24, %s6171_s21 }
  0x6a   : > { %5000 = vrot.lane.b32.xlu0 %v4999_v26, %s6172_s22  ;;  %v6713_v26 = vld [vmem:[#allocation2 + $0x120] sm:$0xff] }
  0x6b   : > { %9298 = vst [vmem:[#allocation13_spill] sm:$0xff] %v6713_v26  ;;  %v6725_v9 = vpack.i.bf16 %v6715_v0, %v6713_v26  ;;  %v6745_v26 = vpack.i.bf16 %v6735_v10, %v6733_v14  ;;  %v650_v0 = vld [vmem:[#allocation2 + $0x188] sm:$0xff] }
  0x6c   : > { %v6755_v50 = vpack.i.bf16 %v650_v0, %v649_v3 }
  0x6d   : > { %5005 = vrot.lane.b32.xlu1 %v6626_v34, %s6172_s22 }
  0x6e   : > { %5010 = vrot.lane.b32.xlu0 %v6631_v35, %s6172_s22 }
  0x71   : > { %5015 = vrot.lane.b32.xlu1 %v6645_v43, %s6172_s22 }
  0x72   : > { %5020 = vrot.lane.b32.xlu0 %v6651_v44, %s6172_s22 }
  0x75   : > { %5025 = vrot.lane.b32.xlu1 %v6665_v55, %s6172_s22 }
  0x76   : > { %5030 = vrot.lane.b32.xlu0 %v6671_v57, %s6172_s22 }
  0x79   : > { %5035 = vrot.lane.b32.xlu1 %v6685_v4, %s6172_s22 }
  0x7a   : > { %5040 = vrot.lane.b32.xlu0 %v6691_v5, %s6172_s22 }
  0x7d   : > { %5045 = vrot.lane.b32.xlu1 %v6705_v17, %s6172_s22 }
  0x7e   : > { %5050 = vrot.lane.b32.xlu0 %v6711_v20, %s6172_s22 }
  0x81   : > { %5055 = vrot.lane.b32.xlu1 %v6725_v9, %s6172_s22 }
  0x82   : > { %5060 = vrot.lane.b32.xlu0 %v6731_v11, %s6172_s22 }
  0x85   : > { %5065 = vrot.lane.b32.xlu1 %v6745_v26, %s6172_s22 }
  0x86   : > { %5070 = vrot.lane.b32.xlu0 %v6751_v62, %s6172_s22 }
  0x89   : > { %5075 = vrot.lane.b32.xlu1 %v6755_v50, %s6172_s22  ;;  %s6178_s22 = smov 40  }
  0x8a   : > { %5080 = vrot.lane.b32.xlu0 %v6452_v30, %s6173_s23 }
  0x8b   : > { %v6779_v0 = vpop.permute.xlu0 %4840 }
  0x8d   : > { %5085 = vrot.lane.b32.xlu1 %v6443_v23, %s6173_s23 }
  0x8e   : > { %5090 = vrot.lane.b32.xlu0 %v6454_v31, %s6173_s23  ;;  %v681_v31 = vld [vmem:[#allocation2 + $0x181] sm:$0xff] }
  0x91   : > { %5095 = vrot.lane.b32.xlu1 %v6475_v47, %s6173_s23  ;;  %v682_v47 = vld [vmem:[#allocation2 + $0x189] sm:$0xff] }
  0x92   : > { %5100 = vrot.lane.b32.xlu0 %v6486_v53, %s6173_s23 }
  0x95   : > { %5105 = vrot.lane.b32.xlu1 %v6493_v56, %s6173_s23 }
  0x96   : > { %5110 = vrot.lane.b32.xlu0 %v6501_v1, %s6173_s23  ;;  %v5154_v1 = vpack.i.bf16 %v682_v47, %v681_v31 }
  0x99   : > { %5115 = vrot.lane.b32.xlu1 %v6507_v63, %s6173_s23 }
  0x9a   : > { %5120 = vrot.lane.b32.xlu0 %v6511_v2, %s6173_s23 }
  0x9d   : > { %5125 = vrot.lane.b32.xlu1 %v6515_v7, %s6173_s23 }
  0x9e   : > { %5130 = vrot.lane.b32.xlu0 %v6519_v12, %s6173_s23 }
  0x9f   : > { %v6785_v23 = vpop.permute.xlu1 %4850 }
  0xa0   : > { %v6787_v30 = vpop.permute.xlu0 %4845 }
  0xa1   : > { %5135 = vrot.lane.b32.xlu1 %v6523_v13, %s6173_s23 }
  0xa2   : > { %5140 = vrot.lane.b32.xlu0 %v6535_v18, %s6173_s23 }
  0xa3   : > { %v6793_v53 = vpop.permute.xlu1 %4855 }
  0xa4   : > { %v6795_v56 = vpop.permute.xlu0 %4860 }
  0xa5   : > { %5145 = vrot.lane.b32.xlu1 %v6539_v19, %s6173_s23 }
  0xa6   : > { %5150 = vrot.lane.b32.xlu0 %v6543_v25, %s6173_s23 }
  0xa7   : > { %v6801_v63 = vpop.permute.xlu1 %4865 }
  0xa8   : > { %v6803_v2 = vpop.permute.xlu0 %4870 }
  0xa9   : > { %5155 = vrot.lane.b32.xlu1 %v5154_v1, %s6173_s23  ;;  %v747_v1 = vld [vmem:[#allocation2 + $0x1a0] sm:$0xff] }
  0xaa   : > { %5160 = vrot.lane.b32.xlu0 %v6549_v33, %s6174_s24 }
  0xab   : > { %v6808_v7 = vpop.permute.xlu1 %4875 }
  0xac   : > { %v6810_v12 = vpop.permute.xlu0 %4880 }
  0xad   : > { %5165 = vrot.lane.b32.xlu1 %v6552_v36, %s6174_s24 }
  0xae   : > { %5170 = vrot.lane.b32.xlu0 %v6556_v39, %s6174_s24 }
  0xaf   : > { %v6816_v13 = vpop.permute.xlu1 %4885 }
  0xb0   : > { %v6818_v18 = vpop.permute.xlu0 %4890 }
  0xb1   : > { %5175 = vrot.lane.b32.xlu1 %v6560_v40, %s6174_s24 }
  0xb2   : > { %5180 = vrot.lane.b32.xlu0 %v6564_v45, %s6174_s24 }
  0xb3   : > { %v6824_v19 = vpop.permute.xlu1 %4895 }
  0xb4   : > { %v6826_v25 = vpop.permute.xlu0 %4900 }
  0xb5   : > { %5185 = vrot.lane.b32.xlu1 %v6568_v46, %s6174_s24 }
  0xb6   : > { %5190 = vrot.lane.b32.xlu0 %v6572_v52, %s6174_s24  ;;  %v713_v52 = vld [vmem:[#allocation2 + $0x182] sm:$0xff] }
  0xb7   : > { %v6832_v33 = vpop.permute.xlu1 %4905 }
  0xb8   : > { %v6834_v36 = vpop.permute.xlu0 %4910 }
  0xb9   : > { %5195 = vrot.lane.b32.xlu1 %v6576_v54, %s6174_s24  ;;  %v714_v54 = vld [vmem:[#allocation2 + $0x18a] sm:$0xff] }
  0xba   : > { %5200 = vrot.lane.b32.xlu0 %v6580_v60, %s6174_s24 }
  0xbb   : > { %v6840_v39 = vpop.permute.xlu1 %4915 }
  0xbc   : > { %v6842_v40 = vpop.permute.xlu0 %4920 }
  0xbd   : > { %5205 = vrot.lane.b32.xlu1 %v6584_v61, %s6174_s24  ;;  %v6862_v61 = vpack.i.bf16 %v714_v54, %v713_v52  ;;  %v748_v52 = vld [vmem:[#allocation2 + $0x31] sm:$0xff]  ;;  %v749_v54 = vld [vmem:[#allocation2 + $0x39] sm:$0xff] }
  0xbe   : > { %5210 = vrot.lane.b32.xlu0 %v6588_v6, %s6174_s24 }
  0xbf   : > { %v6848_v45 = vpop.permute.xlu1 %4925 }
  0xc0   : > { %v6850_v46 = vpop.permute.xlu0 %4930 }
  0xc1   : > { %5215 = vrot.lane.b32.xlu1 %v6592_v8, %s6174_s24 }
  0xc2   : > { %5220 = vrot.lane.b32.xlu0 %v6596_v15, %s6174_s24 }
  0xc3   : > { %v6856_v60 = vpop.permute.xlu1 %4935 }
  0xc4   : > { %v6858_v3 = vpop.permute.xlu0 %4940 }
  0xc5   : > { %5225 = vrot.lane.b32.xlu1 %v6600_v16, %s6174_s24 }
  0xc6   : > { %5230 = vrot.lane.b32.xlu0 %v6608_v24, %s6174_s24 }
  0xc7   : > { %v6866_v6 = vpop.permute.xlu1 %4945 }
  0xc8   : > { %v6868_v8 = vpop.permute.xlu0 %4950 }
  0xc9   : > { %5235 = vrot.lane.b32.xlu1 %v6862_v61, %s6174_s24  ;;  %s6179_s24 = smov 48  }
  0xca   : > { %5240 = vrot.lane.b32.xlu0 %v6626_v34, %s6175_s25 }
  0xcb   : > { %v6874_v15 = vpop.permute.xlu1 %4955 }
  0xcc   : > { %9302 = vst [vmem:[#allocation17_spill] sm:$0xff] %v6874_v15  ;;  %v6876_v31 = vpop.permute.xlu0 %4960 }
  0xcd   : > { %9303 = vst [vmem:[#allocation18_spill] sm:$0xff] %v6876_v31  ;;  %5245 = vrot.lane.b32.xlu1 %v6631_v35, %s6175_s25  ;;  %v779_v31 = vld [vmem:[#allocation2 + $0x1a1] sm:$0xff] }
  0xce   : > { %5250 = vrot.lane.b32.xlu0 %v6645_v43, %s6175_s25 }
  0xcf   : > { %v6882_v16 = vpop.permute.xlu1 %4965 }
  0xd0   : > { %9304 = vst [vmem:[#allocation19_spill] sm:$0xff] %v6882_v16  ;;  %v6884_v24 = vpop.permute.xlu0 %4970  ;;  %v4862_v16 = vunpack.i.l.bf16 %v6795_v56 }
  0xd1   : > { %9305 = vst [vmem:[#allocation20_spill] sm:$0xff] %v6884_v24  ;;  %5255 = vrot.lane.b32.xlu1 %v6651_v44, %s6175_s25  ;;  %v4848_v24 = vunpack.i.h.bf16 %v6787_v30 }
  0xd2   : > { %5260 = vrot.lane.b32.xlu0 %v6665_v55, %s6175_s25 }
  0xd3   : > { %v6890_v34 = vpop.permute.xlu1 %4975 }
  0xd4   : > { %9306 = vst [vmem:[#allocation21_spill] sm:$0xff] %v6890_v34  ;;  %v6892_v47 = vpop.permute.xlu0 %4980 }
  0xd5   : > { %9307 = vst [vmem:[#allocation22_spill] sm:$0xff] %v6892_v47  ;;  %5265 = vrot.lane.b32.xlu1 %v6671_v57, %s6175_s25  ;;  %v6119_v57 = vld [vmem:[%s9207_s1] sm:$0xff]   ;;  %v775_v47 = vld [vmem:[#allocation2 + $0x171] sm:$0xff] }
  0xd6   : > { %5270 = vrot.lane.b32.xlu0 %v6685_v4, %s6175_s25  ;;  %4736 = vmatprep.subr.bf16.mxu0 %v6119_v57 }
  0xd7   : > { %v6898_v35 = vpop.permute.xlu1 %4985  ;;  %4737 = vmatpush3.bf16.msra.mxu0 %v6119_v57 }
  0xd8   : > { %9308 = vst [vmem:[#allocation23_spill] sm:$0xff] %v6898_v35  ;;  %v6900_v43 = vpop.permute.xlu0 %4990 }
  0xd9   : > { %9309 = vst [vmem:[#allocation24_spill] sm:$0xff] %v6900_v43  ;;  %5275 = vrot.lane.b32.xlu1 %v6691_v5, %s6175_s25 }
  0xda   : > { %5280 = vrot.lane.b32.xlu0 %v6705_v17, %s6175_s25  ;;  %v6120_v17 = vld [vmem:[%s9207_s1 + $0x8] sm:$0xff]  }
  0xdb   : > { %v6906_v44 = vpop.permute.xlu1 %4995  ;;  %4738 = vmatprep.subr.bf16.mxu0 %v6120_v17 }
  0xdc   : > { %9310 = vst [vmem:[#allocation25_spill] sm:$0xff] %v6906_v44  ;;  %v6908_v55 = vpop.permute.xlu0 %5000  ;;  %4739 = vmatpush3.bf16.msra.mxu0 %v6120_v17  ;;  %v781_v44 = vld [vmem:[#allocation2 + $0x3a] sm:$0xff] }
  0xdd   : > { %9311 = vst [vmem:[#allocation26_spill] sm:$0xff] %v6908_v55  ;;  %5285 = vrot.lane.b32.xlu1 %v6711_v20, %s6175_s25  ;;  %v746_v20 = vld [vmem:[#allocation2 + $0x198] sm:$0xff] }
  0xde   : > { %5290 = vrot.lane.b32.xlu0 %v6725_v9, %s6175_s25 }
  0xdf   : > { %v6917_v4 = vpop.permute.xlu1 %5005 }
  0xe0   : > { %9312 = vst [vmem:[#allocation27_spill] sm:$0xff] %v6917_v4  ;;  %v6919_v5 = vpop.permute.xlu0 %5010  ;;  %v750_v4 = vld [vmem:[#allocation2 + $0x49] sm:$0xff] }
  0xe1   : > { %9313 = vst [vmem:[#allocation28_spill] sm:$0xff] %v6919_v5  ;;  %5295 = vrot.lane.b32.xlu1 %v6731_v11, %s6175_s25  ;;  %v6121_v5 = vld [vmem:[%s9207_s1 + $0x10] ss:$0 sps:$4 sm:$0x33]   ;;  %v5314_v11 = vpack.i.bf16 %v747_v1, %v746_v20  ;;  %v783_v1 = vld [vmem:[#allocation2 + $0x52] sm:$0xff] }
  0xe2   : > { %5300 = vrot.lane.b32.xlu0 %v6745_v26, %s6175_s25  ;;  %v5319_v26 = vpack.i.bf16 %v749_v54, %v748_v52  ;;  %4816 = vmatprep.subr.msk.bf16.mxu0 %vm2184_vm4, %v6121_v5  ;;  %v2186_v55 = vsel %vm2184_vm4, %v6121_v5, 0  ;;  %v752_v54 = vld [vmem:[#allocation2 + $0x61] sm:$0xff]  ;;  %v753_v5 = vld [vmem:[#allocation2 + $0x69] sm:$0xff]  ;;  %vm4077_vm4 = vcmask 523264  }
  0xe3   : > { %v6928_v9 = vpop.permute.xlu1 %5015  ;;  %4741 = vmatpush3.bf16.msra.mxu0 %v2186_v55 }
  0xe4   : > { %9314 = vst [vmem:[#allocation29_spill] sm:$0xff] %v6928_v9  ;;  %v6930_v57 = vpop.permute.xlu0 %5020  ;;  %v751_v9 = vld [vmem:[#allocation2 + $0x51] sm:$0xff] }
  0xe5   : > { %9315 = vst [vmem:[#allocation30_spill] sm:$0xff] %v6930_v57  ;;  %5305 = vrot.lane.b32.xlu1 %v6751_v62, %s6175_s25  ;;  %v780_v57 = vld [vmem:[#allocation2 + $0x32] sm:$0xff]  ;;  %v5324_v62 = vpack.i.bf16 %v751_v9, %v750_v4  ;;  %v755_v9 = vld [vmem:[#allocation2 + $0x81] sm:$0xff] }
  0xe6   : > { %5310 = vrot.lane.b32.xlu0 %v6755_v50, %s6175_s25  ;;  %v5329_v20 = vpack.i.bf16 %v781_v44, %v780_v57  ;;  %v782_v50 = vld [vmem:[#allocation2 + $0x4a] sm:$0xff]  ;;  %v754_v4 = vld [vmem:[#allocation2 + $0x79] sm:$0xff]  ;;  %v784_v44 = vld [vmem:[#allocation2 + $0x62] sm:$0xff] }
  0xe7   : > { %v6939_v17 = vpop.permute.xlu1 %5025  ;;  %v5334_v55 = vpack.i.bf16 %v783_v1, %v782_v50  ;;  %v785_v57 = vld [vmem:[#allocation2 + $0x6a] sm:$0xff]  ;;  %v787_v50 = vld [vmem:[#allocation2 + $0x82] sm:$0xff] }
  0xe8   : > { %9316 = vst [vmem:[#allocation31_spill] sm:$0xff] %v6939_v17  ;;  %v6941_v43 = vpop.permute.xlu0 %5030  ;;  %v758_v17 = vld [vmem:[#allocation2 + $0xa9] sm:$0xff] }
  0xe9   : > { %9317 = vst [vmem:[#allocation32_spill] sm:$0xff] %v6941_v43  ;;  %5315 = vrot.lane.b32.xlu1 %v5314_v11, %s6175_s25  ;;  %v5339_v11 = vpack.i.bf16 %v753_v5, %v752_v54  ;;  %v757_v54 = vld [vmem:[#allocation2 + $0x99] sm:$0xff] }
  0xea   : > { %5320 = vrot.lane.b32.xlu0 %v5319_v26, %s6176_s13 }
  0xeb   : > { %v6945_v52 = vpop.permute.xlu1 %5035 }
  0xec   : > { %9318 = vst [vmem:[#allocation33_spill] sm:$0xff] %v6945_v52  ;;  %v6947_v35 = vpop.permute.xlu0 %5040  ;;  %v5344_v52 = vpack.i.bf16 %v755_v9, %v754_v4  ;;  %v789_v9 = vld [vmem:[#allocation2 + $0x9a] sm:$0xff] }
  0xed   : > { %9319 = vst [vmem:[#allocation34_spill] sm:$0xff] %v6947_v35  ;;  %5325 = vrot.lane.b32.xlu1 %v5324_v62, %s6176_s13  ;;  %v5349_v35 = vpack.i.bf16 %v785_v57, %v784_v44  ;;  %v786_v62 = vld [vmem:[#allocation2 + $0x7a] sm:$0xff] }
  0xee   : > { %5330 = vrot.lane.b32.xlu0 %v5329_v20, %s6177_s15  ;;  %v756_v20 = vld [vmem:[#allocation2 + $0x91] sm:$0xff] }
  0xef   : > { %v6951_v43 = vpop.permute.xlu1 %5045 }
  0xf0   : > { %9320 = vst [vmem:[#allocation35_spill] sm:$0xff] %v6951_v43  ;;  %v6953_v26 = vpop.permute.xlu0 %5050  ;;  %v5354_v43 = vpack.i.bf16 %v787_v50, %v786_v62  ;;  %v761_v50 = vld [vmem:[#allocation2 + $0xc9] sm:$0xff] }
  0xf1   : > { %9321 = vst [vmem:[#allocation36_spill] sm:$0xff] %v6953_v26  ;;  %5335 = vrot.lane.b32.xlu1 %v5334_v55, %s6177_s15  ;;  %v5359_v26 = vpack.i.bf16 %v757_v54, %v756_v20  ;;  %v759_v55 = vld [vmem:[#allocation2 + $0xb1] sm:$0xff] }
  0xf2   : > { %5340 = vrot.lane.b32.xlu0 %v5339_v11, %s6176_s13  ;;  %v788_v11 = vld [vmem:[#allocation2 + $0x92] sm:$0xff]  ;;  %v5364_v57 = vpack.i.bf16 %v759_v55, %v758_v17  ;;  %v793_v55 = vld [vmem:[#allocation2 + $0xca] sm:$0xff] }
  0xf3   : > { %v6957_v1 = vpop.permute.xlu1 %5055 }
  0xf4   : > { %9322 = vst [vmem:[#allocation37_spill] sm:$0xff] %v6957_v1  ;;  %v6959_v5 = vpop.permute.xlu0 %5060  ;;  %v790_v1 = vld [vmem:[#allocation2 + $0xaa] sm:$0xff] }
  0xf5   : > { %9323 = vst [vmem:[#allocation38_spill] sm:$0xff] %v6959_v5  ;;  %5345 = vrot.lane.b32.xlu1 %v5344_v52, %s6176_s13  ;;  %v5369_v5 = vpack.i.bf16 %v789_v9, %v788_v11  ;;  %v791_v52 = vld [vmem:[#allocation2 + $0xb2] sm:$0xff] }
  0xf6   : > { %5350 = vrot.lane.b32.xlu0 %v5349_v35, %s6177_s15  ;;  %v760_v35 = vld [vmem:[#allocation2 + $0xc1] sm:$0xff]  ;;  %v5374_v54 = vpack.i.bf16 %v791_v52, %v790_v1  ;;  %v765_v52 = vld [vmem:[#allocation2 + $0xf9] sm:$0xff] }
  0xf7   : > { %v6963_v4 = vpop.permute.xlu1 %5065 }
  0xf8   : > { %9324 = vst [vmem:[#allocation39_spill] sm:$0xff] %v6963_v4  ;;  %v6965_v44 = vpop.permute.xlu0 %5070  ;;  %v762_v4 = vld [vmem:[#allocation2 + $0xd9] sm:$0xff] }
  0xf9   : > { %9325 = vst [vmem:[#allocation40_spill] sm:$0xff] %v6965_v44  ;;  %5355 = vrot.lane.b32.xlu1 %v5354_v43, %s6177_s15  ;;  %v5379_v44 = vpack.i.bf16 %v761_v50, %v760_v35  ;;  %v763_v43 = vld [vmem:[#allocation2 + $0xe1] sm:$0xff] }
  0xfa   : > { %5360 = vrot.lane.b32.xlu0 %v5359_v26, %s6176_s13  ;;  %v792_v26 = vld [vmem:[#allocation2 + $0xc2] sm:$0xff]  ;;  %v5384_v9 = vpack.i.bf16 %v763_v43, %v762_v4  ;;  %v797_v43 = vld [vmem:[#allocation2 + $0xfa] sm:$0xff] }
  0xfb   : > { %v6969_v62 = vpop.permute.xlu1 %5075 }
  0xfc   : > { %9326 = vst [vmem:[#allocation41_spill] sm:$0xff] %v6969_v62  ;;  %v6971_v20 = vpop.permute.xlu0 %5080  ;;  %v794_v62 = vld [vmem:[#allocation2 + $0xda] sm:$0xff] }
  0xfd   : > { %9327 = vst [vmem:[#allocation42_spill] sm:$0xff] %v6971_v20  ;;  %5365 = vrot.lane.b32.xlu1 %v5364_v57, %s6176_s13  ;;  %v5389_v20 = vpack.i.bf16 %v793_v55, %v792_v26  ;;  %v795_v57 = vld [vmem:[#allocation2 + $0xe2] sm:$0xff] }
  0xfe   : > { %5370 = vrot.lane.b32.xlu0 %v5369_v5, %s6177_s15  ;;  %v764_v5 = vld [vmem:[#allocation2 + $0xf1] sm:$0xff]  ;;  %v5394_v50 = vpack.i.bf16 %v795_v57, %v794_v62  ;;  %v769_v57 = vld [vmem:[#allocation2 + $0x129] sm:$0xff] }
  0xff   : > { %v6975_v17 = vpop.permute.xlu1 %5085 }
 0x100   : > { %9328 = vst [vmem:[#allocation43_spill] sm:$0xff] %v6975_v17  ;;  %v6977_v11 = vpop.permute.xlu0 %5090  ;;  %v766_v17 = vld [vmem:[#allocation2 + $0x109] sm:$0xff] }
 0x101   : > { %9329 = vst [vmem:[#allocation44_spill] sm:$0xff] %v6977_v11  ;;  %5375 = vrot.lane.b32.xlu1 %v5374_v54, %s6177_s15  ;;  %v5399_v11 = vpack.i.bf16 %v765_v52, %v764_v5  ;;  %v767_v54 = vld [vmem:[#allocation2 + $0x111] sm:$0xff] }
 0x102   : > { %5380 = vrot.lane.b32.xlu0 %v5379_v44, %s6176_s13  ;;  %v796_v44 = vld [vmem:[#allocation2 + $0xf2] sm:$0xff]  ;;  %v5404_v55 = vpack.i.bf16 %v767_v54, %v766_v17  ;;  %v801_v54 = vld [vmem:[#allocation2 + $0x12a] sm:$0xff] }
 0x103   : > { %v6981_v1 = vpop.permute.xlu1 %5095 }
 0x104   : > { %9330 = vst [vmem:[#allocation45_spill] sm:$0xff] %v6981_v1  ;;  %v6983_v35 = vpop.permute.xlu0 %5100  ;;  %v798_v1 = vld [vmem:[#allocation2 + $0x10a] sm:$0xff] }
 0x105   : > { %9331 = vst [vmem:[#allocation46_spill] sm:$0xff] %v6983_v35  ;;  %5385 = vrot.lane.b32.xlu1 %v5384_v9, %s6176_s13  ;;  %v5409_v35 = vpack.i.bf16 %v797_v43, %v796_v44  ;;  %v799_v9 = vld [vmem:[#allocation2 + $0x112] sm:$0xff] }
 0x106   : > { %5390 = vrot.lane.b32.xlu0 %v5389_v20, %s6177_s15  ;;  %v768_v20 = vld [vmem:[#allocation2 + $0x121] sm:$0xff]  ;;  %v5414_v52 = vpack.i.bf16 %v799_v9, %v798_v1  ;;  %v773_v9 = vld [vmem:[#allocation2 + $0x159] sm:$0xff] }
 0x107   : > { %v6987_v4 = vpop.permute.xlu1 %5105 }
 0x108   : > { %9332 = vst [vmem:[#allocation47_spill] sm:$0xff] %v6987_v4  ;;  %v6989_v26 = vpop.permute.xlu0 %5110  ;;  %v770_v4 = vld [vmem:[#allocation2 + $0x139] sm:$0xff] }
 0x109   : > { %9333 = vst [vmem:[#allocation48_spill] sm:$0xff] %v6989_v26  ;;  %5395 = vrot.lane.b32.xlu1 %v5394_v50, %s6177_s15  ;;  %v5419_v26 = vpack.i.bf16 %v769_v57, %v768_v20  ;;  %v771_v50 = vld [vmem:[#allocation2 + $0x141] sm:$0xff] }
 0x10a   : > { %5400 = vrot.lane.b32.xlu0 %v5399_v11, %s6176_s13  ;;  %v800_v11 = vld [vmem:[#allocation2 + $0x122] sm:$0xff]  ;;  %v5424_v43 = vpack.i.bf16 %v771_v50, %v770_v4  ;;  %v804_v50 = vld [vmem:[#allocation2 + $0x152] sm:$0xff] }
 0x10b   : > { %v6993_v62 = vpop.permute.xlu1 %5115 }
 0x10c   : > { %9334 = vst [vmem:[#allocation49_spill] sm:$0xff] %v6993_v62  ;;  %v6995_v5 = vpop.permute.xlu0 %5120  ;;  %v802_v62 = vld [vmem:[#allocation2 + $0x13a] sm:$0xff] }
 0x10d   : > { %9335 = vst [vmem:[#allocation50_spill] sm:$0xff] %v6995_v5  ;;  %5405 = vrot.lane.b32.xlu1 %v5404_v55, %s6176_s13  ;;  %v5429_v5 = vpack.i.bf16 %v801_v54, %v800_v11  ;;  %v803_v55 = vld [vmem:[#allocation2 + $0x142] sm:$0xff]  ;;  %v805_v11 = vld [vmem:[#allocation2 + $0x15a] sm:$0xff]  ;;  %v4842_v54 = vunpack.i.l.bf16 %v6779_v0 }
 0x10e   : > { %5410 = vrot.lane.b32.xlu0 %v5409_v35, %s6177_s15  ;;  %v772_v35 = vld [vmem:[#allocation2 + $0x151] sm:$0xff]  ;;  %v5434_v57 = vpack.i.bf16 %v803_v55, %v802_v62  ;;  %v4853_v62 = vunpack.i.h.bf16 %v6785_v23  ;;  %v4852_v55 = vunpack.i.l.bf16 %v6785_v23  ;;  %v4863_v23 = vunpack.i.h.bf16 %v6795_v56 }
 0x10f   : > { %v6999_v17 = vpop.permute.xlu1 %5125  ;;  %v5439_v4 = vpack.i.bf16 %v773_v9, %v772_v35  ;;  %v807_v35 = vld [vmem:[#allocation2 + $0x172] sm:$0xff]  ;;  %v776_v9 = vld [vmem:[#allocation2 + $0x181] sm:$0xff] }
 0x110   : > { %9336 = vst [vmem:[#allocation51_spill] sm:$0xff] %v6999_v17  ;;  %v7001_v44 = vpop.permute.xlu0 %5130  ;;  %v774_v17 = vld [vmem:[#allocation2 + $0x169] sm:$0xff]  ;;  %v7044_v56 = vsel %vm444_vm0, %v6616_v28, %v4853_v62  ;;  %v4882_v62 = vunpack.i.l.bf16 %v6810_v12 }
 0x111   : > { %9337 = vst [vmem:[#allocation52_spill] sm:$0xff] %v7001_v44  ;;  %5415 = vrot.lane.b32.xlu1 %v5414_v52, %s6177_s15  ;;  %v4843_v44 = vunpack.i.h.bf16 %v6779_v0 }
 0x112   : > { %5420 = vrot.lane.b32.xlu0 %v5419_v26, %s6176_s13  ;;  %v524_v26 = vld [vmem:[#allocation2 + $0x8] sm:$0xff] }
 0x113   : > { %v7005_v1 = vpop.permute.xlu1 %5135  ;;  %v7023_v0 = vsel %vm444_vm0, %v524_v26, %v4843_v44  ;;  %v4868_v44 = vunpack.i.h.bf16 %v6801_v63 }
 0x114   : > { %9338 = vst [vmem:[#allocation53_spill] sm:$0xff] %v7005_v1  ;;  %v7007_v20 = vpop.permute.xlu0 %5140  ;;  %v523_v1 = vld [vmem:[#allocation2] sm:$0xff] }
 0x115   : > { %9339 = vst [vmem:[#allocation54_spill] sm:$0xff] %v7007_v20  ;;  %5425 = vrot.lane.b32.xlu1 %v5424_v43, %s6176_s13  ;;  %v5444_v20 = vpack.i.bf16 %v775_v47, %v774_v17  ;;  %v806_v43 = vld [vmem:[#allocation2 + $0x16a] sm:$0xff]  ;;  %v5449_v47 = vpack.i.bf16 %v805_v11, %v804_v50  ;;  %v4858_v17 = vunpack.i.h.bf16 %v6793_v53  ;;  %v7033_v15 = vsel %vm444_vm0, %v523_v1, %v4842_v54  ;;  %v810_v54 = vld [vmem:[#allocation2 + $0x19a] sm:$0xff] }
 0x116   : > { %5430 = vrot.lane.b32.xlu0 %v5429_v5, %s6177_s15  ;;  %v4847_v5 = vunpack.i.l.bf16 %v6787_v30  ;;  %v7052_v1 = vsel %vm444_vm0, %v6604_v22, %v4848_v24  ;;  %v7069_v24 = vsel %vm444_vm0, %v6635_v38, %v4863_v23  ;;  %v4883_v38 = vunpack.i.h.bf16 %v6810_v12 }
 0x117   : > { %v7012_v52 = vpop.permute.xlu1 %5145  ;;  %v4893_v12 = vunpack.i.h.bf16 %v6818_v18  ;;  %v4902_v23 = vunpack.i.l.bf16 %v6826_v25 }
 0x118   : > { %9340 = vst [vmem:[#allocation55_spill] sm:$0xff] %v7012_v52  ;;  %v7015_v34 = vpop.permute.xlu0 %5150  ;;  %v777_v52 = vld [vmem:[#allocation2 + $0x189] sm:$0xff]  ;;  %v7048_v11 = vsel %vm444_vm0, %v6602_v21, %v4847_v5  ;;  %v7061_v21 = vsel %vm444_vm0, %v6620_v32, %v4858_v17  ;;  %v4878_v32 = vunpack.i.h.bf16 %v6808_v7 }
 0x119   : > { %9341 = vst [vmem:[#allocation56_spill] sm:$0xff] %v7015_v34  ;;  %5435 = vrot.lane.b32.xlu1 %v5434_v57, %s6177_s15  ;;  %v4857_v34 = vunpack.i.l.bf16 %v6793_v53  ;;  %v778_v57 = vld [vmem:[#allocation2 + $0x199] sm:$0xff]  ;;  %v5459_v50 = vpack.i.bf16 %v777_v52, %v776_v9  ;;  %v7040_v53 = vsel %vm444_vm0, %v6614_v27, %v4852_v55  ;;  %v811_v52 = vld [vmem:[#allocation2 + $0x1a2] sm:$0xff]  ;;  %v4873_v27 = vunpack.i.h.bf16 %v6803_v2 }
 0x11a   : > { %5440 = vrot.lane.b32.xlu0 %v5439_v4, %s6176_s13  ;;  %v5454_v4 = vpack.i.bf16 %v807_v35, %v806_v43  ;;  %v4867_v43 = vunpack.i.l.bf16 %v6801_v63  ;;  %v4872_v55 = vunpack.i.l.bf16 %v6803_v2  ;;  %v5464_v28 = vpack.i.bf16 %v779_v31, %v778_v57 }
 0x11b   : > { %v7030_v30 = vpop.permute.xlu1 %5155  ;;  %v7065_v22 = vsel %vm444_vm0, %v6618_v29, %v4857_v34  ;;  %v7073_v63 = vsel %vm444_vm0, %v6633_v37, %v4862_v16  ;;  %v7079_v31 = vsel %vm444_vm0, %v6639_v42, %v4868_v44  ;;  %v5474_v34 = vpack.i.bf16 %v811_v52, %v810_v54  ;;  %v9344_v44 = vld [vmem:[#allocation6_spill] sm:$0xff]  ;;  %v9347_v52 = vld [vmem:[#allocation7_spill] sm:$0xff] }
 0x11c   : > { %9342 = vst [vmem:[#allocation57_spill] sm:$0xff] %v7030_v30  ;;  %v7036_v26 = vpop.permute.xlu0 %5160  ;;  %v4888_v37 = vunpack.i.h.bf16 %v6816_v13  ;;  %v4887_v16 = vunpack.i.l.bf16 %v6816_v13  ;;  %v7092_v42 = vsel %vm444_vm0, %v6637_v41, %v4867_v43  ;;  %v7100_v5 = vsel %vm444_vm0, %v6653_v48, %v4872_v55  ;;  %v9343_v48 = vld [vmem:[#allocation4_spill] sm:$0xff] }
 0x11d   : > { %5445 = vrot.lane.b32.xlu1 %v5444_v20, %s6176_s13  ;;  %v4877_v20 = vunpack.i.l.bf16 %v6808_v7  ;;  %v7096_v7 = vsel %vm444_vm0, %v6655_v49, %v4873_v27  ;;  %v4892_v13 = vunpack.i.l.bf16 %v6818_v18  ;;  %v4898_v35 = vunpack.i.h.bf16 %v6824_v19 }
 0x11e   : > { %5450 = vrot.lane.b32.xlu0 %v5449_v47, %s6177_s15  ;;  %v4897_v9 = vunpack.i.l.bf16 %v6824_v19  ;;  %v4903_v41 = vunpack.i.h.bf16 %v6826_v25  ;;  %v7112_v49 = vsel %vm444_vm0, %v6659_v51, %v4878_v32  ;;  %v4908_v18 = vunpack.i.h.bf16 %v6832_v33  ;;  %v9346_v51 = vld [vmem:[#allocation8_spill] sm:$0xff]  ;;  %v9348_v25 = vld [vmem:[#allocation10_spill] sm:$0xff] }
 0x11f   : > { %v7075_v2 = vpop.permute.xlu1 %5165  ;;  %v7116_v17 = vsel %vm444_vm0, %v9343_v48, %v4877_v20  ;;  %v7124_v19 = vsel %vm444_vm0, %v9344_v44, %v4883_v38  ;;  %v7132_v54 = vsel %vm444_vm0, %v9346_v51, %v4888_v37  ;;  %v7136_v43 = vsel %vm444_vm0, %v9347_v52, %v4887_v16  ;;  %v9349_v38 = vld [vmem:[#allocation9_spill] sm:$0xff]  ;;  %v9350_v37 = vld [vmem:[#allocation12_spill] sm:$0xff]  ;;  %v9351_v16 = vld [vmem:[#allocation11_spill] sm:$0xff] }
 0x120   : > { %v7083_v29 = vpop.permute.xlu0 %5170  ;;  %v7141_v27 = vsel %vm444_vm0, %v9348_v25, %v4893_v12  ;;  %v4907_v55 = vunpack.i.l.bf16 %v6832_v33  ;;  %v4913_v32 = vunpack.i.h.bf16 %v6834_v36  ;;  %v4912_v20 = vunpack.i.l.bf16 %v6834_v36  ;;  %v9352_v33 = vld [vmem:[#allocation14_spill] sm:$0xff]  ;;  %v9353_v44 = vld [vmem:[#allocation13_spill] sm:$0xff] }
 0x121   : > { %5455 = vrot.lane.b32.xlu1 %v5454_v4, %s6177_s15  ;;  %v9345_v4 = vld [vmem:[#allocation5_spill] sm:$0xff]  ;;  %v7158_v12 = vsel %vm444_vm0, %v9351_v16, %v4897_v9  ;;  %v7162_v48 = vsel %vm444_vm0, %v9352_v33, %v4903_v41  ;;  %v4917_v51 = vunpack.i.l.bf16 %v6840_v39  ;;  %v4923_v52 = vunpack.i.h.bf16 %v6842_v40 }
 0x122   : > { %5460 = vrot.lane.b32.xlu0 %v5459_v50, %s6176_s13  ;;  %v7128_v50 = vsel %vm444_vm0, %v9345_v4, %v4882_v62  ;;  %v7150_v62 = vsel %vm444_vm0, %v9349_v38, %v4892_v13  ;;  %v9354_v13 = vld [vmem:[#allocation16_spill] sm:$0xff]  ;;  %v4922_v41 = vunpack.i.l.bf16 %v6842_v40  ;;  %v4928_v25 = vunpack.i.h.bf16 %v6848_v45 }
 0x123   : > { %v7108_v47 = vpop.permute.xlu1 %5175  ;;  %v7172_v4 = vsel %vm444_vm0, %v9354_v13, %v4908_v18  ;;  %v4927_v38 = vunpack.i.l.bf16 %v6848_v45  ;;  %v4933_v40 = vunpack.i.h.bf16 %v6850_v46  ;;  %v4932_v16 = vunpack.i.l.bf16 %v6850_v46 }
 0x124   : > { %v7120_v57 = vpop.permute.xlu0 %5180  ;;  %v4938_v45 = vunpack.i.h.bf16 %v6856_v60  ;;  %v4942_v33 = vunpack.i.l.bf16 %v6858_v3  ;;  %v4948_v46 = vunpack.i.h.bf16 %v6866_v6  ;;  %v4947_v13 = vunpack.i.l.bf16 %v6866_v6 }
 0x125   : > { %5465 = vrot.lane.b32.xlu1 %v5464_v28, %s6176_s13  ;;  %v7154_v28 = vsel %vm444_vm0, %v9350_v37, %v4898_v35  ;;  %v4918_v35 = vunpack.i.h.bf16 %v6840_v39  ;;  %v7189_v37 = vsel %vm444_vm0, %v6735_v10, %v4913_v32  ;;  %v7193_v39 = vsel %vm444_vm0, %v6733_v14, %v4912_v20 }
 0x126   : > { %5470 = vrot.lane.b32.xlu0 %v6862_v61, %s6177_s15  ;;  %v7168_v61 = vsel %vm444_vm0, %v9353_v44, %v4902_v23  ;;  %v9355_v23 = vld [vmem:[#allocation15_spill] sm:$0xff]  ;;  %v7208_v14 = vsel %vm444_vm0, %v6737_v58, %v4917_v51  ;;  %v4943_v32 = vunpack.i.h.bf16 %v6858_v3  ;;  %v7220_v44 = vsel %vm1868_vm3, %v7033_v15, %v4922_v41  ;;  %v9361_v41 = vld [vmem:[#allocation18_spill] sm:$0xff] }
 0x127   : > { %v7164_v36 = vpop.permute.xlu1 %5185  ;;  %v7185_v18 = vsel %vm444_vm0, %v9355_v23, %v4907_v55  ;;  %v7204_v10 = vsel %vm444_vm0, %v6739_v59, %v4918_v35  ;;  %v7224_v59 = vsel %vm1868_vm3, %v7048_v11, %v4927_v38  ;;  %v7228_v58 = vsel %vm1868_vm3, %v7052_v1, %v4928_v25  ;;  %v9362_v38 = vld [vmem:[#allocation19_spill] sm:$0xff] }
 0x128   : > { %v7176_v9 = vpop.permute.xlu0 %5190  ;;  %v7232_v3 = vsel %vm1868_vm3, %v7044_v56, %v4933_v40  ;;  %v4952_v35 = vunpack.i.l.bf16 %v6868_v8  ;;  %v7239_v15 = vsel %vm1868_vm3, %v7040_v53, %v4932_v16  ;;  %v7243_v11 = vsel %vm1868_vm3, %v7061_v21, %v4938_v45  ;;  %v9359_v21 = vld [vmem:[#allocation17_spill] sm:$0xff]  ;;  %v9363_v45 = vld [vmem:[#allocation20_spill] sm:$0xff] }
 0x129   : > { %5475 = vrot.lane.b32.xlu1 %v5474_v34, %s6177_s15  ;;  %v4937_v34 = vunpack.i.l.bf16 %v6856_v60  ;;  %v7216_v60 = vsel %vm1868_vm3, %v7023_v0, %v4923_v52  ;;  %v4953_v0 = vunpack.i.h.bf16 %v6868_v8  ;;  %v7251_v56 = vsel %vm1868_vm3, %v7073_v63, %v4942_v33 }
 0x12a   : > { %v7257_v8 = vsel %vm1868_vm3, %v7069_v24, %v4943_v32  ;;  %v7261_v53 = vsel %vm1868_vm3, %v7079_v31, %v4948_v46  ;;  %v4958_v51 = vunpack.i.h.bf16 %v9359_v21  ;;  %v4957_v52 = vunpack.i.l.bf16 %v9359_v21  ;;  %v9364_v32 = vld [vmem:[#allocation21_spill] sm:$0xff] }
 0x12b   : > { %v7200_v55 = vpop.permute.xlu1 %5195  ;;  %v7247_v1 = vsel %vm1868_vm3, %v7065_v22, %v4937_v34  ;;  %v4963_v25 = vunpack.i.h.bf16 %v9361_v41  ;;  %v4962_v63 = vunpack.i.l.bf16 %v9361_v41  ;;  %v4968_v23 = vunpack.i.h.bf16 %v9362_v38  ;;  %v9365_v41 = vld [vmem:[#allocation22_spill] sm:$0xff] }
 0x12c   : > { %9356 = vst [vmem:[#allocation4_spill] sm:$0xff] %v7200_v55  ;;  %v7212_v20 = vpop.permute.xlu0 %5200  ;;  %v4967_v40 = vunpack.i.l.bf16 %v9362_v38  ;;  %v7273_v24 = vsel %vm1868_vm3, %v7092_v42, %v4947_v13  ;;  %v7277_v31 = vsel %vm1868_vm3, %v7100_v5, %v4952_v35  ;;  %v7281_v16 = vsel %vm1868_vm3, %v7096_v7, %v4953_v0  ;;  %v9367_v35 = vld [vmem:[#allocation23_spill] sm:$0xff] }
 0x12d   : > { %9357 = vst [vmem:[#allocation6_spill] sm:$0xff] %v7212_v20  ;;  %v4972_v34 = vunpack.i.l.bf16 %v9363_v45  ;;  %v4973_v33 = vunpack.i.h.bf16 %v9363_v45  ;;  %v4978_v46 = vunpack.i.h.bf16 %v9364_v32  ;;  %v4977_v21 = vunpack.i.l.bf16 %v9364_v32 }
 0x12e   : > { %v4982_v42 = vunpack.i.l.bf16 %v9365_v41  ;;  %v7292_v5 = vsel %vm1868_vm3, %v7112_v49, %v4958_v51  ;;  %v7296_v7 = vsel %vm1868_vm3, %v7116_v17, %v4957_v52  ;;  %v4983_v0 = vunpack.i.h.bf16 %v9365_v41 }
 0x12f   : > { %v7253_v6 = vpop.permute.xlu1 %5205  ;;  %v4988_v38 = vunpack.i.h.bf16 %v9367_v35  ;;  %v7304_v32 = vsel %vm1868_vm3, %v7128_v50, %v4962_v63  ;;  %v7312_v49 = vsel %vm1868_vm3, %v7132_v54, %v4968_v23  ;;  %v7316_v17 = vsel %vm1868_vm3, %v7136_v43, %v4967_v40  ;;  %v9369_v50 = vld [vmem:[#allocation24_spill] sm:$0xff] }
 0x130   : > { %9358 = vst [vmem:[#allocation5_spill] sm:$0xff] %v7253_v6  ;;  %v7265_v22 = vpop.permute.xlu0 %5210  ;;  %v7320_v51 = vsel %vm1868_vm3, %v7150_v62, %v4972_v34  ;;  %v4987_v52 = vunpack.i.l.bf16 %v9367_v35  ;;  %v4993_v63 = vunpack.i.h.bf16 %v9369_v50  ;;  %v4992_v41 = vunpack.i.l.bf16 %v9369_v50  ;;  %v9386_v6 = vld [vmem:[#allocation38_spill] sm:$0xff] }
 0x131   : > { %9360 = vst [vmem:[#allocation8_spill] sm:$0xff] %v7265_v22  ;;  %v7331_v54 = vsel %vm1868_vm3, %v7154_v28, %v4978_v46  ;;  %v7335_v43 = vsel %vm1868_vm3, %v7158_v12, %v4977_v21  ;;  %v7339_v62 = vsel %vm1868_vm3, %v7168_v61, %v4982_v42  ;;  %v7345_v23 = vsel %vm1868_vm3, %v7162_v48, %v4983_v0  ;;  %v9371_v28 = vld [vmem:[#allocation25_spill] sm:$0xff]  ;;  %v9374_v21 = vld [vmem:[#allocation27_spill] sm:$0xff] }
 0x132   : > { %v4998_v40 = vunpack.i.h.bf16 %v9371_v28  ;;  %v4997_v34 = vunpack.i.l.bf16 %v9371_v28  ;;  %v5008_v42 = vunpack.i.h.bf16 %v9374_v21  ;;  %v5007_v35 = vunpack.i.l.bf16 %v9374_v21 }
 0x133   : > { %v7288_v13 = vpop.permute.xlu1 %5215  ;;  %v7361_v48 = vsel %vm1868_vm3, %v7185_v18, %v4987_v52  ;;  %v7369_v0 = vsel %vm1868_vm3, %v7189_v37, %v4993_v63  ;;  %v9379_v63 = vld [vmem:[#allocation31_spill] sm:$0xff] }
 0x134   : > { %9366 = vst [vmem:[#allocation7_spill] sm:$0xff] %v7288_v13  ;;  %v7300_v45 = vpop.permute.xlu0 %5220  ;;  %v7308_v13 = vsel %vm1868_vm3, %v7124_v19, %v4963_v25  ;;  %v7327_v19 = vsel %vm1868_vm3, %v7141_v27, %v4973_v33  ;;  %v7349_v27 = vsel %vm1868_vm3, %v7172_v4, %v4988_v38  ;;  %v9373_v33 = vld [vmem:[#allocation26_spill] sm:$0xff]  ;;  %v7365_v4 = vsel %vm1868_vm3, %v7193_v39, %v4992_v41  ;;  %v9375_v38 = vld [vmem:[#allocation28_spill] sm:$0xff] }
 0x135   : > { %9368 = vst [vmem:[#allocation10_spill] sm:$0xff] %v7300_v45  ;;  %v5003_v46 = vunpack.i.h.bf16 %v9373_v33  ;;  %v5002_v61 = vunpack.i.l.bf16 %v9373_v33  ;;  %v5012_v50 = vunpack.i.l.bf16 %v9375_v38  ;;  %v5013_v28 = vunpack.i.h.bf16 %v9375_v38  ;;  %v9376_v33 = vld [vmem:[#allocation29_spill] sm:$0xff] }
 0x136   : > { %v5017_v21 = vunpack.i.l.bf16 %v9376_v33  ;;  %v7380_v39 = vsel %vm1868_vm3, %v7204_v10, %v4998_v40  ;;  %v7384_v37 = vsel %vm1868_vm3, %v7208_v14, %v4997_v34  ;;  %v5027_v41 = vunpack.i.l.bf16 %v9379_v63 }
 0x137   : > { %v7341_v25 = vpop.permute.xlu1 %5225  ;;  %v7400_v10 = vsel %vm1901_vm5, %v7224_v59, %v5007_v35  ;;  %v7404_v14 = vsel %vm1901_vm5, %v7228_v58, %v5008_v42  ;;  %v5028_v40 = vunpack.i.h.bf16 %v9379_v63 }
 0x138   : > { %9370 = vst [vmem:[#allocation9_spill] sm:$0xff] %v7341_v25  ;;  %v7353_v12 = vpop.permute.xlu0 %5230  ;;  %v9377_v25 = vld [vmem:[#allocation30_spill] sm:$0xff]  ;;  %v7419_v59 = vsel %vm1901_vm5, %v7247_v1, %v5017_v21  ;;  %v9381_v1 = vld [vmem:[#allocation33_spill] sm:$0xff] }
 0x139   : > { %9372 = vst [vmem:[#allocation12_spill] sm:$0xff] %v7353_v12  ;;  %v5018_v12 = vunpack.i.h.bf16 %v9376_v33  ;;  %v5022_v45 = vunpack.i.l.bf16 %v9377_v25  ;;  %v5023_v52 = vunpack.i.h.bf16 %v9377_v25  ;;  %v7392_v33 = vsel %vm1901_vm5, %v7220_v44, %v5002_v61  ;;  %v9380_v44 = vld [vmem:[#allocation32_spill] sm:$0xff] }
 0x13a   : > { %v7408_v25 = vsel %vm1901_vm5, %v7239_v15, %v5012_v50  ;;  %v5033_v34 = vunpack.i.h.bf16 %v9380_v44  ;;  %v5032_v61 = vunpack.i.l.bf16 %v9380_v44  ;;  %v5038_v35 = vunpack.i.h.bf16 %v9381_v1 }
 0x13b   : > { %v7376_v18 = vpop.permute.xlu1 %5235  ;;  %v7423_v58 = vsel %vm1901_vm5, %v7243_v11, %v5018_v12  ;;  %v7427_v15 = vsel %vm1901_vm5, %v7251_v56, %v5022_v45  ;;  %v7433_v42 = vsel %vm1901_vm5, %v7257_v8, %v5023_v52  ;;  %v5037_v50 = vunpack.i.l.bf16 %v9381_v1  ;;  %v9382_v12 = vld [vmem:[#allocation34_spill] sm:$0xff]  ;;  %v9383_v45 = vld [vmem:[#allocation35_spill] sm:$0xff] }
 0x13c   : > { %9378 = vst [vmem:[#allocation11_spill] sm:$0xff] %v7376_v18  ;;  %v7388_v38 = vpop.permute.xlu0 %5240  ;;  %v7396_v18 = vsel %vm1901_vm5, %v7216_v60, %v5003_v46  ;;  %v7415_v60 = vsel %vm1901_vm5, %v7232_v3, %v5013_v28  ;;  %v7437_v3 = vsel %vm1901_vm5, %v7273_v24, %v5027_v41  ;;  %v5043_v28 = vunpack.i.h.bf16 %v9382_v12  ;;  %v9384_v41 = vld [vmem:[#allocation36_spill] sm:$0xff] }
 0x13d   : > { %v5042_v56 = vunpack.i.l.bf16 %v9382_v12  ;;  %v5048_v21 = vunpack.i.h.bf16 %v9383_v45  ;;  %v5047_v63 = vunpack.i.l.bf16 %v9383_v45  ;;  %v7449_v8 = vsel %vm1901_vm5, %v7261_v53, %v5028_v40  ;;  %v9385_v12 = vld [vmem:[#allocation37_spill] sm:$0xff] }
 0x13e   : > { %v7453_v24 = vsel %vm1901_vm5, %v7277_v31, %v5032_v61  ;;  %v7457_v52 = vsel %vm1901_vm5, %v7281_v16, %v5033_v34  ;;  %v5052_v44 = vunpack.i.l.bf16 %v9384_v41  ;;  %v5053_v1 = vunpack.i.h.bf16 %v9384_v41  ;;  %v9387_v61 = vld [vmem:[#allocation39_spill] sm:$0xff] }
 0x13f   : > { %v7429_v46 = vpop.permute.xlu1 %5245  ;;  %v5058_v22 = vunpack.i.h.bf16 %v9385_v12  ;;  %v5057_v45 = vunpack.i.l.bf16 %v9385_v12  ;;  %v5062_v53 = vunpack.i.l.bf16 %v9386_v6  ;;  %v7468_v31 = vsel %vm1901_vm5, %v7296_v7, %v5037_v50 }
 0x140   : > { %v7441_v11 = vpop.permute.xlu0 %5250  ;;  %v7472_v16 = vsel %vm1901_vm5, %v7292_v5, %v5038_v35  ;;  %v5063_v34 = vunpack.i.h.bf16 %v9386_v6  ;;  %v5067_v41 = vunpack.i.l.bf16 %v9387_v61  ;;  %v7480_v12 = vsel %vm1901_vm5, %v7304_v32, %v5042_v56  ;;  %v9389_v32 = vld [vmem:[#allocation40_spill] sm:$0xff] }
 0x141   : > { %v7484_v55 = vsel %vm1901_vm5, %v7308_v13, %v5043_v28  ;;  %v7488_v7 = vsel %vm1901_vm5, %v7316_v17, %v5047_v63  ;;  %v7492_v5 = vsel %vm1901_vm5, %v7312_v49, %v5048_v21  ;;  %v7496_v6 = vsel %vm1901_vm5, %v7320_v51, %v5052_v44 }
 0x142   : > { %v5068_v35 = vunpack.i.h.bf16 %v9387_v61  ;;  %v5073_v50 = vunpack.i.h.bf16 %v9389_v32  ;;  %v5072_v56 = vunpack.i.l.bf16 %v9389_v32  ;;  %v7503_v13 = vsel %vm1901_vm5, %v7327_v19, %v5053_v1 }
 0x143   : > { %v7464_v40 = vpop.permute.xlu1 %5255  ;;  %v7507_v17 = vsel %vm1901_vm5, %v7335_v43, %v5057_v45  ;;  %v7511_v49 = vsel %vm1901_vm5, %v7331_v54, %v5058_v22  ;;  %v7515_v51 = vsel %vm1901_vm5, %v7339_v62, %v5062_v53  ;;  %v7521_v21 = vsel %vm1901_vm5, %v7345_v23, %v5063_v34  ;;  %v9391_v43 = vld [vmem:[#allocation41_spill] sm:$0xff]  ;;  %v9393_v54 = vld [vmem:[#allocation42_spill] sm:$0xff]  ;;  %v9394_v45 = vld [vmem:[#allocation43_spill] sm:$0xff] }
 0x144   : > { %v7476_v20 = vpop.permute.xlu0 %5260  ;;  %v7525_v19 = vsel %vm1901_vm5, %v7361_v48, %v5067_v41  ;;  %v5078_v63 = vunpack.i.h.bf16 %v9391_v43  ;;  %v5077_v44 = vunpack.i.l.bf16 %v9391_v43  ;;  %v5083_v1 = vunpack.i.h.bf16 %v9393_v54  ;;  %v9395_v41 = vld [vmem:[#allocation44_spill] sm:$0xff] }
 0x145   : > { %9388 = vst [vmem:[#allocation14_spill] sm:$0xff] %v7476_v20  ;;  %v5082_v62 = vunpack.i.l.bf16 %v9393_v54  ;;  %v5088_v53 = vunpack.i.h.bf16 %v9394_v45  ;;  %v5087_v61 = vunpack.i.l.bf16 %v9394_v45  ;;  %v7537_v23 = vsel %vm1901_vm5, %v7349_v27, %v5068_v35  ;;  %v9396_v54 = vld [vmem:[#allocation45_spill] sm:$0xff] }
 0x146   : > { %v7541_v48 = vsel %vm1901_vm5, %v7365_v4, %v5072_v56  ;;  %v7545_v34 = vsel %vm1901_vm5, %v7369_v0, %v5073_v50  ;;  %v5092_v32 = vunpack.i.l.bf16 %v9395_v41  ;;  %v5093_v43 = vunpack.i.h.bf16 %v9395_v41  ;;  %v9401_v50 = vld [vmem:[#allocation47_spill] sm:$0xff] }
 0x147   : > { %v7517_v28 = vpop.permute.xlu1 %5265  ;;  %v5097_v45 = vunpack.i.l.bf16 %v9396_v54  ;;  %v7556_v4 = vsel %vm1901_vm5, %v7384_v37, %v5077_v44  ;;  %v7560_v0 = vsel %vm1901_vm5, %v7380_v39, %v5078_v63  ;;  %v5107_v56 = vunpack.i.l.bf16 %v9401_v50 }
 0x148   : > { %9390 = vst [vmem:[#allocation13_spill] sm:$0xff] %v7517_v28  ;;  %v7529_v22 = vpop.permute.xlu0 %5270  ;;  %v9397_v28 = vld [vmem:[#allocation46_spill] sm:$0xff]  ;;  %9399 = vst [vmem:[#allocation17_spill] sm:$0xff] %v7556_v4  ;;  %v7576_v37 = vsel %vm1934_vm6, %v7400_v10, %v5087_v61  ;;  %v7580_v39 = vsel %vm1934_vm6, %v7404_v14, %v5088_v53  ;;  %v5108_v63 = vunpack.i.h.bf16 %v9401_v50  ;;  %vm4162_vm5 = vcmask 588800  }
 0x149   : > { %9392 = vst [vmem:[#allocation16_spill] sm:$0xff] %v7529_v22  ;;  %v5098_v22 = vunpack.i.h.bf16 %v9396_v54  ;;  %v5102_v20 = vunpack.i.l.bf16 %v9397_v28  ;;  %9400 = vst [vmem:[#allocation18_spill] sm:$0xff] %v7560_v0  ;;  %v5103_v35 = vunpack.i.h.bf16 %v9397_v28  ;;  %v7568_v54 = vsel %vm1934_vm6, %v7392_v33, %v5082_v62  ;;  %v9402_v33 = vld [vmem:[#allocation48_spill] sm:$0xff]  ;;  %v9409_v4 = vld [vmem:[#allocation54_spill] sm:$0xff] }
 0x14a   : > { %v7584_v28 = vsel %vm1934_vm6, %v7408_v25, %v5092_v32  ;;  %v5113_v44 = vunpack.i.h.bf16 %v9402_v33  ;;  %v5112_v62 = vunpack.i.l.bf16 %v9402_v33  ;;  %v7595_v10 = vsel %vm1934_vm6, %v7419_v59, %v5097_v45  ;;  %v9403_v59 = vld [vmem:[#allocation49_spill] sm:$0xff] }
 0x14b   : > { %v7552_v27 = vpop.permute.xlu1 %5275  ;;  %v7599_v14 = vsel %vm1934_vm6, %v7423_v58, %v5098_v22  ;;  %v7603_v25 = vsel %vm1934_vm6, %v7427_v15, %v5102_v20  ;;  %v7609_v53 = vsel %vm1934_vm6, %v7433_v42, %v5103_v35  ;;  %v5118_v61 = vunpack.i.h.bf16 %v9403_v59  ;;  %v9405_v22 = vld [vmem:[#allocation50_spill] sm:$0xff]  ;;  %v9406_v15 = vld [vmem:[#allocation51_spill] sm:$0xff] }
 0x14c   : > { %9398 = vst [vmem:[#allocation15_spill] sm:$0xff] %v7552_v27  ;;  %v7564_v41 = vpop.permute.xlu0 %5280  ;;  %v7572_v27 = vsel %vm1934_vm6, %v7396_v18, %v5083_v1  ;;  %v7591_v18 = vsel %vm1934_vm6, %v7415_v60, %v5093_v43  ;;  %v7613_v60 = vsel %vm1934_vm6, %v7437_v3, %v5107_v56  ;;  %v5117_v32 = vunpack.i.l.bf16 %v9403_v59  ;;  %v9407_v56 = vld [vmem:[#allocation52_spill] sm:$0xff] }
 0x14d   : > { %v5123_v43 = vunpack.i.h.bf16 %v9405_v22  ;;  %v5122_v20 = vunpack.i.l.bf16 %v9405_v22  ;;  %v5128_v45 = vunpack.i.h.bf16 %v9406_v15  ;;  %v5127_v50 = vunpack.i.l.bf16 %v9406_v15  ;;  %v9408_v22 = vld [vmem:[#allocation53_spill] sm:$0xff] }
 0x14e   : > { %v7625_v42 = vsel %vm1934_vm6, %v7449_v8, %v5108_v63  ;;  %v7629_v3 = vsel %vm1934_vm6, %v7453_v24, %v5112_v62  ;;  %v7633_v35 = vsel %vm1934_vm6, %v7457_v52, %v5113_v44  ;;  %v5132_v33 = vunpack.i.l.bf16 %v9407_v56  ;;  %v9411_v44 = vld [vmem:[#allocation55_spill] sm:$0xff] }
 0x14f   : > { %v7605_v1 = vpop.permute.xlu1 %5285  ;;  %v5133_v59 = vunpack.i.h.bf16 %v9407_v56  ;;  %v5138_v0 = vunpack.i.h.bf16 %v9408_v22  ;;  %v5137_v15 = vunpack.i.l.bf16 %v9408_v22  ;;  %v7644_v24 = vsel %vm1934_vm6, %v7468_v31, %v5117_v32 }
 0x150   : > { %v7617_v58 = vpop.permute.xlu0 %5290  ;;  %v7648_v52 = vsel %vm1934_vm6, %v7472_v16, %v5118_v61  ;;  %v5143_v63 = vunpack.i.h.bf16 %v9409_v4  ;;  %v5147_v62 = vunpack.i.l.bf16 %v9411_v44  ;;  %v7656_v22 = vsel %vm1934_vm6, %v7480_v12, %v5122_v20  ;;  %v9412_v61 = vld [vmem:[#allocation56_spill] sm:$0xff] }
 0x151   : > { %9404 = vst [vmem:[#allocation19_spill] sm:$0xff] %v7617_v58  ;;  %v5142_v58 = vunpack.i.l.bf16 %v9409_v4  ;;  %v7664_v31 = vsel %vm1934_vm6, %v7488_v7, %v5127_v50  ;;  %v7668_v16 = vsel %vm1934_vm6, %v7492_v5, %v5128_v45  ;;  %v7672_v4 = vsel %vm1934_vm6, %v7496_v6, %v5132_v33 }
 0x152   : > { %v5148_v12 = vunpack.i.h.bf16 %v9411_v44  ;;  %v5153_v32 = vunpack.i.h.bf16 %v9412_v61  ;;  %v7683_v7 = vsel %vm1934_vm6, %v7507_v17, %v5137_v15  ;;  %v7687_v5 = vsel %vm1934_vm6, %v7511_v49, %v5138_v0 }
 0x153   : > { %v7640_v8 = vpop.permute.xlu1 %5295  ;;  %v7691_v6 = vsel %vm1934_vm6, %v7515_v51, %v5142_v58  ;;  %v7697_v45 = vsel %vm1934_vm6, %v7521_v21, %v5143_v63  ;;  %v5163_v17 = vunpack.i.h.bf16 %v7036_v26  ;;  %v5162_v49 = vunpack.i.l.bf16 %v7036_v26 }
 0x154   : > { %9410 = vst [vmem:[#allocation20_spill] sm:$0xff] %v7640_v8  ;;  %v7652_v56 = vpop.permute.xlu0 %5300  ;;  %v7660_v8 = vsel %vm1934_vm6, %v7484_v55, %v5123_v43  ;;  %v5152_v55 = vunpack.i.l.bf16 %v9412_v61  ;;  %v7679_v43 = vsel %vm1934_vm6, %v7503_v13, %v5133_v59  ;;  %v7701_v13 = vsel %vm1934_vm6, %v7525_v19, %v5147_v62 }
 0x155   : > { %v5168_v51 = vunpack.i.h.bf16 %v7075_v2  ;;  %v5167_v58 = vunpack.i.l.bf16 %v7075_v2  ;;  %v5173_v50 = vunpack.i.h.bf16 %v7083_v29  ;;  %v5172_v21 = vunpack.i.l.bf16 %v7083_v29 }
 0x156   : > { %v7713_v33 = vsel %vm1934_vm6, %v7537_v23, %v5148_v12  ;;  %v7717_v19 = vsel %vm1934_vm6, %v7541_v48, %v5152_v55  ;;  %v7721_v26 = vsel %vm1934_vm6, %v7545_v34, %v5153_v32  ;;  %v5177_v59 = vunpack.i.l.bf16 %v7108_v47 }
 0x157   : > { %v7693_v20 = vpop.permute.xlu1 %5305  ;;  %v5178_v29 = vunpack.i.h.bf16 %v7108_v47  ;;  %v5182_v63 = vunpack.i.l.bf16 %v7120_v57  ;;  %v1968_v48 = vsel %vm1967_vm7, %v7568_v54, %v5162_v49  ;;  %v1969_v34 = vsel %vm1967_vm7, %v7572_v27, %v5163_v17 }
 0x158   : > { %v7705_v0 = vpop.permute.xlu0 %5310  ;;  %v5243_v44 = vunpack.i.h.bf16 %v7388_v38  ;;  %v5242_v62 = vunpack.i.l.bf16 %v7388_v38  ;;  %v1970_v61 = vsel %vm1967_vm7, %v7576_v37, %v5167_v58  ;;  %v1971_v47 = vsel %vm1967_vm7, %v7580_v39, %v5168_v51 }
 0x159   : > { %v1972_v32 = vsel %vm1967_vm7, %v7584_v28, %v5172_v21  ;;  %v1973_v54 = vsel %vm1967_vm7, %v7591_v18, %v5173_v50  ;;  %v1974_v27 = vsel %vm1967_vm7, %v7595_v10, %v5177_v59  ;;  %v5183_v55 = vunpack.i.h.bf16 %v7120_v57 }
 0x15a   : > { %v1975_v49 = vsel %vm1967_vm7, %v7599_v14, %v5178_v29  ;;  %v7751_v37 = vsel %vm1967_vm7, %v7603_v25, %v5182_v63  ;;  %v5188_v39 = vunpack.i.h.bf16 %v7164_v36  ;;  %v5247_v28 = vunpack.i.l.bf16 %v7429_v46 }
 0x15b   : > { %v7728_v23 = vpop.permute.xlu1 %5315  ;;  %v5187_v18 = vunpack.i.l.bf16 %v7164_v36  ;;  %v5248_v10 = vunpack.i.h.bf16 %v7429_v46  ;;  %v2001_v57 = vsel %vm2000_vm8, %v1968_v48, %v5242_v62  ;;  %v2002_v50 = vsel %vm2000_vm8, %v1969_v34, %v5243_v44 }
 0x15c   : > { %v5321_v12 = vpop.permute.xlu0 %5320  ;;  %v5192_v25 = vunpack.i.l.bf16 %v7176_v9  ;;  %v5253_v63 = vunpack.i.h.bf16 %v7441_v11  ;;  %v2003_v36 = vsel %vm2000_vm8, %v1970_v61, %v5247_v28  ;;  %v5252_v46 = vunpack.i.l.bf16 %v7441_v11 }
 0x15d   : > { %v5323_v17 = vunpack.i.h.bf16 %v5321_v12  ;;  %v5322_v38 = vunpack.i.l.bf16 %v5321_v12  ;;  %v2004_v44 = vsel %vm2000_vm8, %v1971_v47, %v5248_v10 }
 0x15e   : > { %v7783_v10 = vsel %vm1967_vm7, %v7629_v3, %v5192_v25 }
 0x15f   : > { %v5326_v51 = vpop.permute.xlu1 %5325  ;;  %v2034_v12 = vsel %vm2033_vm9, %v2001_v57, %v5322_v38  ;;  %v2035_v2 = vsel %vm2033_vm9, %v2002_v50, %v5323_v17  ;;  %v1977_v38 = vsel %vm1967_vm7, %v7609_v53, %v5183_v55  ;;  %v5193_v17 = vunpack.i.h.bf16 %v7176_v9 }
 0x160   : > { %v5331_v58 = vpop.permute.xlu0 %5330  ;;  %v5328_v21 = vunpack.i.h.bf16 %v5326_v51  ;;  %v5327_v14 = vunpack.i.l.bf16 %v5326_v51  ;;  %v1979_v53 = vsel %vm1967_vm7, %v7625_v42, %v5188_v39  ;;  %v5257_v9 = vunpack.i.l.bf16 %v7464_v40  ;;  %v9413_v42 = vld [vmem:[#allocation4_spill] sm:$0xff] }
 0x161   : > { %v5333_v59 = vunpack.i.h.bf16 %v5331_v58  ;;  %v5332_v29 = vunpack.i.l.bf16 %v5331_v58  ;;  %v5197_v39 = vunpack.i.l.bf16 %v9413_v42 }
 0x162   : > { %v2036_v61 = vsel %vm2033_vm9, %v2003_v36, %v5327_v14  ;;  %v2037_v11 = vsel %vm2033_vm9, %v2004_v44, %v5328_v21  ;;  %v2005_v21 = vsel %vm2000_vm8, %v1972_v32, %v5252_v46  ;;  %v2006_v14 = vsel %vm2000_vm8, %v1973_v54, %v5253_v63  ;;  %v9414_v36 = vld [vmem:[#allocation14_spill] sm:$0xff] }
 0x163   : > { %v5336_v15 = vpop.permute.xlu1 %5335  ;;  %v2067_v48 = vsel %vm2066_vm10, %v2034_v12, %v5332_v29  ;;  %v2068_v34 = vsel %vm2066_vm10, %v2035_v2, %v5333_v59  ;;  %v2007_v32 = vsel %vm2000_vm8, %v1974_v27, %v5257_v9  ;;  %v5262_v54 = vunpack.i.l.bf16 %v9414_v36 }
 0x164   : > { %v5338_v62 = vunpack.i.h.bf16 %v5336_v15  ;;  %v5337_v51 = vunpack.i.l.bf16 %v5336_v15  ;;  %v5341_v58 = vpop.permute.xlu0 %5340  ;;  %v2099_v30 = vpack.c.bf16 %v2068_v34, %v2067_v48  ;;  %v1978_v15 = vsel %vm1967_vm7, %v7613_v60, %v5187_v18 }
 0x165   : > { %v5343_v2 = vunpack.i.h.bf16 %v5341_v58  ;;  %v5342_v50 = vunpack.i.l.bf16 %v5341_v58  ;;  %v5263_v48 = vunpack.i.h.bf16 %v9414_v36 }
 0x166   : > { %v2069_v28 = vsel %vm2066_vm10, %v2036_v61, %v5337_v51  ;;  %v2070_v57 = vsel %vm2066_vm10, %v2037_v11, %v5338_v62  ;;  %4742 = vmatprep.mubr.msk.bf16.mxu0 %vm2135_vm11, %v2099_v30  ;;  %v5258_v30 = vunpack.i.h.bf16 %v7464_v40  ;;  %v1981_v61 = vsel %vm1967_vm7, %v7633_v35, %v5193_v17 }
 0x167   : > { %v5346_v47 = vpop.permute.xlu1 %5345  ;;  %v2100_v55 = vpack.c.bf16 %v2070_v57, %v2069_v28  ;;  %v2038_v3 = vsel %vm2033_vm9, %v2005_v21, %v5342_v50  ;;  %v2039_v25 = vsel %vm2033_vm9, %v2006_v14, %v5343_v2  ;;  %v5198_v11 = vunpack.i.h.bf16 %v9413_v42  ;;  %v9416_v21 = vld [vmem:[#allocation13_spill] sm:$0xff] }
 0x168   : > { %v5351_v59 = vpop.permute.xlu0 %5350  ;;  %v5348_v29 = vunpack.i.h.bf16 %v5346_v47  ;;  %v5347_v60 = vunpack.i.l.bf16 %v5346_v47  ;;  %v2008_v34 = vsel %vm2000_vm8, %v1975_v49, %v5258_v30  ;;  %v9415_v49 = vld [vmem:[#allocation6_spill] sm:$0xff]  ;;  %v5267_v35 = vunpack.i.l.bf16 %v9416_v21 }
 0x169   : > { %v5353_v18 = vunpack.i.h.bf16 %v5351_v59  ;;  %v5352_v12 = vunpack.i.l.bf16 %v5351_v59  ;;  %4743 = vmatmul.mubr.msk.bf16.vlgmr.msra.gmra.mrb[0].mxu0 %vm2135_vm11, %v2100_v55  ;;  %v5203_v47 = vunpack.i.h.bf16 %v9415_v49  ;;  %v5202_v55 = vunpack.i.l.bf16 %v9415_v49 }
 0x16a   : > { %v2040_v27 = vsel %vm2033_vm9, %v2007_v32, %v5347_v60  ;;  %v2041_v28 = vsel %vm2033_vm9, %v2008_v34, %v5348_v29  ;;  %v1982_v30 = vsel %vm1967_vm7, %v7644_v24, %v5197_v39  ;;  %v2009_v59 = vsel %vm2000_vm8, %v7751_v37, %v5262_v54  ;;  %v9417_v32 = vld [vmem:[#allocation16_spill] sm:$0xff] }
 0x16b   : > { %v2071_v40 = vsel %vm2066_vm10, %v2038_v3, %v5352_v12  ;;  %v2072_v63 = vsel %vm2066_vm10, %v2039_v25, %v5353_v18  ;;  %v5356_v46 = vpop.permute.xlu1 %5355  ;;  %v2010_v29 = vsel %vm2000_vm8, %v1977_v38, %v5263_v48  ;;  %v5268_v60 = vunpack.i.h.bf16 %v9416_v21 }
 0x16c   : > { %v5358_v44 = vunpack.i.h.bf16 %v5356_v46  ;;  %v5357_v62 = vunpack.i.l.bf16 %v5356_v46  ;;  %v5361_v51 = vpop.permute.xlu0 %5360  ;;  %v2101_v58 = vpack.c.bf16 %v2072_v63, %v2071_v40  ;;  %v1983_v25 = vsel %vm1967_vm7, %v7648_v52, %v5198_v11 }
 0x16d   : > { %v5363_v50 = vunpack.i.h.bf16 %v5361_v51  ;;  %v5362_v9 = vunpack.i.l.bf16 %v5361_v51  ;;  %v5273_v40 = vunpack.i.h.bf16 %v9417_v32  ;;  %v2011_v38 = vsel %vm2000_vm8, %v1978_v15, %v5267_v35 }
 0x16e   : > { %v2073_v57 = vsel %vm2066_vm10, %v2040_v27, %v5357_v62  ;;  %v2074_v2 = vsel %vm2066_vm10, %v2041_v28, %v5358_v44  ;;  %4746 = vmatprep.mubr.msk.bf16.mxu0 %vm2135_vm11, %v2101_v58  ;;  %v5272_v39 = vunpack.i.l.bf16 %v9417_v32  ;;  %v2012_v46 = vsel %vm2000_vm8, %v1979_v53, %v5268_v60 }
 0x16f   : > { %v5366_v17 = vpop.permute.xlu1 %5365  ;;  %v2102_v14 = vpack.c.bf16 %v2074_v2, %v2073_v57  ;;  %v2042_v24 = vsel %vm2033_vm9, %v2009_v59, %v5362_v9  ;;  %v2043_v37 = vsel %vm2033_vm9, %v2010_v29, %v5363_v50  ;;  %v1984_v51 = vsel %vm1967_vm7, %v7656_v22, %v5202_v55  ;;  %v9418_v2 = vld [vmem:[#allocation5_spill] sm:$0xff]  ;;  %v9419_v22 = vld [vmem:[#allocation15_spill] sm:$0xff] }
 0x170   : > { %v5371_v18 = vpop.permute.xlu0 %5370  ;;  %v5368_v12 = vunpack.i.h.bf16 %v5366_v17  ;;  %v5367_v42 = vunpack.i.l.bf16 %v5366_v17  ;;  %v1985_v58 = vsel %vm1967_vm7, %v7660_v8, %v5203_v47  ;;  %v5208_v50 = vunpack.i.h.bf16 %v9418_v2  ;;  %v9420_v47 = vld [vmem:[#allocation8_spill] sm:$0xff] }
 0x171   : > { %v5373_v36 = vunpack.i.h.bf16 %v5371_v18  ;;  %v5372_v3 = vunpack.i.l.bf16 %v5371_v18  ;;  %4747 = vmatmul.mubr.msk.bf16.gmra.mrb[4].mxu0 %vm2135_vm11, %v2102_v14  ;;  %v5207_v9 = vunpack.i.l.bf16 %v9418_v2  ;;  %v5277_v49 = vunpack.i.l.bf16 %v9419_v22 }
 0x172   : > { %v2044_v15 = vsel %vm2033_vm9, %v2011_v38, %v5367_v42  ;;  %v2045_v11 = vsel %vm2033_vm9, %v2012_v46, %v5368_v12  ;;  %v5213_v21 = vunpack.i.h.bf16 %v9420_v47  ;;  %v2013_v35 = vsel %vm2000_vm8, %v7783_v10, %v5272_v39 }
 0x173   : > { %v2075_v48 = vsel %vm2066_vm10, %v2042_v24, %v5372_v3  ;;  %v2076_v54 = vsel %vm2066_vm10, %v2043_v37, %v5373_v36  ;;  %v5376_v63 = vpop.permute.xlu1 %5375  ;;  %v2014_v17 = vsel %vm2000_vm8, %v1981_v61, %v5273_v40  ;;  %v5278_v14 = vunpack.i.h.bf16 %v9419_v22 }
 0x174   : > { %v5378_v34 = vunpack.i.h.bf16 %v5376_v63  ;;  %v5377_v44 = vunpack.i.l.bf16 %v5376_v63  ;;  %v5381_v52 = vpop.permute.xlu0 %5380  ;;  %v2103_v62 = vpack.c.bf16 %v2076_v54, %v2075_v48  ;;  %v5212_v42 = vunpack.i.l.bf16 %v9420_v47 }
 0x175   : > { %v5383_v57 = vunpack.i.h.bf16 %v5381_v52  ;;  %v5382_v53 = vunpack.i.l.bf16 %v5381_v52  ;;  %v5283_v36 = vunpack.i.h.bf16 %v7564_v41  ;;  %v2015_v10 = vsel %vm2000_vm8, %v1982_v30, %v5277_v49 }
 0x176   : > { %v2077_v27 = vsel %vm2066_vm10, %v2044_v15, %v5377_v44  ;;  %v2078_v28 = vsel %vm2066_vm10, %v2045_v11, %v5378_v34  ;;  %4750 = vmatprep.mubr.msk.bf16.mxu0 %vm2135_vm11, %v2103_v62  ;;  %v5282_v61 = vunpack.i.l.bf16 %v7564_v41  ;;  %v2016_v38 = vsel %vm2000_vm8, %v1983_v25, %v5278_v14  ;;  %v9421_v11 = vld [vmem:[#allocation7_spill] sm:$0xff] }
 0x177   : > { %v5386_v55 = vpop.permute.xlu1 %5385  ;;  %v2104_v8 = vpack.c.bf16 %v2078_v28, %v2077_v27  ;;  %v2046_v3 = vsel %vm2033_vm9, %v2013_v35, %v5382_v53  ;;  %v2047_v32 = vsel %vm2033_vm9, %v2014_v17, %v5383_v57  ;;  %v1986_v46 = vsel %vm1967_vm7, %v7664_v31, %v5207_v9  ;;  %v9423_v17 = vld [vmem:[#allocation19_spill] sm:$0xff] }
 0x178   : > { %v5391_v59 = vpop.permute.xlu0 %5390  ;;  %v5388_v29 = vunpack.i.h.bf16 %v5386_v55  ;;  %v5387_v60 = vunpack.i.l.bf16 %v5386_v55  ;;  %v1987_v34 = vsel %vm1967_vm7, %v7668_v16, %v5208_v50  ;;  %v1988_v15 = vsel %vm1967_vm7, %v7672_v4, %v5212_v42  ;;  %v9422_v4 = vld [vmem:[#allocation10_spill] sm:$0xff] }
 0x179   : > { %v5393_v18 = vunpack.i.h.bf16 %v5391_v59  ;;  %v5392_v12 = vunpack.i.l.bf16 %v5391_v59  ;;  %4751 = vmatmul.mubr.msk.bf16.gmra.mrb[8].mxu0 %vm2135_vm11, %v2104_v8  ;;  %v5218_v31 = vunpack.i.h.bf16 %v9421_v11  ;;  %v5287_v27 = vunpack.i.l.bf16 %v7605_v1 }
 0x17a   : > { %v2048_v30 = vsel %vm2033_vm9, %v2015_v10, %v5387_v60  ;;  %v2049_v41 = vsel %vm2033_vm9, %v2016_v38, %v5388_v29  ;;  %v5217_v57 = vunpack.i.l.bf16 %v9421_v11  ;;  %v2017_v53 = vsel %vm2000_vm8, %v1984_v51, %v5282_v61 }
 0x17b   : > { %v2079_v40 = vsel %vm2066_vm10, %v2046_v3, %v5392_v12  ;;  %v2080_v24 = vsel %vm2066_vm10, %v2047_v32, %v5393_v18  ;;  %v5396_v37 = vpop.permute.xlu1 %5395  ;;  %v2018_v2 = vsel %vm2000_vm8, %v1985_v58, %v5283_v36  ;;  %v5288_v50 = vunpack.i.h.bf16 %v7605_v1 }
 0x17c   : > { %v5398_v39 = vunpack.i.h.bf16 %v5396_v37  ;;  %v5397_v48 = vunpack.i.l.bf16 %v5396_v37  ;;  %v5401_v54 = vpop.permute.xlu0 %5400  ;;  %v2105_v63 = vpack.c.bf16 %v2080_v24, %v2079_v40  ;;  %v5222_v35 = vunpack.i.l.bf16 %v9422_v4 }
 0x17d   : > { %v5403_v62 = vunpack.i.h.bf16 %v5401_v54  ;;  %v5402_v25 = vunpack.i.l.bf16 %v5401_v54  ;;  %v5293_v14 = vunpack.i.h.bf16 %v9423_v17  ;;  %v2019_v51 = vsel %vm2000_vm8, %v1986_v46, %v5287_v27 }
 0x17e   : > { %v2081_v44 = vsel %vm2066_vm10, %v2048_v30, %v5397_v48  ;;  %v2082_v52 = vsel %vm2066_vm10, %v2049_v41, %v5398_v39  ;;  %4754 = vmatprep.mubr.msk.bf16.mxu0 %vm2135_vm11, %v2105_v63  ;;  %v5292_v58 = vunpack.i.l.bf16 %v9423_v17  ;;  %v2020_v12 = vsel %vm2000_vm8, %v1987_v34, %v5288_v50 }
 0x17f   : > { %v5406_v16 = vpop.permute.xlu1 %5405  ;;  %v2106_v28 = vpack.c.bf16 %v2082_v52, %v2081_v44  ;;  %v2050_v59 = vsel %vm2033_vm9, %v2017_v53, %v5402_v25  ;;  %v2051_v29 = vsel %vm2033_vm9, %v2018_v2, %v5403_v62  ;;  %v1989_v10 = vsel %vm1967_vm7, %v7679_v43, %v5213_v21  ;;  %v9424_v21 = vld [vmem:[#allocation20_spill] sm:$0xff] }
 0x180   : > { %v5411_v9 = vpop.permute.xlu0 %5410  ;;  %v5408_v22 = vunpack.i.h.bf16 %v5406_v16  ;;  %v5407_v49 = vunpack.i.l.bf16 %v5406_v16  ;;  %v5223_v61 = vunpack.i.h.bf16 %v9422_v4  ;;  %v1990_v47 = vsel %vm1967_vm7, %v7683_v7, %v5217_v57 }
 0x181   : > { %v5413_v55 = vunpack.i.h.bf16 %v5411_v9  ;;  %v5412_v8 = vunpack.i.l.bf16 %v5411_v9  ;;  %4755 = vmatmul.mubr.msk.bf16.gmra.mrb[12].mxu0 %vm2135_vm11, %v2106_v28  ;;  %v1991_v43 = vsel %vm1967_vm7, %v7687_v5, %v5218_v31  ;;  %v5297_v54 = vunpack.i.l.bf16 %v9424_v21  ;;  %v9425_v5 = vld [vmem:[#allocation9_spill] sm:$0xff] }
 0x182   : > { %v2052_v40 = vsel %vm2033_vm9, %v2019_v51, %v5407_v49  ;;  %v2053_v24 = vsel %vm2033_vm9, %v2020_v12, %v5408_v22  ;;  %v1992_v34 = vsel %vm1967_vm7, %v7691_v6, %v5222_v35  ;;  %v2021_v30 = vsel %vm2000_vm8, %v1988_v15, %v5292_v58  ;;  %v9426_v51 = vld [vmem:[#allocation12_spill] sm:$0xff] }
 0x183   : > { %v2083_v1 = vsel %vm2066_vm10, %v2050_v59, %v5412_v8  ;;  %v2084_v60 = vsel %vm2066_vm10, %v2051_v29, %v5413_v55  ;;  %v5416_v18 = vpop.permute.xlu1 %5415  ;;  %v2022_v41 = vsel %vm2000_vm8, %v1989_v10, %v5293_v14  ;;  %v5298_v44 = vunpack.i.h.bf16 %v9424_v21 }
 0x184   : > { %v5418_v42 = vunpack.i.h.bf16 %v5416_v18  ;;  %v5417_v36 = vunpack.i.l.bf16 %v5416_v18  ;;  %v5421_v3 = vpop.permute.xlu0 %5420  ;;  %v2107_v32 = vpack.c.bf16 %v2084_v60, %v2083_v1  ;;  %v5227_v31 = vunpack.i.l.bf16 %v9425_v5 }
 0x185   : > { %v5423_v39 = vunpack.i.h.bf16 %v5421_v3  ;;  %v5422_v48 = vunpack.i.l.bf16 %v5421_v3  ;;  %v5303_v27 = vunpack.i.h.bf16 %v7652_v56  ;;  %v2023_v15 = vsel %vm2000_vm8, %v1990_v47, %v5297_v54 }
 0x186   : > { %v2085_v37 = vsel %vm2066_vm10, %v2052_v40, %v5417_v36  ;;  %v2086_v38 = vsel %vm2066_vm10, %v2053_v24, %v5418_v42  ;;  %4758 = vmatprep.mubr.msk.bf16.mxu0 %vm2135_vm11, %v2107_v32  ;;  %v5302_v28 = vunpack.i.l.bf16 %v7652_v56  ;;  %v2024_v50 = vsel %vm2000_vm8, %v1991_v43, %v5298_v44 }
 0x187   : > { %v5426_v63 = vpop.permute.xlu1 %5425  ;;  %v2108_v46 = vpack.c.bf16 %v2086_v38, %v2085_v37  ;;  %v2054_v16 = vsel %vm2033_vm9, %v2021_v30, %v5422_v48  ;;  %v2055_v6 = vsel %vm2033_vm9, %v2022_v41, %v5423_v39  ;;  %v1993_v8 = vsel %vm1967_vm7, %v7697_v45, %v5223_v61  ;;  %v9427_v41 = vld [vmem:[#allocation11_spill] sm:$0xff] }
 0x188   : > { %v5431_v52 = vpop.permute.xlu0 %5430  ;;  %v5428_v62 = vunpack.i.h.bf16 %v5426_v63  ;;  %v5427_v25 = vunpack.i.l.bf16 %v5426_v63  ;;  %v5228_v4 = vunpack.i.h.bf16 %v9425_v5  ;;  %v5233_v58 = vunpack.i.h.bf16 %v9426_v51 }
 0x189   : > { %v5433_v7 = vunpack.i.h.bf16 %v5431_v52  ;;  %v5432_v11 = vunpack.i.l.bf16 %v5431_v52  ;;  %4759 = vmatmul.mubr.msk.bf16.gmra.mrb[16].mxu0 %vm2135_vm11, %v2108_v46  ;;  %v5232_v1 = vunpack.i.l.bf16 %v9426_v51  ;;  %v5307_v45 = vunpack.i.l.bf16 %v7693_v20 }
 0x18a   : > { %v2056_v35 = vsel %vm2033_vm9, %v2023_v15, %v5427_v25  ;;  %v2057_v56 = vsel %vm2033_vm9, %v2024_v50, %v5428_v62  ;;  %v1994_v12 = vsel %vm1967_vm7, %v7701_v13, %v5227_v31  ;;  %v2025_v42 = vsel %vm2000_vm8, %v1992_v34, %v5302_v28  ;;  %v9430_v28 = vld [vmem:[#allocation17_spill] sm:$0xff] }
 0x18b   : > { %v2087_v57 = vsel %vm2066_vm10, %v2054_v16, %v5432_v11  ;;  %v2088_v53 = vsel %vm2066_vm10, %v2055_v6, %v5433_v7  ;;  %v5436_v2 = vpop.permute.xlu1 %5435  ;;  %v2026_v36 = vsel %vm2000_vm8, %v1993_v8, %v5303_v27  ;;  %v5308_v3 = vunpack.i.h.bf16 %v7693_v20  ;;  %v9428_v6 = vld [vmem:[#allocation57_spill] sm:$0xff] }
 0x18c   : > { %v5438_v9 = vunpack.i.h.bf16 %v5436_v2  ;;  %v5437_v22 = vunpack.i.l.bf16 %v5436_v2  ;;  %v5441_v49 = vpop.permute.xlu0 %5440  ;;  %v2109_v55 = vpack.c.bf16 %v2088_v53, %v2087_v57  ;;  %v1995_v37 = vsel %vm1967_vm7, %v7713_v33, %v5228_v4  ;;  %v9432_v4 = vld [vmem:[#allocation18_spill] sm:$0xff] }
 0x18d   : > { %v5443_v59 = vunpack.i.h.bf16 %v5441_v49  ;;  %v5442_v29 = vunpack.i.l.bf16 %v5441_v49  ;;  %v5313_v38 = vunpack.i.h.bf16 %v7705_v0  ;;  %v2027_v48 = vsel %vm2000_vm8, %v1994_v12, %v5307_v45 }
 0x18e   : > { %v2089_v17 = vsel %vm2066_vm10, %v2056_v35, %v5437_v22  ;;  %v2090_v14 = vsel %vm2066_vm10, %v2057_v56, %v5438_v9  ;;  %4762 = vmatprep.mubr.msk.bf16.mxu0 %vm2135_vm11, %v2109_v55  ;;  %v5312_v20 = vunpack.i.l.bf16 %v7705_v0  ;;  %v2028_v54 = vsel %vm2000_vm8, %v1995_v37, %v5308_v3  ;;  %v2601_v37 = vld [vmem:[#allocation3 + $0x2] sm:$0xff] }
 0x18f   : > { %v5446_v60 = vpop.permute.xlu1 %5445  ;;  %v2110_v18 = vpack.c.bf16 %v2090_v14, %v2089_v17  ;;  %v2058_v13 = vsel %vm2033_vm9, %v2025_v42, %v5442_v29  ;;  %v2059_v39 = vsel %vm2033_vm9, %v2026_v36, %v5443_v59  ;;  %v1996_v30 = vsel %vm1967_vm7, %v7717_v19, %v5232_v1 }
 0x190   : > { %v5451_v32 = vpop.permute.xlu0 %5450  ;;  %v5448_v10 = vunpack.i.h.bf16 %v5446_v60  ;;  %v5447_v61 = vunpack.i.l.bf16 %v5446_v60  ;;  %v5237_v44 = vunpack.i.l.bf16 %v9427_v41  ;;  %v1997_v5 = vsel %vm1967_vm7, %v7721_v26, %v5233_v58 }
 0x191   : > { %v5453_v40 = vunpack.i.h.bf16 %v5451_v32  ;;  %v5452_v24 = vunpack.i.l.bf16 %v5451_v32  ;;  %4763 = vmatmul.mubr.msk.bf16.gmra.mrb[20].mxu0 %vm2135_vm11, %v2110_v18  ;;  %v5238_v31 = vunpack.i.h.bf16 %v9427_v41  ;;  %v5317_v19 = vunpack.i.l.bf16 %v7728_v23 }
 0x192   : > { %v2060_v52 = vsel %vm2033_vm9, %v2027_v48, %v5447_v61  ;;  %v2061_v0 = vsel %vm2033_vm9, %v2028_v54, %v5448_v10  ;;  %v9429_v15 = vunpack.i.l.bf16 %v9428_v6  ;;  %v2029_v53 = vsel %vm2000_vm8, %v1996_v30, %v5312_v20  ;;  %v2569_v61 = vld [vmem:[#allocation3 + $0x1] sm:$0xff]  ;;  %v8059_v20 = vld [vmem:[%s9212_s6] ss:$0 sm:$0xff] }
 0x193   : > { %v2091_v47 = vsel %vm2066_vm10, %v2058_v13, %v5452_v24  ;;  %v2092_v43 = vsel %vm2066_vm10, %v2059_v39, %v5453_v40  ;;  %v5456_v21 = vpop.permute.xlu1 %5455  ;;  %v2030_v2 = vsel %vm2000_vm8, %v1997_v5, %v5313_v38  ;;  %v5318_v50 = vunpack.i.h.bf16 %v7728_v23  ;;  %v8054_v39 = vld [vmem:[%s9211_s5] ss:$0 sm:$0xff] }
 0x194   : > { %v5458_v63 = vunpack.i.h.bf16 %v5456_v21  ;;  %v5457_v46 = vunpack.i.l.bf16 %v5456_v21  ;;  %v5461_v33 = vpop.permute.xlu0 %5460  ;;  %v2111_v34 = vpack.c.bf16 %v2092_v43, %v2091_v47  ;;  %v1965_v57 = vsel %vm1934_vm6, %v9430_v28, %v9429_v15 }
 0x195   : > { %v5463_v7 = vunpack.i.h.bf16 %v5461_v33  ;;  %v5462_v11 = vunpack.i.l.bf16 %v5461_v33  ;;  %v9431_v8 = vunpack.i.h.bf16 %v9428_v6  ;;  %v1998_v56 = vsel %vm1967_vm7, %v1965_v57, %v5237_v44 }
 0x196   : > { %v2093_v62 = vsel %vm2066_vm10, %v2060_v52, %v5457_v46  ;;  %v2094_v25 = vsel %vm2066_vm10, %v2061_v0, %v5458_v63  ;;  %4766 = vmatprep.mubr.msk.bf16.mxu0 %vm2135_vm11, %v2111_v34  ;;  %v2031_v59 = vsel %vm2000_vm8, %v1998_v56, %v5317_v19  ;;  %v9433_v10 = vmov 0.0  }
 0x197   : > { %v5466_v27 = vpop.permute.xlu1 %5465  ;;  %v2112_v16 = vpack.c.bf16 %v2094_v25, %v2093_v62  ;;  %v1966_v35 = vsel %vm1934_vm6, %v9432_v4, %v9431_v8  ;;  %v2062_v17 = vsel %vm2033_vm9, %v2029_v53, %v5462_v11  ;;  %v2063_v14 = vsel %vm2033_vm9, %v2030_v2, %v5463_v7  ;;  %2462 = vst.msk [vmem:[#allocation3 + $0x10] sm:$0x3] %vm2461_vm12, %v9433_v10 }
 0x198   : > { %v5471_v9 = vpop.permute.xlu0 %5470  ;;  %v5468_v22 = vunpack.i.h.bf16 %v5466_v27  ;;  %v5467_v26 = vunpack.i.l.bf16 %v5466_v27  ;;  %v1999_v23 = vsel %vm1967_vm7, %v1966_v35, %v5238_v31  ;;  %2466 = vst.msk [vmem:[#allocation3 + $0x1a8] sm:$0x3] %vm2461_vm12, %v9433_v10 }
 0x199   : > { %v5473_v49 = vunpack.i.h.bf16 %v5471_v9  ;;  %v5472_v55 = vunpack.i.l.bf16 %v5471_v9  ;;  %4767 = vmatmul.mubr.msk.bf16.gmra.mrb[24].mxu0 %vm2135_vm11, %v2112_v16  ;;  %v2032_v1 = vsel %vm2000_vm8, %v1999_v23, %v5318_v50  ;;  %2486 = vst.msk [vmem:[#allocation3 + $0x11] sm:$0x1] %vm2467_vm13, %v9433_v10  ;;  %2468 = vst.msk [vmem:[#allocation3] sm:$0x1] %vm2467_vm13, %v9433_v10 }
 0x19a   : > { %v2064_v12 = vsel %vm2033_vm9, %v2031_v59, %v5467_v26  ;;  %v2065_v42 = vsel %vm2033_vm9, %v2032_v1, %v5468_v22  ;;  %2469 = vst.msk [vmem:[#allocation3 + $0x18] sm:$0x1] %vm2467_vm13, %v9433_v10  ;;  %2470 = vst.msk [vmem:[#allocation3 + $0x30] sm:$0x1] %vm2467_vm13, %v9433_v10 }
 0x19b   : > { %v2095_v29 = vsel %vm2066_vm10, %v2062_v17, %v5472_v55  ;;  %v2096_v51 = vsel %vm2066_vm10, %v2063_v14, %v5473_v49  ;;  %v5476_v58 = vpop.permute.xlu1 %5475  ;;  %2471 = vst.msk [vmem:[#allocation3 + $0x48] sm:$0x1] %vm2467_vm13, %v9433_v10  ;;  %2472 = vst.msk [vmem:[#allocation3 + $0x60] sm:$0x1] %vm2467_vm13, %v9433_v10 }
 0x19c   : > { %v5478_v45 = vunpack.i.h.bf16 %v5476_v58  ;;  %v5477_v60 = vunpack.i.l.bf16 %v5476_v58  ;;  %v2113_v18 = vpack.c.bf16 %v2096_v51, %v2095_v29  ;;  %2473 = vst.msk [vmem:[#allocation3 + $0x78] sm:$0x1] %vm2467_vm13, %v9433_v10  ;;  %2474 = vst.msk [vmem:[#allocation3 + $0x90] sm:$0x1] %vm2467_vm13, %v9433_v10 }
 0x19d   : > { %2475 = vst.msk [vmem:[#allocation3 + $0xa8] sm:$0x1] %vm2467_vm13, %v9433_v10  ;;  %2476 = vst.msk [vmem:[#allocation3 + $0xc0] sm:$0x1] %vm2467_vm13, %v9433_v10 }
 0x19e   : > { %v2097_v36 = vsel %vm2066_vm10, %v2064_v12, %v5477_v60  ;;  %v2098_v3 = vsel %vm2066_vm10, %v2065_v42, %v5478_v45  ;;  %4770 = vmatprep.mubr.msk.bf16.mxu0 %vm2135_vm11, %v2113_v18  ;;  %2477 = vst.msk [vmem:[#allocation3 + $0xd8] sm:$0x1] %vm2467_vm13, %v9433_v10  ;;  %2478 = vst.msk [vmem:[#allocation3 + $0xf0] sm:$0x1] %vm2467_vm13, %v9433_v10  ;;  %v2570_v40 = vld [vmem:[#allocation3 + $0x9] sm:$0xff] }
 0x19f   : > { %v2114_v32 = vpack.c.bf16 %v2098_v3, %v2097_v36  ;;  %2479 = vst.msk [vmem:[#allocation3 + $0x108] sm:$0x1] %vm2467_vm13, %v9433_v10  ;;  %2480 = vst.msk [vmem:[#allocation3 + $0x120] sm:$0x1] %vm2467_vm13, %v9433_v10  ;;  %v5479_v24 = vpack.i.bf16 %v2570_v40, %v2569_v61 }
 0x1a0   : > { %2481 = vst.msk [vmem:[#allocation3 + $0x138] sm:$0x1] %vm2467_vm13, %v9433_v10  ;;  %2482 = vst.msk [vmem:[#allocation3 + $0x150] sm:$0x1] %vm2467_vm13, %v9433_v10  ;;  %v2602_v38 = vld [vmem:[#allocation3 + $0xa] sm:$0xff] }
 0x1a1   : > { %4771 = vmatmul.mubr.msk.bf16.gmra.mrb[28].mxu0 %vm2135_vm11, %v2114_v32  ;;  %2483 = vst.msk [vmem:[#allocation3 + $0x168] sm:$0x1] %vm2467_vm13, %v9433_v10  ;;  %2484 = vst.msk [vmem:[#allocation3 + $0x180] sm:$0x1] %vm2467_vm13, %v9433_v10  ;;  %5480 = vrot.lane.b32.xlu0 %v5479_v24, %s6171_s21  ;;  %v5484_v13 = vpack.i.bf16 %v2602_v38, %v2601_v37 }
 0x1a2   : > { %2485 = vst.msk [vmem:[#allocation3 + $0x198] sm:$0x1] %vm2467_vm13, %v9433_v10  ;;  %2487 = vst.msk [vmem:[#allocation3 + $0x29] sm:$0x1] %vm2467_vm13, %v9433_v10 }
 0x1a3   : > { %2488 = vst.msk [vmem:[#allocation3 + $0x41] sm:$0x1] %vm2467_vm13, %v9433_v10  ;;  %2489 = vst.msk [vmem:[#allocation3 + $0x59] sm:$0x1] %vm2467_vm13, %v9433_v10 }
 0x1a4   : > { %2490 = vst.msk [vmem:[#allocation3 + $0x71] sm:$0x1] %vm2467_vm13, %v9433_v10  ;;  %2491 = vst.msk [vmem:[#allocation3 + $0x89] sm:$0x1] %vm2467_vm13, %v9433_v10 }
 0x1a5   : > { %2492 = vst.msk [vmem:[#allocation3 + $0xa1] sm:$0x1] %vm2467_vm13, %v9433_v10  ;;  %2493 = vst.msk [vmem:[#allocation3 + $0xb9] sm:$0x1] %vm2467_vm13, %v9433_v10  ;;  %5485 = vrot.lane.b32.xlu0 %v5484_v13, %s6173_s23 }
 0x1a6   : > { %2494 = vst.msk [vmem:[#allocation3 + $0xd1] sm:$0x1] %vm2467_vm13, %v9433_v10  ;;  %2495 = vst.msk [vmem:[#allocation3 + $0xe9] sm:$0x1] %vm2467_vm13, %v9433_v10 }
 0x1a7   : > { %2496 = vst.msk [vmem:[#allocation3 + $0x101] sm:$0x1] %vm2467_vm13, %v9433_v10  ;;  %2497 = vst.msk [vmem:[#allocation3 + $0x119] sm:$0x1] %vm2467_vm13, %v9433_v10 }
 0x1a8   : > { %2498 = vst.msk [vmem:[#allocation3 + $0x131] sm:$0x1] %vm2467_vm13, %v9433_v10  ;;  %2499 = vst.msk [vmem:[#allocation3 + $0x149] sm:$0x1] %vm2467_vm13, %v9433_v10 }
 0x1a9   : > { %2500 = vst.msk [vmem:[#allocation3 + $0x161] sm:$0x1] %vm2467_vm13, %v9433_v10  ;;  %2501 = vst.msk [vmem:[#allocation3 + $0x179] sm:$0x1] %vm2467_vm13, %v9433_v10 }
 0x1aa   : > { %2502 = vst.msk [vmem:[#allocation3 + $0x191] sm:$0x1] %vm2467_vm13, %v9433_v10  ;;  %2503 = vst.msk [vmem:[#allocation3 + $0x1a9] sm:$0x1] %vm2467_vm13, %v9433_v10 }
 0x23c   : > { %v4744_v48 = vpop.f32.mrb[0].mxu0 }
 0x23d   : > { %v2358_v47 = vmul.f32 %v4744_v48, %v8054_v39  ;;  %v2222_v43 = vpop.f32.mrb[1].mxu0 }
 0x23e   : > { %v2356_v21 = vmul.f32 %v8054_v39, %v2222_v43  ;;  %v4745_v54 = vpop.f32.mrb[2].mxu0 }
 0x23f   : > { %v2397_v63 = vadd.f32 %v8059_v20, %v2358_v47  ;;  %v2359_v46 = vmul.f32 %v4745_v54, %v8054_v39  ;;  %v2225_v33 = vpop.f32.mrb[3].mxu0 }
 0x240   : > { %v2395_v34 = vadd.f32 %v8059_v20, %v2356_v21  ;;  %v2357_v30 = vmul.f32 %v8054_v39, %v2225_v33 }
 0x241   : > { %v2429_v41 = vmax.f32 %v2397_v63, 0.0  ;;  %v2398_v44 = vadd.f32 %v8059_v20, %v2359_v46 }
 0x242   : > { %v2427_v52 = vmax.f32 %v2395_v34, 0.0  ;;  %v2396_v0 = vadd.f32 %v8059_v20, %v2357_v30 }
 0x243   : > { %2507 = vst.msk [vmem:[#allocation3 + $0x31] sm:$0xff] %vm1868_vm3, %v2429_v41  ;;  %v2430_v62 = vmax.f32 %v2398_v44, 0.0 }
 0x244   : > { %2505 = vst.msk [vmem:[#allocation3 + $0x19] sm:$0xff] %vm1868_vm3, %v2427_v52  ;;  %v2428_v25 = vmax.f32 %v2396_v0, 0.0  ;;  %v4748_v7 = vpop.f32.mrb[4].mxu0 }
 0x245   : > { %2508 = vst.msk [vmem:[#allocation3 + $0x39] sm:$0xff] %vm1868_vm3, %v2430_v62  ;;  %v2362_v11 = vmul.f32 %v4748_v7, %v8054_v39  ;;  %v2238_v5 = vpop.f32.mrb[5].mxu0 }
 0x246   : > { %2506 = vst.msk [vmem:[#allocation3 + $0x21] sm:$0xff] %vm1868_vm3, %v2428_v25  ;;  %v2360_v31 = vmul.f32 %v8054_v39, %v2238_v5  ;;  %v4749_v19 = vpop.f32.mrb[6].mxu0 }
 0x247   : > { %v2401_v27 = vadd.f32 %v8059_v20, %v2362_v11  ;;  %v2363_v16 = vmul.f32 %v4749_v19, %v8054_v39  ;;  %v2241_v6 = vpop.f32.mrb[7].mxu0 }
 0x248   : > { %v2399_v15 = vadd.f32 %v8059_v20, %v2360_v31  ;;  %v2361_v28 = vmul.f32 %v8054_v39, %v2241_v6 }
 0x249   : > { %v2433_v57 = vmax.f32 %v2401_v27, 0.0  ;;  %v2402_v53 = vadd.f32 %v8059_v20, %v2363_v16 }
 0x24a   : > { %v2431_v2 = vmax.f32 %v2399_v15, 0.0  ;;  %v2400_v50 = vadd.f32 %v8059_v20, %v2361_v28  ;;  %v8082_v22 = vld [vmem:[#allocation3 + $0x30] sm:$0xff] }
 0x24b   : > { %2511 = vst.msk [vmem:[#allocation3 + $0x61] sm:$0xff] %vm1868_vm3, %v2433_v57  ;;  %v2434_v9 = vmax.f32 %v2402_v53, 0.0  ;;  %v2573_v8 = vld [vmem:[#allocation3 + $0x31] sm:$0xff]  ;;  %v2571_v46 = vld [vmem:[#allocation3 + $0x19] sm:$0xff] }
 0x24c   : > { %2509 = vst.msk [vmem:[#allocation3 + $0x49] sm:$0xff] %vm1868_vm3, %v2431_v2  ;;  %v2432_v26 = vmax.f32 %v2400_v50, 0.0  ;;  %v4752_v49 = vpop.f32.mrb[8].mxu0  ;;  %v8085_v55 = vld [vmem:[#allocation3 + $0x38] sm:$0xff] }
 0x24d   : > { %v2574_v4 = vld [vmem:[#allocation3 + $0x39] sm:$0xff]  ;;  %2512 = vst.msk [vmem:[#allocation3 + $0x69] sm:$0xff] %vm1868_vm3, %v2434_v9  ;;  %v2366_v35 = vmul.f32 %v4752_v49, %v8054_v39  ;;  %v2254_v56 = vpop.f32.mrb[9].mxu0  ;;  %v5499_v17 = vpack.i.bf16 %v8085_v55, %v8082_v22  ;;  %v2572_v48 = vld [vmem:[#allocation3 + $0x21] sm:$0xff] }
 0x24e   : > { %v5489_v14 = vpack.i.bf16 %v2574_v4, %v2573_v8  ;;  %2510 = vst.msk [vmem:[#allocation3 + $0x51] sm:$0xff] %vm1868_vm3, %v2432_v26  ;;  %v2364_v23 = vmul.f32 %v8054_v39, %v2254_v56  ;;  %v4753_v59 = vpop.f32.mrb[10].mxu0  ;;  %v2605_v29 = vld [vmem:[#allocation3 + $0x32] sm:$0xff]  ;;  %v2606_v51 = vld [vmem:[#allocation3 + $0x3a] sm:$0xff]  ;;  %v5529_v30 = vpack.i.bf16 %v2572_v48, %v2571_v46  ;;  %v2604_v0 = vld [vmem:[#allocation3 + $0x22] sm:$0xff] }
 0x24f   : > { %v2405_v58 = vadd.f32 %v8059_v20, %v2366_v35  ;;  %v2367_v1 = vmul.f32 %v4753_v59, %v8054_v39  ;;  %5500 = vrot.lane.b32.xlu1 %v5499_v17, %s6175_s25  ;;  %v2257_v45 = vpop.f32.mrb[11].mxu0  ;;  %v5494_v36 = vpack.i.bf16 %v2606_v51, %v2605_v29  ;;  %v2603_v52 = vld [vmem:[#allocation3 + $0x1a] sm:$0xff] }
 0x250   : > { %5490 = vrot.lane.b32.xlu0 %v5489_v14, %s6171_s21  ;;  %v2403_v60 = vadd.f32 %v8059_v20, %v2364_v23  ;;  %v2365_v18 = vmul.f32 %v8054_v39, %v2257_v45  ;;  %v5534_v31 = vpack.i.bf16 %v2604_v0, %v2603_v52  ;;  %v8125_v16 = vld [vmem:[#allocation3 + $0x20] sm:$0xff]  ;;  %v8135_v50 = vld [vmem:[#allocation3 + $0x18] sm:$0xff]  ;;  %v6122_v23 = vld [vmem:[%s9208_s2] sm:$0xff]  }
 0x251   : > { %v2437_v12 = vmax.f32 %v2405_v58, 0.0  ;;  %v2406_v42 = vadd.f32 %v8059_v20, %v2367_v1  ;;  %v5539_v8 = vpack.i.bf16 %v8125_v16, %v8135_v50  ;;  %4774 = vmatprep.subr.bf16.mxu1 %v6122_v23  ;;  %v6124_v0 = vld [vmem:[%s9208_s2 + $0x10] sm:$0xff]  }
 0x252   : > { %v2435_v3 = vmax.f32 %v2403_v60, 0.0  ;;  %v2404_v32 = vadd.f32 %v8059_v20, %v2365_v18  ;;  %v8137_v9 = vld [vmem:[#allocation3 + $0x60] sm:$0xff]  ;;  %4775 = vmatpush3.bf16.msra.mxu1 %v6122_v23 }
 0x253   : > { %2515 = vst.msk [vmem:[#allocation3 + $0x91] sm:$0xff] %vm1868_vm3, %v2437_v12  ;;  %v2438_v10 = vmax.f32 %v2406_v42, 0.0  ;;  %5505 = vrot.lane.b32.xlu1 %v5489_v14, %s6177_s15  ;;  %v2671_v51 = vld [vmem:[#allocation3 + $0x61] sm:$0xff] }
 0x254   : > { %5495 = vrot.lane.b32.xlu0 %v5494_v36, %s6173_s23  ;;  %2513 = vst.msk [vmem:[#allocation3 + $0x79] sm:$0xff] %vm1868_vm3, %v2435_v3  ;;  %v2436_v61 = vmax.f32 %v2404_v32, 0.0  ;;  %v4756_v40 = vpop.f32.mrb[12].mxu0  ;;  %v8127_v6 = vld [vmem:[#allocation3 + $0x68] sm:$0xff] }
 0x255   : > { %2516 = vst.msk [vmem:[#allocation3 + $0x99] sm:$0xff] %vm1868_vm3, %v2438_v10  ;;  %v2370_v24 = vmul.f32 %v4756_v40, %v8054_v39  ;;  %v2270_v37 = vpop.f32.mrb[13].mxu0  ;;  %v8144_v4 = vpack.i.bf16 %v8127_v6, %v8137_v9  ;;  %v2703_v12 = vld [vmem:[#allocation3 + $0x62] sm:$0xff]  ;;  %v2704_v42 = vld [vmem:[#allocation3 + $0x6a] sm:$0xff]  ;;  %v6123_v40 = vld [vmem:[%s9208_s2 + $0x8] sm:$0xff]  }
 0x256   : > { %2514 = vst.msk [vmem:[#allocation3 + $0x81] sm:$0xff] %vm1868_vm3, %v2436_v61  ;;  %v2368_v38 = vmul.f32 %v8054_v39, %v2270_v37  ;;  %v4757_v13 = vpop.f32.mrb[14].mxu0  ;;  %4776 = vmatprep.subr.bf16.mxu1 %v6123_v40  ;;  %v2608_v52 = vld [vmem:[#allocation3 + $0x52] sm:$0xff] }
 0x257   : > { %v2409_v47 = vadd.f32 %v8059_v20, %v2370_v24  ;;  %v2371_v43 = vmul.f32 %v4757_v13, %v8054_v39  ;;  %5510 = vrot.lane.b32.xlu1 %v5494_v36, %s6178_s22  ;;  %v2273_v21 = vpop.f32.mrb[15].mxu0  ;;  %4777 = vmatpush3.bf16.msra.mxu1 %v6123_v40 }
 0x258   : > { %5515 = vrot.lane.b32.xlu0 %v5499_v17, %s6179_s24  ;;  %v2407_v54 = vadd.f32 %v8059_v20, %v2368_v38  ;;  %v2369_v63 = vmul.f32 %v8054_v39, %v2273_v21  ;;  %v2672_v17 = vld [vmem:[#allocation3 + $0x69] sm:$0xff]  ;;  %v8172_v38 = vpack.i.bf16 %v2704_v42, %v2703_v12  ;;  %4778 = vmatprep.subr.bf16.mxu1 %v6124_v0 }
 0x259   : > { %v2441_v33 = vmax.f32 %v2409_v47, 0.0  ;;  %v2410_v34 = vadd.f32 %v8059_v20, %v2371_v43  ;;  %v8157_v45 = vpack.i.bf16 %v2672_v17, %v2671_v51  ;;  %v2576_v47 = vld [vmem:[#allocation3 + $0x51] sm:$0xff] }
 0x25a   : > { %v2439_v41 = vmax.f32 %v2407_v54, 0.0  ;;  %v2408_v44 = vadd.f32 %v8059_v20, %v2369_v63  ;;  %v2575_v63 = vld [vmem:[#allocation3 + $0x49] sm:$0xff] }
 0x25b   : > { %2519 = vst.msk [vmem:[#allocation3 + $0xc1] sm:$0xff] %vm1868_vm3, %v2441_v33  ;;  %v2442_v62 = vmax.f32 %v2410_v34, 0.0  ;;  %5530 = vrot.lane.b32.xlu1 %v5529_v30, %s6171_s21  ;;  %v8182_v34 = vpack.i.bf16 %v2576_v47, %v2575_v63  ;;  %4779 = vmatpush3.bf16.msra.mxu1 %v6124_v0 }
 0x25c   : > { %5520 = vrot.lane.b32.xlu0 %v5489_v14, %s6180_s26  ;;  %2517 = vst.msk [vmem:[#allocation3 + $0xa9] sm:$0xff] %vm1868_vm3, %v2439_v41  ;;  %v2440_v25 = vmax.f32 %v2408_v44, 0.0  ;;  %v4760_v7 = vpop.f32.mrb[16].mxu0  ;;  %v2607_v44 = vld [vmem:[#allocation3 + $0x4a] sm:$0xff] }
 0x25d   : > { %2520 = vst.msk [vmem:[#allocation3 + $0xc9] sm:$0xff] %vm1868_vm3, %v2442_v62  ;;  %v2374_v11 = vmul.f32 %v4760_v7, %v8054_v39  ;;  %v2286_v5 = vpop.f32.mrb[17].mxu0  ;;  %v8255_v63 = vld [vmem:[#allocation3 + $0x80] sm:$0xff] }
 0x25e   : > { %2518 = vst.msk [vmem:[#allocation3 + $0xb1] sm:$0xff] %vm1868_vm3, %v2440_v25  ;;  %v2372_v19 = vmul.f32 %v8054_v39, %v2286_v5  ;;  %v4761_v27 = vpop.f32.mrb[18].mxu0 }
 0x25f   : > { %v2413_v15 = vadd.f32 %v8059_v20, %v2374_v11  ;;  %v2375_v28 = vmul.f32 %v4761_v27, %v8054_v39  ;;  %5535 = vrot.lane.b32.xlu1 %v5534_v31, %s6173_s23  ;;  %v2289_v57 = vpop.f32.mrb[19].mxu0 }
 0x260   : > { %5525 = vrot.lane.b32.xlu0 %v5494_v36, %s6181_s27  ;;  %v2411_v53 = vadd.f32 %v8059_v20, %v2372_v19  ;;  %v2373_v2 = vmul.f32 %v8054_v39, %v2289_v57 }
 0x261   : > { %v2445_v26 = vmax.f32 %v2413_v15, 0.0  ;;  %v2414_v49 = vadd.f32 %v8059_v20, %v2375_v28  ;;  %v5599_v15 = vpack.i.bf16 %v2608_v52, %v2607_v44 }
 0x262   : > { %v2443_v35 = vmax.f32 %v2411_v53, 0.0  ;;  %v2412_v56 = vadd.f32 %v8059_v20, %v2373_v2  ;;  %v8202_v53 = vld [vmem:[#allocation3 + $0x50] sm:$0xff]  ;;  %v2679_v52 = vld [vmem:[#allocation3 + $0xc1] sm:$0xff] }
 0x263   : > { %2523 = vst.msk [vmem:[#allocation3 + $0xf1] sm:$0xff] %vm1868_vm3, %v2445_v26  ;;  %v2446_v14 = vmax.f32 %v2414_v49, 0.0  ;;  %5565 = vrot.lane.b32.xlu1 %v8144_v4, %s6175_s25 }
 0x264   : > { %5540 = vrot.lane.b32.xlu0 %v5539_v8, %s6175_s25  ;;  %2521 = vst.msk [vmem:[#allocation3 + $0xd9] sm:$0xff] %vm1868_vm3, %v2443_v35  ;;  %v2444_v59 = vmax.f32 %v2412_v56, 0.0  ;;  %v4764_v29 = vpop.f32.mrb[20].mxu0  ;;  %v8209_v8 = vld [vmem:[#allocation3 + $0x48] sm:$0xff] }
 0x265   : > { %2524 = vst.msk [vmem:[#allocation3 + $0xf9] sm:$0xff] %vm1868_vm3, %v2446_v14  ;;  %v2378_v58 = vmul.f32 %v4764_v29, %v8054_v39  ;;  %v2302_v1 = vpop.f32.mrb[21].mxu0  ;;  %v5609_v17 = vpack.i.bf16 %v8202_v53, %v8209_v8  ;;  %v2680_v44 = vld [vmem:[#allocation3 + $0xc9] sm:$0xff] }
 0x266   : > { %2522 = vst.msk [vmem:[#allocation3 + $0xe1] sm:$0xff] %vm1868_vm3, %v2444_v59  ;;  %v2376_v60 = vmul.f32 %v8054_v39, %v2302_v1  ;;  %v4765_v18 = vpop.f32.mrb[22].mxu0  ;;  %v6126_v59 = vld [vmem:[%s9208_s2 + $0x20] ss:$0 sps:$4 sm:$0xff]   ;;  %v5729_v0 = vpack.i.bf16 %v2680_v44, %v2679_v52 }
 0x267   : > { %v2417_v36 = vadd.f32 %v8059_v20, %v2378_v58  ;;  %v2379_v3 = vmul.f32 %v4765_v18, %v8054_v39  ;;  %5570 = vrot.lane.b32.xlu1 %v8157_v45, %s6177_s15  ;;  %v2305_v32 = vpop.f32.mrb[23].mxu0  ;;  %v4213_v18 = vsel %vm4211_vm14, %v6126_v59, 0 }
 0x268   : > { %5545 = vrot.lane.b32.xlu0 %v5529_v30, %s6177_s15  ;;  %v2415_v10 = vadd.f32 %v8059_v20, %v2376_v60  ;;  %v2377_v61 = vmul.f32 %v8054_v39, %v2305_v32 }
 0x269   : > { %v2449_v24 = vmax.f32 %v2417_v36, 0.0  ;;  %v2418_v37 = vadd.f32 %v8059_v20, %v2379_v3 }
 0x26a   : > { %v2447_v13 = vmax.f32 %v2415_v10, 0.0  ;;  %v2416_v48 = vadd.f32 %v8059_v20, %v2377_v61  ;;  %v2676_v10 = vld [vmem:[#allocation3 + $0x99] sm:$0xff]  ;;  %v2675_v61 = vld [vmem:[#allocation3 + $0x91] sm:$0xff] }
 0x26b   : > { %2527 = vst.msk [vmem:[#allocation3 + $0x121] sm:$0xff] %vm1868_vm3, %v2449_v24  ;;  %v2450_v43 = vmax.f32 %v2418_v37, 0.0  ;;  %5575 = vrot.lane.b32.xlu1 %v8172_v38, %s6178_s22  ;;  %v5649_v40 = vpack.i.bf16 %v2676_v10, %v2675_v61  ;;  %v2707_v24 = vld [vmem:[#allocation3 + $0x92] sm:$0xff]  ;;  %v2708_v37 = vld [vmem:[#allocation3 + $0x9a] sm:$0xff] }
 0x26c   : > { %5550 = vrot.lane.b32.xlu0 %v5534_v31, %s6178_s22  ;;  %2525 = vst.msk [vmem:[#allocation3 + $0x109] sm:$0xff] %vm1868_vm3, %v2447_v13  ;;  %v2448_v21 = vmax.f32 %v2416_v48, 0.0  ;;  %v4768_v54 = vpop.f32.mrb[24].mxu0  ;;  %v6125_v31 = vld [vmem:[%s9208_s2 + $0x18] sm:$0xff]   ;;  %v2579_v48 = vld [vmem:[#allocation3 + $0x79] sm:$0xff] }
 0x26d   : > { %2528 = vst.msk [vmem:[#allocation3 + $0x129] sm:$0xff] %vm1868_vm3, %v2450_v43  ;;  %v2382_v46 = vmul.f32 %v4768_v54, %v8054_v39  ;;  %v2318_v33 = vpop.f32.mrb[25].mxu0  ;;  %4780 = vmatprep.subr.bf16.mxu1 %v6125_v31  ;;  %v2580_v13 = vld [vmem:[#allocation3 + $0x81] sm:$0xff]  ;;  %v2621_v61 = vld [vmem:[#allocation3 + $0xf2] sm:$0xff] }
 0x26e   : > { %2526 = vst.msk [vmem:[#allocation3 + $0x111] sm:$0xff] %vm1868_vm3, %v2448_v21  ;;  %v2380_v30 = vmul.f32 %v8054_v39, %v2318_v33  ;;  %v4769_v41 = vpop.f32.mrb[26].mxu0  ;;  %4781 = vmatpush3.bf16.msra.mxu1 %v6125_v31  ;;  %v5674_v47 = vpack.i.bf16 %v2580_v13, %v2579_v48  ;;  %v2611_v43 = vld [vmem:[#allocation3 + $0x7a] sm:$0xff]  ;;  %v2612_v21 = vld [vmem:[#allocation3 + $0x82] sm:$0xff] }
 0x26f   : > { %v2421_v62 = vadd.f32 %v8059_v20, %v2382_v46  ;;  %v2383_v25 = vmul.f32 %v4769_v41, %v8054_v39  ;;  %5595 = vrot.lane.b32.xlu1 %v8182_v34, %s6171_s21  ;;  %v2321_v7 = vpop.f32.mrb[27].mxu0  ;;  %4817 = vmatprep.subr.msk.bf16.mxu1 %vm4211_vm14, %v6126_v59  ;;  %v5679_v54 = vpack.i.bf16 %v2612_v21, %v2611_v43  ;;  %v8259_v46 = vld [vmem:[#allocation3 + $0x78] sm:$0xff] }
 0x270   : > { %5555 = vrot.lane.b32.xlu0 %v8157_v45, %s6171_s21  ;;  %v2419_v11 = vadd.f32 %v8059_v20, %v2380_v30  ;;  %v2381_v5 = vmul.f32 %v8054_v39, %v2321_v7  ;;  %v5689_v33 = vpack.i.bf16 %v8255_v63, %v8259_v46  ;;  %v2647_v30 = vld [vmem:[#allocation3 + $0xc0] sm:$0xff] }
 0x271   : > { %v2453_v19 = vmax.f32 %v2421_v62, 0.0  ;;  %v2422_v27 = vadd.f32 %v8059_v20, %v2383_v25  ;;  %v2711_v62 = vld [vmem:[#allocation3 + $0xc2] sm:$0xff]  ;;  %v2712_v25 = vld [vmem:[#allocation3 + $0xca] sm:$0xff]  ;;  %v2684_v59 = vld [vmem:[#allocation3 + $0xf9] sm:$0xff] }
 0x272   : > { %v2451_v28 = vmax.f32 %v2419_v11, 0.0  ;;  %v2420_v57 = vadd.f32 %v8059_v20, %v2381_v5  ;;  %4783 = vmatpush3.bf16.msra.mxu1 %v4213_v18  ;;  %v5734_v7 = vpack.i.bf16 %v2712_v25, %v2711_v62  ;;  %v2584_v11 = vld [vmem:[#allocation3 + $0xb1] sm:$0xff]  ;;  %v2583_v5 = vld [vmem:[#allocation3 + $0xa9] sm:$0xff]  ;;  %v2587_v18 = vld [vmem:[#allocation3 + $0xd9] sm:$0xff] }
 0x273   : > { %2531 = vst.msk [vmem:[#allocation3 + $0x151] sm:$0xff] %vm1868_vm3, %v2453_v19  ;;  %v2454_v2 = vmax.f32 %v2422_v27, 0.0  ;;  %5600 = vrot.lane.b32.xlu1 %v5599_v15, %s6173_s23  ;;  %v5754_v31 = vpack.i.bf16 %v2584_v11, %v2583_v5  ;;  %v2615_v19 = vld [vmem:[#allocation3 + $0xaa] sm:$0xff]  ;;  %v2616_v27 = vld [vmem:[#allocation3 + $0xb2] sm:$0xff] }
 0x274   : > { %5560 = vrot.lane.b32.xlu0 %v8172_v38, %s6173_s23  ;;  %2529 = vst.msk [vmem:[#allocation3 + $0x139] sm:$0xff] %vm1868_vm3, %v2451_v28  ;;  %v2452_v26 = vmax.f32 %v2420_v57, 0.0  ;;  %v4772_v49 = vpop.f32.mrb[28].mxu0  ;;  %v8277_v28 = vld [vmem:[#allocation3 + $0xb0] sm:$0xff]  ;;  %v8281_v57 = vld [vmem:[#allocation3 + $0xa8] sm:$0xff] }
 0x275   : > { %2532 = vst.msk [vmem:[#allocation3 + $0x159] sm:$0xff] %vm1868_vm3, %v2454_v2  ;;  %v2386_v35 = vmul.f32 %v4772_v49, %v8054_v39  ;;  %v2334_v56 = vpop.f32.mrb[29].mxu0  ;;  %v5769_v2 = vpack.i.bf16 %v8277_v28, %v8281_v57  ;;  %v2594_v5 = vld [vmem:[#allocation3 + $0x129] sm:$0xff] }
 0x276   : > { %2530 = vst.msk [vmem:[#allocation3 + $0x141] sm:$0xff] %vm1868_vm3, %v2452_v26  ;;  %v2384_v14 = vmul.f32 %v8054_v39, %v2334_v56  ;;  %v4773_v23 = vpop.f32.mrb[30].mxu0  ;;  %v5481_v26 = vpop.permute.xlu0 %5480  ;;  %v2651_v56 = vld [vmem:[#allocation3 + $0xf0] sm:$0xff] }
 0x277   : > { %v2425_v29 = vadd.f32 %v8059_v20, %v2386_v35  ;;  %v2387_v51 = vmul.f32 %v4773_v23, %v8054_v39  ;;  %5610 = vrot.lane.b32.xlu1 %v5609_v17, %s6179_s24  ;;  %v2337_v58 = vpop.f32.mrb[31].mxu0  ;;  %v2652_v35 = vld [vmem:[#allocation3 + $0xf8] sm:$0xff]  ;;  %v5483_v43 = vunpack.i.h.bf16 %v5481_v26  ;;  %v5482_v21 = vunpack.i.l.bf16 %v5481_v26  ;;  %v2593_v26 = vld [vmem:[#allocation3 + $0x121] sm:$0xff] }
 0x278   : > { %5580 = vrot.lane.b32.xlu0 %v8144_v4, %s6179_s24  ;;  %v2423_v1 = vadd.f32 %v8059_v20, %v2384_v14  ;;  %v2385_v60 = vmul.f32 %v8054_v39, %v2337_v58  ;;  %v8237_v4 = vld [vmem:[#allocation3 + $0x98] sm:$0xff]  ;;  %v8297_v23 = vpack.i.bf16 %v2652_v35, %v2651_v56  ;;  %v2625_v35 = vld [vmem:[#allocation3 + $0x122] sm:$0xff] }
 0x279   : > { %v2457_v12 = vmax.f32 %v2425_v29, 0.0  ;;  %v2426_v42 = vadd.f32 %v8059_v20, %v2387_v51  ;;  %v2683_v29 = vld [vmem:[#allocation3 + $0xf1] sm:$0xff] }
 0x27a   : > { %v2455_v36 = vmax.f32 %v2423_v1, 0.0  ;;  %v2424_v3 = vadd.f32 %v8059_v20, %v2385_v60  ;;  %v8242_v20 = vld [vmem:[#allocation3 + $0x90] sm:$0xff]  ;;  %v8289_v49 = vpop.permute.xlu0 %5485  ;;  %v8306_v1 = vpack.i.bf16 %v2684_v59, %v2683_v29  ;;  %v2588_v60 = vld [vmem:[#allocation3 + $0xe1] sm:$0xff]  ;;  %v8353_v29 = vpack.i.bf16 %v2594_v5, %v2593_v26 }
 0x27b   : > { %2535 = vst.msk [vmem:[#allocation3 + $0x181] sm:$0xff] %vm1868_vm3, %v2457_v12  ;;  %v2458_v32 = vmax.f32 %v2426_v42, 0.0  ;;  %5615 = vrot.lane.b32.xlu1 %v8182_v34, %s6180_s26  ;;  %v5487_v44 = vunpack.i.l.bf16 %v8289_v49  ;;  %v2597_v26 = vld [vmem:[#allocation3 + $0x151] sm:$0xff] }
 0x27c   : > { %5585 = vrot.lane.b32.xlu0 %v8157_v45, %s6180_s26  ;;  %2533 = vst.msk [vmem:[#allocation3 + $0x169] sm:$0xff] %vm1868_vm3, %v2455_v36  ;;  %v2456_v39 = vmax.f32 %v2424_v3, 0.0  ;;  %v5644_v45 = vpack.i.bf16 %v8237_v4, %v8242_v20  ;;  %v5814_v36 = vpack.i.bf16 %v2588_v60, %v2587_v18  ;;  %v2619_v3 = vld [vmem:[#allocation3 + $0xda] sm:$0xff]  ;;  %v2626_v18 = vld [vmem:[#allocation3 + $0x12a] sm:$0xff] }
 0x27d   : > { %2536 = vst.msk [vmem:[#allocation3 + $0x189] sm:$0xff] %vm1868_vm3, %v2458_v32  ;;  %v2620_v32 = vld [vmem:[#allocation3 + $0xe2] sm:$0xff] }
 0x27e   : > { %2534 = vst.msk [vmem:[#allocation3 + $0x171] sm:$0xff] %vm1868_vm3, %v2456_v39  ;;  %v8321_v10 = vpack.i.bf16 %v2620_v32, %v2619_v3  ;;  %v2624_v3 = vld [vmem:[#allocation3 + $0x112] sm:$0xff] }
 0x27f   : > { %5620 = vrot.lane.b32.xlu1 %v5599_v15, %s6181_s27 }
 0x280   : > { %5590 = vrot.lane.b32.xlu0 %v8172_v38, %s6181_s27  ;;  %v5654_v38 = vpack.i.bf16 %v2708_v37, %v2707_v24  ;;  %v2745_v24 = vld [vmem:[#allocation3 + $0xe0] sm:$0xff]  ;;  %v2744_v37 = vld [vmem:[#allocation3 + $0xd8] sm:$0xff] }
 0x283   : > { %5645 = vrot.lane.b32.xlu1 %v5644_v45, %s6175_s25 }
 0x284   : > { %5605 = vrot.lane.b32.xlu0 %v5609_v17, %s6175_s25 }
 0x287   : > { %5650 = vrot.lane.b32.xlu1 %v5649_v40, %s6177_s15 }
 0x288   : > { %5625 = vrot.lane.b32.xlu0 %v8182_v34, %s6177_s15  ;;  %v2648_v34 = vld [vmem:[#allocation3 + $0xc8] sm:$0xff] }
 0x289   : > { %v5724_v41 = vpack.i.bf16 %v2648_v34, %v2647_v30  ;;  %v2537_v34 = vld [vmem:[#allocation3] sm:$0xff]  ;;  %v2538_v30 = vld [vmem:[#allocation3 + $0x8] sm:$0xff] }
 0x28a   : > { %v3851_v52 = vsel %vm1868_vm3, %v2538_v30, %v5483_v43  ;;  %v8369_v30 = vpack.i.bf16 %v2626_v18, %v2625_v35 }
 0x28b   : > { %5655 = vrot.lane.b32.xlu1 %v5654_v38, %s6178_s22 }
 0x28c   : > { %5630 = vrot.lane.b32.xlu0 %v5599_v15, %s6178_s22  ;;  %v5759_v15 = vpack.i.bf16 %v2616_v27, %v2615_v19 }
 0x28f   : > { %5675 = vrot.lane.b32.xlu1 %v5674_v47, %s6171_s21 }
 0x290   : > { %5635 = vrot.lane.b32.xlu0 %v5649_v40, %s6171_s21 }
 0x293   : > { %5680 = vrot.lane.b32.xlu1 %v5679_v54, %s6173_s23 }
 0x294   : > { %5640 = vrot.lane.b32.xlu0 %v5654_v38, %s6173_s23 }
 0x297   : > { %5690 = vrot.lane.b32.xlu1 %v5689_v33, %s6179_s24 }
 0x298   : > { %5660 = vrot.lane.b32.xlu0 %v5644_v45, %s6179_s24 }
 0x29b   : > { %5695 = vrot.lane.b32.xlu1 %v5674_v47, %s6180_s26 }
 0x29c   : > { %5665 = vrot.lane.b32.xlu0 %v5649_v40, %s6180_s26  ;;  %v2622_v40 = vld [vmem:[#allocation3 + $0xfa] sm:$0xff] }
 0x29d   : > { %v8331_v48 = vpack.i.bf16 %v2622_v40, %v2621_v61 }
 0x29f   : > { %5700 = vrot.lane.b32.xlu1 %v5679_v54, %s6181_s27 }
 0x2a0   : > { %5670 = vrot.lane.b32.xlu0 %v5654_v38, %s6181_s27 }
 0x2a3   : > { %5725 = vrot.lane.b32.xlu1 %v5724_v41, %s6175_s25 }
 0x2a4   : > { %5685 = vrot.lane.b32.xlu0 %v5689_v33, %s6175_s25 }
 0x2a7   : > { %5730 = vrot.lane.b32.xlu1 %v5729_v0, %s6177_s15 }
 0x2a8   : > { %5705 = vrot.lane.b32.xlu0 %v5674_v47, %s6177_s15  ;;  %v5829_v47 = vpack.i.bf16 %v2745_v24, %v2744_v37 }
 0x2ab   : > { %5735 = vrot.lane.b32.xlu1 %v5734_v7, %s6178_s22 }
 0x2ac   : > { %5710 = vrot.lane.b32.xlu0 %v5679_v54, %s6178_s22 }
 0x2af   : > { %5755 = vrot.lane.b32.xlu1 %v5754_v31, %s6171_s21 }
 0x2b0   : > { %5715 = vrot.lane.b32.xlu0 %v5729_v0, %s6171_s21 }
 0x2b3   : > { %5760 = vrot.lane.b32.xlu1 %v5759_v15, %s6173_s23 }
 0x2b4   : > { %5720 = vrot.lane.b32.xlu0 %v5734_v7, %s6173_s23 }
 0x2b7   : > { %5770 = vrot.lane.b32.xlu1 %v5769_v2, %s6179_s24 }
 0x2b8   : > { %5740 = vrot.lane.b32.xlu0 %v5724_v41, %s6179_s24  ;;  %v5488_v41 = vunpack.i.h.bf16 %v8289_v49  ;;  %v2591_v49 = vld [vmem:[#allocation3 + $0x109] sm:$0xff] }
 0x2bb   : > { %5775 = vrot.lane.b32.xlu1 %v5754_v31, %s6180_s26 }
 0x2bc   : > { %5745 = vrot.lane.b32.xlu0 %v5729_v0, %s6180_s26  ;;  %v3850_v0 = vsel %vm1868_vm3, %v2537_v34, %v5482_v21 }
 0x2bf   : > { %5780 = vrot.lane.b32.xlu1 %v5759_v15, %s6181_s27 }
 0x2c0   : > { %5750 = vrot.lane.b32.xlu0 %v5734_v7, %s6181_s27 }
 0x2c1   : > { %v8293_v17 = vpop.permute.xlu1 %5500 }
 0x2c2   : > { %v8295_v14 = vpop.permute.xlu0 %5490 }
 0x2c3   : > { %5805 = vrot.lane.b32.xlu1 %v8297_v23, %s6175_s25 }
 0x2c4   : > { %5765 = vrot.lane.b32.xlu0 %v5769_v2, %s6175_s25  ;;  %v3883_v2 = vsel %vm1934_vm6, %v3851_v52, %v5488_v41 }
 0x2c5   : > { %v8302_v51 = vpop.permute.xlu1 %5505 }
 0x2c6   : > { %v8304_v58 = vpop.permute.xlu0 %5495 }
 0x2c7   : > { %5810 = vrot.lane.b32.xlu1 %v8306_v1, %s6177_s15 }
 0x2c8   : > { %5785 = vrot.lane.b32.xlu0 %v5754_v31, %s6177_s15  ;;  %v2592_v31 = vld [vmem:[#allocation3 + $0x111] sm:$0xff] }
 0x2c9   : > { %v8311_v12 = vpop.permute.xlu1 %5510  ;;  %v8355_v60 = vpack.i.bf16 %v2592_v31, %v2591_v49  ;;  %v2598_v31 = vld [vmem:[#allocation3 + $0x159] sm:$0xff] }
 0x2ca   : > { %v8313_v42 = vpop.permute.xlu0 %5515  ;;  %v8399_v18 = vpack.i.bf16 %v2598_v31, %v2597_v26  ;;  %v2628_v26 = vld [vmem:[#allocation3 + $0x142] sm:$0xff] }
 0x2cb   : > { %5815 = vrot.lane.b32.xlu1 %v5814_v36, %s6171_s21  ;;  %v5518_v37 = vunpack.i.h.bf16 %v8313_v42 }
 0x2cc   : > { %5790 = vrot.lane.b32.xlu0 %v5759_v15, %s6178_s22  ;;  %v3882_v15 = vsel %vm1934_vm6, %v3850_v0, %v5487_v44 }
 0x2cd   : > { %v8319_v45 = vpop.permute.xlu1 %5530 }
 0x2ce   : > { %v8317_v39 = vpop.permute.xlu0 %5520  ;;  %v5532_v5 = vunpack.i.l.bf16 %v8319_v45 }
 0x2cf   : > { %5820 = vrot.lane.b32.xlu1 %v8321_v10, %s6173_s23  ;;  %v5522_v44 = vunpack.i.l.bf16 %v8317_v39 }
 0x2d0   : > { %5795 = vrot.lane.b32.xlu0 %v8306_v1, %s6171_s21 }
 0x2d1   : > { %v8329_v13 = vpop.permute.xlu1 %5535 }
 0x2d2   : > { %v8327_v38 = vpop.permute.xlu0 %5525 }
 0x2d3   : > { %5830 = vrot.lane.b32.xlu1 %v5829_v47, %s6179_s24 }
 0x2d4   : > { %5800 = vrot.lane.b32.xlu0 %v8331_v48, %s6173_s23 }
 0x2d5   : > { %v8336_v33 = vpop.permute.xlu1 %5565 }
 0x2d6   : > { %v5541_v54 = vpop.permute.xlu0 %5540 }
 0x2d7   : > { %5835 = vrot.lane.b32.xlu1 %v5814_v36, %s6180_s26  ;;  %v5543_v7 = vunpack.i.h.bf16 %v5541_v54  ;;  %v5542_v11 = vunpack.i.l.bf16 %v5541_v54 }
 0x2d8   : > { %5825 = vrot.lane.b32.xlu0 %v5829_v47, %s6175_s25  ;;  %v5517_v47 = vunpack.i.l.bf16 %v8313_v42  ;;  %v5523_v42 = vunpack.i.h.bf16 %v8317_v39 }
 0x2d9   : > { %v8344_v25 = vpop.permute.xlu1 %5570  ;;  %v3915_v32 = vsel %vm2000_vm8, %v3883_v2, %v5543_v7  ;;  %v3914_v61 = vsel %vm2000_vm8, %v3882_v15, %v5542_v11  ;;  %v5533_v11 = vunpack.i.h.bf16 %v8319_v45  ;;  %v5538_v2 = vunpack.i.h.bf16 %v8329_v13 }
 0x2da   : > { %v5546_v62 = vpop.permute.xlu0 %5545  ;;  %v5537_v45 = vunpack.i.l.bf16 %v8329_v13 }
 0x2db   : > { %v5548_v19 = vunpack.i.h.bf16 %v5546_v62  ;;  %v5547_v27 = vunpack.i.l.bf16 %v5546_v62  ;;  %5840 = vrot.lane.b32.xlu1 %v8321_v10, %s6181_s27  ;;  %v3853_v13 = vsel %vm1868_vm3, %v8125_v16, %v5533_v11  ;;  %v2595_v11 = vld [vmem:[#allocation3 + $0x139] sm:$0xff] }
 0x2dc   : > { %5845 = vrot.lane.b32.xlu0 %v5814_v36, %s6177_s15  ;;  %v2623_v36 = vld [vmem:[#allocation3 + $0x10a] sm:$0xff] }
 0x2dd   : > { %v8351_v59 = vpop.permute.xlu1 %5575  ;;  %v3946_v43 = vsel %vm2066_vm10, %v3914_v61, %v5547_v27  ;;  %v3947_v21 = vsel %vm2066_vm10, %v3915_v32, %v5548_v19  ;;  %v8371_v41 = vpack.i.bf16 %v2624_v3, %v2623_v36  ;;  %v5528_v19 = vunpack.i.h.bf16 %v8327_v38  ;;  %v2749_v36 = vld [vmem:[#allocation3 + $0x110] sm:$0xff]  ;;  %v2630_v32 = vld [vmem:[#allocation3 + $0x15a] sm:$0xff] }
 0x2de   : > { %v5551_v56 = vpop.permute.xlu0 %5550  ;;  %v5527_v27 = vunpack.i.l.bf16 %v8327_v38  ;;  %v2629_v3 = vld [vmem:[#allocation3 + $0x152] sm:$0xff]  ;;  %v3852_v61 = vsel %vm1868_vm3, %v8135_v50, %v5532_v5 }
 0x2df   : > { %v5553_v40 = vunpack.i.h.bf16 %v5551_v56  ;;  %v5552_v24 = vunpack.i.l.bf16 %v5551_v56  ;;  %5860 = vrot.lane.b32.xlu1 %v8355_v60, %s6171_s21 }
 0x2e0   : > { %5850 = vrot.lane.b32.xlu0 %v8353_v29, %s6171_s21 }
 0x2e1   : > { %v3979_v54 = vsel %vm3978_vm15, %v3946_v43, %v5552_v24  ;;  %v3980_v34 = vsel %vm3978_vm15, %v3947_v21, %v5553_v40  ;;  %v8377_v0 = vpop.permute.xlu1 %5595  ;;  %v3884_v24 = vsel %vm1934_vm6, %v3852_v61, %v5537_v45  ;;  %v5503_v43 = vunpack.i.h.bf16 %v8293_v17  ;;  %v2627_v45 = vld [vmem:[#allocation3 + $0x13a] sm:$0xff] }
 0x2e2   : > { %v8375_v52 = vpop.permute.xlu0 %5555  ;;  %v4012_v62 = vsel %vm4011_vm1, %v3979_v54, %v5517_v47  ;;  %v4013_v7 = vsel %vm4011_vm1, %v3980_v34, %v5518_v37  ;;  %v3885_v37 = vsel %vm1934_vm6, %v3853_v13, %v5538_v2  ;;  %v2748_v47 = vld [vmem:[#allocation3 + $0x108] sm:$0xff]  ;;  %v5502_v21 = vunpack.i.l.bf16 %v8293_v17 }
 0x2e3   : > { %5865 = vrot.lane.b32.xlu1 %v8371_v41, %s6173_s23  ;;  %v4045_v39 = vsel %vm4044_vm2, %v4012_v62, %v5522_v44  ;;  %v4046_v15 = vsel %vm4044_vm2, %v4013_v7, %v5523_v42  ;;  %v8416_v54 = vpack.i.bf16 %v2749_v36, %v2748_v47  ;;  %v8418_v34 = vpack.i.bf16 %v2630_v32, %v2629_v3  ;;  %v2596_v42 = vld [vmem:[#allocation3 + $0x141] sm:$0xff] }
 0x2e4   : > { %5855 = vrot.lane.b32.xlu0 %v8369_v30, %s6173_s23  ;;  %v4078_v38 = vsel %vm4077_vm4, %v4045_v39, %v5527_v27  ;;  %v4079_v56 = vsel %vm4077_vm4, %v4046_v15, %v5528_v19  ;;  %v3916_v44 = vsel %vm2000_vm8, %v3884_v24, %v5502_v21  ;;  %v3917_v62 = vsel %vm2000_vm8, %v3885_v37, %v5503_v43  ;;  %v2600_v21 = vld [vmem:[#allocation3 + $0x171] sm:$0xff] }
 0x2e5   : > { %v8395_v35 = vpop.permute.xlu1 %5600  ;;  %v4110_v40 = vpack.c.bf16 %v4079_v56, %v4078_v38  ;;  %v5508_v17 = vunpack.i.h.bf16 %v8302_v51  ;;  %v5507_v7 = vunpack.i.l.bf16 %v8302_v51  ;;  %v8430_v19 = vpack.i.bf16 %v2596_v42, %v2595_v11 }
 0x2e6   : > { %v8393_v49 = vpop.permute.xlu0 %5560  ;;  %v5513_v38 = vunpack.i.h.bf16 %v8311_v12  ;;  %v5512_v56 = vunpack.i.l.bf16 %v8311_v12 }
 0x2e7   : > { %5885 = vrot.lane.b32.xlu1 %v8331_v48, %s6178_s22  ;;  %4784 = vmatprep.mubr.msk.bf16.mxu1 %vm4162_vm5, %v4110_v40  ;;  %v3948_v27 = vsel %vm2066_vm10, %v3916_v44, %v5507_v7  ;;  %v3949_v39 = vsel %vm2066_vm10, %v3917_v62, %v5508_v17  ;;  %v8444_v40 = vpack.i.bf16 %v2628_v26, %v2627_v45  ;;  %v2599_v7 = vld [vmem:[#allocation3 + $0x169] sm:$0xff] }
 0x2e8   : > { %5870 = vrot.lane.b32.xlu0 %v8399_v18, %s6171_s21  ;;  %v3981_v3 = vsel %vm3978_vm15, %v3948_v27, %v5512_v56  ;;  %v3982_v32 = vsel %vm3978_vm15, %v3949_v39, %v5513_v38  ;;  %v8458_v11 = vpack.i.bf16 %v2600_v21, %v2599_v7  ;;  %v5493_v27 = vunpack.i.h.bf16 %v8295_v14 }
 0x2e9   : > { %v5611_v16 = vpop.permute.xlu1 %5610  ;;  %v5492_v39 = vunpack.i.l.bf16 %v8295_v14 }
 0x2ea   : > { %v8414_v50 = vpop.permute.xlu0 %5580  ;;  %v5613_v15 = vunpack.i.h.bf16 %v5611_v16  ;;  %v5612_v2 = vunpack.i.l.bf16 %v5611_v16 }
 0x2eb   : > { %5895 = vrot.lane.b32.xlu1 %v8416_v54, %s6179_s24  ;;  %v3854_v14 = vsel %vm1868_vm3, %v8082_v22, %v5492_v39  ;;  %v5583_v22 = vunpack.i.h.bf16 %v8414_v50 }
 0x2ec   : > { %5875 = vrot.lane.b32.xlu0 %v8418_v34, %s6173_s23  ;;  %v4015_v24 = vsel %vm4011_vm1, %v3982_v32, %v5613_v15  ;;  %v4014_v12 = vsel %vm4011_vm1, %v3981_v3, %v5612_v2  ;;  %v5498_v15 = vunpack.i.h.bf16 %v8304_v58  ;;  %v5497_v2 = vunpack.i.l.bf16 %v8304_v58 }
 0x2ed   : > { %v5616_v31 = vpop.permute.xlu1 %5615  ;;  %v3855_v3 = vsel %vm1868_vm3, %v8085_v55, %v5493_v27  ;;  %v5582_v55 = vunpack.i.l.bf16 %v8414_v50 }
 0x2ee   : > { %v8428_v5 = vpop.permute.xlu0 %5585  ;;  %v5618_v36 = vunpack.i.h.bf16 %v5616_v31  ;;  %v5617_v51 = vunpack.i.l.bf16 %v5616_v31  ;;  %v2632_v31 = vld [vmem:[#allocation3 + $0x172] sm:$0xff]  ;;  %v3886_v58 = vsel %vm1934_vm6, %v3854_v14, %v5497_v2  ;;  %v3887_v32 = vsel %vm1934_vm6, %v3855_v3, %v5498_v15  ;;  %v8513_v2 = vld [vmem:[#allocation3 + $0x128] sm:$0xff] }
 0x2ef   : > { %5905 = vrot.lane.b32.xlu1 %v8430_v19, %s6171_s21 }
 0x2f0   : > { %5880 = vrot.lane.b32.xlu0 %v8321_v10, %s6178_s22  ;;  %v4047_v10 = vsel %vm4044_vm2, %v4014_v12, %v5617_v51  ;;  %v4048_v43 = vsel %vm4044_vm2, %v4015_v24, %v5618_v36 }
 0x2f1   : > { %v5621_v13 = vpop.permute.xlu1 %5620 }
 0x2f2   : > { %v8442_v61 = vpop.permute.xlu0 %5590  ;;  %v5623_v37 = vunpack.i.h.bf16 %v5621_v13  ;;  %v5622_v47 = vunpack.i.l.bf16 %v5621_v13 }
 0x2f3   : > { %5910 = vrot.lane.b32.xlu1 %v8444_v40, %s6173_s23  ;;  %v5593_v27 = vunpack.i.h.bf16 %v8442_v61  ;;  %v5592_v39 = vunpack.i.l.bf16 %v8442_v61 }
 0x2f4   : > { %5890 = vrot.lane.b32.xlu0 %v8297_v23, %s6179_s24  ;;  %v4080_v16 = vsel %vm4077_vm4, %v4047_v10, %v5622_v47  ;;  %v4081_v42 = vsel %vm4077_vm4, %v4048_v43, %v5623_v37  ;;  %v2631_v23 = vld [vmem:[#allocation3 + $0x16a] sm:$0xff] }
 0x2f5   : > { %v8456_v62 = vpop.permute.xlu1 %5645  ;;  %v4111_v17 = vpack.c.bf16 %v4081_v42, %v4080_v16  ;;  %v8471_v36 = vpack.i.bf16 %v2632_v31, %v2631_v23  ;;  %v5588_v42 = vunpack.i.h.bf16 %v8428_v5  ;;  %v5597_v31 = vunpack.i.l.bf16 %v8377_v0 }
 0x2f6   : > { %v5606_v44 = vpop.permute.xlu0 %5605 }
 0x2f7   : > { %4785 = vmatmul.mubr.msk.bf16.vlgmr.msra.gmra.mrb[0].mxu1 %vm4162_vm5, %v4111_v17  ;;  %5915 = vrot.lane.b32.xlu1 %v8458_v11, %s6171_s21  ;;  %v5608_v38 = vunpack.i.h.bf16 %v5606_v44  ;;  %v5607_v56 = vunpack.i.l.bf16 %v5606_v44  ;;  %v5587_v44 = vunpack.i.l.bf16 %v8428_v5  ;;  %v3856_v14 = vsel %vm1868_vm3, %v8209_v8, %v5597_v31 }
 0x2f8   : > { %5900 = vrot.lane.b32.xlu0 %v8306_v1, %s6180_s26 }
 0x2f9   : > { %v8469_v26 = vpop.permute.xlu1 %5650  ;;  %v3919_v12 = vsel %vm2000_vm8, %v3887_v32, %v5608_v38  ;;  %v5602_v38 = vunpack.i.l.bf16 %v8395_v35 }
 0x2fa   : > { %v5626_v45 = vpop.permute.xlu0 %5625 }
 0x2fb   : > { %v5628_v1 = vunpack.i.h.bf16 %v5626_v45  ;;  %v5627_v51 = vunpack.i.l.bf16 %v5626_v45  ;;  %5920 = vrot.lane.b32.xlu1 %v8471_v36, %s6173_s23  ;;  %v5603_v45 = vunpack.i.h.bf16 %v8395_v35 }
 0x2fc   : > { %5930 = vrot.lane.b32.xlu0 %v8331_v48, %s6181_s27  ;;  %v3918_v48 = vsel %vm2000_vm8, %v3886_v58, %v5607_v56  ;;  %v3888_v58 = vsel %vm1934_vm6, %v3856_v14, %v5602_v38 }
 0x2fd   : > { %v8483_v24 = vpop.permute.xlu1 %5655  ;;  %v3950_v10 = vsel %vm2066_vm10, %v3918_v48, %v5627_v51  ;;  %v3951_v43 = vsel %vm2066_vm10, %v3919_v12, %v5628_v1  ;;  %v8525_v1 = vld [vmem:[#allocation3 + $0x120] sm:$0xff]  ;;  %v5567_v12 = vunpack.i.l.bf16 %v8336_v33 }
 0x2fe   : > { %v5631_v13 = vpop.permute.xlu0 %5630  ;;  %v5944_v51 = vpack.i.bf16 %v8513_v2, %v8525_v1 }
 0x2ff   : > { %v5633_v37 = vunpack.i.h.bf16 %v5631_v13  ;;  %v5632_v47 = vunpack.i.l.bf16 %v5631_v13  ;;  %5925 = vrot.lane.b32.xlu1 %v8355_v60, %s6180_s26  ;;  %v5568_v13 = vunpack.i.h.bf16 %v8336_v33 }
 0x300   : > { %5940 = vrot.lane.b32.xlu0 %v8416_v54, %s6175_s25  ;;  %v5598_v54 = vunpack.i.h.bf16 %v8377_v0 }
 0x301   : > { %v3983_v21 = vsel %vm3978_vm15, %v3950_v10, %v5632_v47  ;;  %v3984_v16 = vsel %vm3978_vm15, %v3951_v43, %v5633_v37  ;;  %v8503_v23 = vpop.permute.xlu1 %5675  ;;  %v5572_v47 = vunpack.i.l.bf16 %v8344_v25 }
 0x302   : > { %v4016_v50 = vsel %vm4011_vm1, %v3983_v21, %v5582_v55  ;;  %v4017_v17 = vsel %vm4011_vm1, %v3984_v16, %v5583_v22  ;;  %v8501_v7 = vpop.permute.xlu0 %5635  ;;  %v3857_v35 = vsel %vm1868_vm3, %v8202_v53, %v5598_v54  ;;  %v3920_v53 = vsel %vm2000_vm8, %v3888_v58, %v5567_v12  ;;  %v8554_v16 = vld [vmem:[#allocation3 + $0x140] sm:$0xff] }
 0x303   : > { %v4049_v5 = vsel %vm4044_vm2, %v4016_v50, %v5587_v44  ;;  %v4050_v15 = vsel %vm4044_vm2, %v4017_v17, %v5588_v42  ;;  %5935 = vrot.lane.b32.xlu1 %v8371_v41, %s6181_s27  ;;  %v3889_v32 = vsel %vm1934_vm6, %v3857_v35, %v5603_v45  ;;  %v3952_v55 = vsel %vm2066_vm10, %v3920_v53, %v5572_v47  ;;  %v8562_v17 = vld [vmem:[#allocation3 + $0x138] sm:$0xff] }
 0x304   : > { %5950 = vrot.lane.b32.xlu0 %v8355_v60, %s6177_s15  ;;  %v4082_v61 = vsel %vm4077_vm4, %v4049_v5, %v5592_v39  ;;  %v4083_v60 = vsel %vm4077_vm4, %v4050_v15, %v5593_v27  ;;  %v3921_v37 = vsel %vm2000_vm8, %v3889_v32, %v5568_v13  ;;  %v5578_v42 = vunpack.i.h.bf16 %v8351_v59 }
 0x305   : > { %v8521_v56 = vpop.permute.xlu1 %5680  ;;  %v4112_v3 = vpack.c.bf16 %v4083_v60, %v4082_v61  ;;  %v5577_v44 = vunpack.i.l.bf16 %v8351_v59  ;;  %v5974_v59 = vpack.i.bf16 %v8554_v16, %v8562_v17  ;;  %v5558_v58 = vunpack.i.h.bf16 %v8375_v52 }
 0x306   : > { %v8519_v0 = vpop.permute.xlu0 %5640  ;;  %v5557_v32 = vunpack.i.l.bf16 %v8375_v52  ;;  %v5562_v13 = vunpack.i.l.bf16 %v8393_v49 }
 0x307   : > { %5945 = vrot.lane.b32.xlu1 %v5944_v51, %s6175_s25  ;;  %4788 = vmatprep.mubr.msk.bf16.mxu1 %vm4162_vm5, %v4112_v3  ;;  %v3985_v54 = vsel %vm3978_vm15, %v3952_v55, %v5577_v44  ;;  %v3859_v55 = vsel %vm1868_vm3, %v8127_v6, %v5558_v58 }
 0x308   : > { %5960 = vrot.lane.b32.xlu0 %v8371_v41, %s6178_s22  ;;  %v5573_v41 = vunpack.i.h.bf16 %v8344_v25  ;;  %v3858_v52 = vsel %vm1868_vm3, %v8137_v9, %v5557_v32 }
 0x309   : > { %v5691_v48 = vpop.permute.xlu1 %5690 }
 0x30a   : > { %v8541_v8 = vpop.permute.xlu0 %5660  ;;  %v3953_v10 = vsel %vm2066_vm10, %v3921_v37, %v5573_v41  ;;  %v5693_v43 = vunpack.i.h.bf16 %v5691_v48  ;;  %v5692_v21 = vunpack.i.l.bf16 %v5691_v48  ;;  %v8591_v41 = vld [vmem:[#allocation3 + $0x158] sm:$0xff] }
 0x30b   : > { %5955 = vrot.lane.b32.xlu1 %v8353_v29, %s6177_s15  ;;  %v3986_v31 = vsel %vm3978_vm15, %v3953_v10, %v5578_v42  ;;  %v3890_v10 = vsel %vm1934_vm6, %v3858_v52, %v5562_v13  ;;  %v5682_v13 = vunpack.i.l.bf16 %v8521_v56 }
 0x30c   : > { %5970 = vrot.lane.b32.xlu0 %v5944_v51, %s6179_s24  ;;  %v4019_v5 = vsel %vm4011_vm1, %v3986_v31, %v5693_v43  ;;  %v4018_v15 = vsel %vm4011_vm1, %v3985_v54, %v5692_v21  ;;  %v5662_v54 = vunpack.i.l.bf16 %v8541_v8 }
 0x30d   : > { %v5696_v33 = vpop.permute.xlu1 %5695 }
 0x30e   : > { %v8550_v22 = vpop.permute.xlu0 %5665  ;;  %v5698_v50 = vunpack.i.h.bf16 %v5696_v33  ;;  %v5697_v25 = vunpack.i.l.bf16 %v5696_v33 }
 0x30f   : > { %5965 = vrot.lane.b32.xlu1 %v8369_v30, %s6178_s22 }
 0x310   : > { %5980 = vrot.lane.b32.xlu0 %v8353_v29, %s6180_s26  ;;  %v4051_v38 = vsel %vm4044_vm2, %v4018_v15, %v5697_v25  ;;  %v4052_v61 = vsel %vm4044_vm2, %v4019_v5, %v5698_v50  ;;  %v5663_v25 = vunpack.i.h.bf16 %v8541_v8  ;;  %v5668_v15 = vunpack.i.h.bf16 %v8550_v22 }
 0x311   : > { %v5701_v39 = vpop.permute.xlu1 %5700 }
 0x312   : > { %v8566_v27 = vpop.permute.xlu0 %5670  ;;  %v5703_v29 = vunpack.i.h.bf16 %v5701_v39  ;;  %v5702_v45 = vunpack.i.l.bf16 %v5701_v39 }
 0x313   : > { %5975 = vrot.lane.b32.xlu1 %v5974_v59, %s6179_s24 }
 0x314   : > { %5990 = vrot.lane.b32.xlu0 %v8369_v30, %s6181_s27  ;;  %v4084_v60 = vsel %vm4077_vm4, %v4051_v38, %v5702_v45  ;;  %v4085_v51 = vsel %vm4077_vm4, %v4052_v61, %v5703_v29  ;;  %v5563_v30 = vunpack.i.h.bf16 %v8393_v49  ;;  %v8601_v49 = vld [vmem:[#allocation3 + $0x150] sm:$0xff]  ;;  %v5667_v29 = vunpack.i.l.bf16 %v8550_v22 }
 0x315   : > { %v4113_v14 = vpack.c.bf16 %v4085_v51, %v4084_v60  ;;  %v8579_v3 = vpop.permute.xlu1 %5725  ;;  %v5678_v60 = vunpack.i.h.bf16 %v8503_v23  ;;  %v5673_v51 = vunpack.i.h.bf16 %v8566_v27 }
 0x316   : > { %v5686_v35 = vpop.permute.xlu0 %5685  ;;  %v3891_v43 = vsel %vm1934_vm6, %v3859_v55, %v5563_v30  ;;  %v5683_v30 = vunpack.i.h.bf16 %v8521_v56 }
 0x317   : > { %4789 = vmatmul.mubr.msk.bf16.gmra.mrb[4].mxu1 %vm4162_vm5, %v4113_v14  ;;  %5985 = vrot.lane.b32.xlu1 %v8430_v19, %s6180_s26  ;;  %v5688_v53 = vunpack.i.h.bf16 %v5686_v35  ;;  %v5687_v37 = vunpack.i.l.bf16 %v5686_v35  ;;  %v5672_v14 = vunpack.i.l.bf16 %v8566_v27  ;;  %v3861_v56 = vsel %vm1868_vm3, %v8255_v63, %v5678_v60 }
 0x318   : > { %6000 = vrot.lane.b32.xlu0 %v5974_v59, %s6175_s25  ;;  %v5648_v63 = vunpack.i.h.bf16 %v8456_v62 }
 0x319   : > { %v8589_v48 = vpop.permute.xlu1 %5730  ;;  %v3923_v9 = vsel %vm2000_vm8, %v3891_v43, %v5688_v53  ;;  %v3922_v44 = vsel %vm2000_vm8, %v3890_v10, %v5687_v37 }
 0x31a   : > { %v5706_v12 = vpop.permute.xlu0 %5705 }
 0x31b   : > { %v5708_v47 = vunpack.i.h.bf16 %v5706_v12  ;;  %v5707_v33 = vunpack.i.l.bf16 %v5706_v12  ;;  %5995 = vrot.lane.b32.xlu1 %v8444_v40, %s6181_s27 }
 0x31c   : > { %6010 = vrot.lane.b32.xlu0 %v8430_v19, %s6177_s15  ;;  %v6004_v19 = vpack.i.bf16 %v8591_v41, %v8601_v49 }
 0x31d   : > { %v8605_v42 = vpop.permute.xlu1 %5735  ;;  %v3954_v31 = vsel %vm2066_vm10, %v3922_v44, %v5707_v33  ;;  %v3955_v39 = vsel %vm2066_vm10, %v3923_v9, %v5708_v47  ;;  %v2553_v47 = vld [vmem:[#allocation3 + $0xc0] sm:$0xff]  ;;  %v2554_v33 = vld [vmem:[#allocation3 + $0xc8] sm:$0xff] }
 0x31e   : > { %v5711_v21 = vpop.permute.xlu0 %5710 }
 0x31f   : > { %v5713_v6 = vunpack.i.h.bf16 %v5711_v21  ;;  %v5712_v50 = vunpack.i.l.bf16 %v5711_v21  ;;  %6005 = vrot.lane.b32.xlu1 %v6004_v19, %s6175_s25 }
 0x320   : > { %6020 = vrot.lane.b32.xlu0 %v8444_v40, %s6178_s22  ;;  %v5677_v40 = vunpack.i.l.bf16 %v8503_v23 }
 0x321   : > { %v3987_v59 = vsel %vm3978_vm15, %v3954_v31, %v5712_v50  ;;  %v3988_v5 = vsel %vm3978_vm15, %v3955_v39, %v5713_v6  ;;  %v8624_v61 = vpop.permute.xlu1 %5755  ;;  %v5647_v50 = vunpack.i.l.bf16 %v8456_v62  ;;  %v5652_v62 = vunpack.i.l.bf16 %v8469_v26 }
 0x322   : > { %v4020_v45 = vsel %vm4011_vm1, %v3987_v59, %v5662_v54  ;;  %v4021_v8 = vsel %vm4011_vm1, %v3988_v5, %v5663_v25  ;;  %v5716_v38 = vpop.permute.xlu0 %5715  ;;  %v3860_v37 = vsel %vm1868_vm3, %v8259_v46, %v5677_v40  ;;  %v3893_v46 = vsel %vm1934_vm6, %v3861_v56, %v5683_v30  ;;  %v8666_v54 = vld [vmem:[#allocation3 + $0x168] sm:$0xff]  ;;  %v2663_v56 = vld [vmem:[#allocation3 + $0x180] sm:$0xff] }
 0x323   : > { %v5718_v35 = vunpack.i.h.bf16 %v5716_v38  ;;  %v5717_v58 = vunpack.i.l.bf16 %v5716_v38  ;;  %v4053_v22 = vsel %vm4044_vm2, %v4020_v45, %v5667_v29  ;;  %v4054_v32 = vsel %vm4044_vm2, %v4021_v8, %v5668_v15  ;;  %6015 = vrot.lane.b32.xlu1 %v8399_v18, %s6177_s15 }
 0x324   : > { %6030 = vrot.lane.b32.xlu0 %v6004_v19, %s6179_s24  ;;  %v4086_v27 = vsel %vm4077_vm4, %v4053_v22, %v5672_v14  ;;  %v4087_v53 = vsel %vm4077_vm4, %v4054_v32, %v5673_v51  ;;  %v8649_v19 = vld [vmem:[#allocation3 + $0x170] sm:$0xff]  ;;  %v3892_v9 = vsel %vm1934_vm6, %v3860_v37, %v5682_v13  ;;  %v3925_v59 = vsel %vm2000_vm8, %v3893_v46, %v5648_v63  ;;  %v2727_v46 = vld [vmem:[#allocation3 + $0x182] sm:$0xff] }
 0x325   : > { %v8637_v12 = vpop.permute.xlu1 %5760  ;;  %v3866_v10 = vsel %vm1868_vm3, %v2553_v47, %v5717_v58  ;;  %v3867_v43 = vsel %vm1868_vm3, %v2554_v33, %v5718_v35  ;;  %v4114_v21 = vpack.c.bf16 %v4087_v53, %v4086_v27  ;;  %v6034_v31 = vpack.i.bf16 %v8649_v19, %v8666_v54  ;;  %v2664_v53 = vld [vmem:[#allocation3 + $0x188] sm:$0xff] }
 0x326   : > { %v5721_v23 = vpop.permute.xlu0 %5720  ;;  %v3924_v39 = vsel %vm2000_vm8, %v3892_v9, %v5647_v50  ;;  %v5653_v5 = vunpack.i.h.bf16 %v8469_v26  ;;  %v5658_v40 = vunpack.i.h.bf16 %v8483_v24  ;;  %v5657_v51 = vunpack.i.l.bf16 %v8483_v24  ;;  %v2695_v9 = vld [vmem:[#allocation3 + $0x181] sm:$0xff] }
 0x327   : > { %v5723_v52 = vunpack.i.h.bf16 %v5721_v23  ;;  %v5722_v55 = vunpack.i.l.bf16 %v5721_v23  ;;  %6025 = vrot.lane.b32.xlu1 %v8418_v34, %s6178_s22  ;;  %4792 = vmatprep.mubr.msk.bf16.mxu1 %vm4162_vm5, %v4114_v21  ;;  %v3956_v45 = vsel %vm2066_vm10, %v3924_v39, %v5652_v62  ;;  %v5637_v21 = vunpack.i.l.bf16 %v8501_v7  ;;  %v2728_v39 = vld [vmem:[#allocation3 + $0x18a] sm:$0xff] }
 0x328   : > { %6040 = vrot.lane.b32.xlu0 %v8399_v18, %s6180_s26  ;;  %v3957_v8 = vsel %vm2066_vm10, %v3925_v59, %v5653_v5  ;;  %v3989_v26 = vsel %vm3978_vm15, %v3956_v45, %v5657_v51  ;;  %v5643_v63 = vunpack.i.h.bf16 %v8519_v0  ;;  %v5642_v50 = vunpack.i.l.bf16 %v8519_v0  ;;  %v2760_v59 = vld [vmem:[#allocation3 + $0x198] sm:$0xff]  ;;  %v2761_v5 = vld [vmem:[#allocation3 + $0x1a0] sm:$0xff] }
 0x329   : > { %v8654_v44 = vsel %vm1934_vm6, %v3866_v10, %v5722_v55  ;;  %v8657_v6 = vsel %vm1934_vm6, %v3867_v43, %v5723_v52  ;;  %v5771_v25 = vpop.permute.xlu1 %5770  ;;  %v3990_v35 = vsel %vm3978_vm15, %v3957_v8, %v5658_v40  ;;  %v6064_v10 = vpack.i.bf16 %v2664_v53, %v2663_v56 }
 0x32a   : > { %v8664_v18 = vpop.permute.xlu0 %5740  ;;  %v5773_v38 = vunpack.i.h.bf16 %v5771_v25  ;;  %v5772_v60 = vunpack.i.l.bf16 %v5771_v25  ;;  %v5638_v43 = vunpack.i.h.bf16 %v8501_v7  ;;  %v3862_v7 = vsel %vm1868_vm3, %v8242_v20, %v5637_v21 }
 0x32b   : > { %6035 = vrot.lane.b32.xlu1 %v6034_v31, %s6179_s24  ;;  %v6084_v0 = vpack.i.bf16 %v2728_v39, %v2727_v46  ;;  %v3894_v40 = vsel %vm1934_vm6, %v3862_v7, %v5642_v50  ;;  %v5728_v39 = vunpack.i.h.bf16 %v8579_v3 }
 0x32c   : > { %6050 = vrot.lane.b32.xlu0 %v8418_v34, %s6181_s27  ;;  %v4023_v32 = vsel %vm4011_vm1, %v3990_v35, %v5773_v38  ;;  %v4022_v30 = vsel %vm4011_vm1, %v3989_v26, %v5772_v60  ;;  %v3863_v38 = vsel %vm1868_vm3, %v8237_v4, %v5638_v43  ;;  %v6094_v60 = vpack.i.bf16 %v2761_v5, %v2760_v59 }
 0x32d   : > { %v5776_v29 = vpop.permute.xlu1 %5775  ;;  %v3895_v51 = vsel %vm1934_vm6, %v3863_v38, %v5643_v63  ;;  %v5733_v38 = vunpack.i.h.bf16 %v8589_v48 }
 0x32e   : > { %v8677_v15 = vpop.permute.xlu0 %5745  ;;  %v5778_v34 = vunpack.i.h.bf16 %v5776_v29  ;;  %v5777_v14 = vunpack.i.l.bf16 %v5776_v29 }
 0x32f   : > { %6045 = vrot.lane.b32.xlu1 %v8458_v11, %s6180_s26 }
 0x330   : > { %6060 = vrot.lane.b32.xlu0 %v6034_v31, %s6175_s25  ;;  %v4055_v23 = vsel %vm4044_vm2, %v4022_v30, %v5777_v14  ;;  %v4056_v27 = vsel %vm4044_vm2, %v4023_v32, %v5778_v34  ;;  %v5758_v34 = vunpack.i.h.bf16 %v8624_v61  ;;  %v5757_v14 = vunpack.i.l.bf16 %v8624_v61 }
 0x331   : > { %v5781_v22 = vpop.permute.xlu1 %5780  ;;  %v5743_v30 = vunpack.i.h.bf16 %v8664_v18  ;;  %v5763_v61 = vunpack.i.h.bf16 %v8637_v12 }
 0x332   : > { %v8688_v58 = vpop.permute.xlu0 %5750  ;;  %v5783_v13 = vunpack.i.h.bf16 %v5781_v22  ;;  %v5782_v24 = vunpack.i.l.bf16 %v5781_v22  ;;  %v3864_v43 = vsel %vm1868_vm3, %v8281_v57, %v5757_v14  ;;  %v3865_v21 = vsel %vm1868_vm3, %v8277_v28, %v5758_v34 }
 0x333   : > { %6055 = vrot.lane.b32.xlu1 %v8471_v36, %s6181_s27  ;;  %v5727_v28 = vunpack.i.l.bf16 %v8579_v3 }
 0x334   : > { %6070 = vrot.lane.b32.xlu0 %v8458_v11, %s6177_s15  ;;  %v4088_v37 = vsel %vm4077_vm4, %v4055_v23, %v5782_v24  ;;  %v4089_v47 = vsel %vm4077_vm4, %v4056_v27, %v5783_v13  ;;  %v2696_v11 = vld [vmem:[#allocation3 + $0x189] sm:$0xff]  ;;  %v5742_v13 = vunpack.i.l.bf16 %v8664_v18  ;;  %v5762_v27 = vunpack.i.l.bf16 %v8637_v12  ;;  %v2793_v12 = vld [vmem:[#allocation3 + $0x1a1] sm:$0xff] }
 0x335   : > { %v4115_v33 = vpack.c.bf16 %v4089_v47, %v4088_v37  ;;  %v8700_v55 = vpop.permute.xlu1 %5805  ;;  %v6074_v29 = vpack.i.bf16 %v2696_v11, %v2695_v9  ;;  %v5748_v47 = vunpack.i.h.bf16 %v8677_v15  ;;  %v5747_v18 = vunpack.i.l.bf16 %v8677_v15  ;;  %v2792_v11 = vld [vmem:[#allocation3 + $0x199] sm:$0xff] }
 0x336   : > { %v5766_v52 = vpop.permute.xlu0 %5765  ;;  %v5753_v9 = vunpack.i.h.bf16 %v8688_v58  ;;  %v5752_v15 = vunpack.i.l.bf16 %v8688_v58  ;;  %v3896_v50 = vsel %vm1934_vm6, %v3864_v43, %v5762_v27  ;;  %v6104_v57 = vpack.i.bf16 %v2793_v12, %v2792_v11 }
 0x337   : > { %4793 = vmatmul.mubr.msk.bf16.gmra.mrb[8].mxu1 %vm4162_vm5, %v4115_v33  ;;  %6065 = vrot.lane.b32.xlu1 %v6064_v10, %s6175_s25  ;;  %v5767_v62 = vunpack.i.l.bf16 %v5766_v52 }
 0x338   : > { %6080 = vrot.lane.b32.xlu0 %v8471_v36, %s6178_s22  ;;  %v5768_v36 = vunpack.i.h.bf16 %v5766_v52 }
 0x339   : > { %v8710_v31 = vpop.permute.xlu1 %5810  ;;  %v3926_v22 = vsel %vm2000_vm8, %v3894_v40, %v5767_v62  ;;  %v2824_v62 = vld [vmem:[#allocation3 + $0x19a] sm:$0xff] }
 0x33a   : > { %v5786_v25 = vpop.permute.xlu0 %5785  ;;  %v3927_v20 = vsel %vm2000_vm8, %v3895_v51, %v5768_v36 }
 0x33b   : > { %v5788_v45 = vunpack.i.h.bf16 %v5786_v25  ;;  %v5787_v8 = vunpack.i.l.bf16 %v5786_v25  ;;  %6075 = vrot.lane.b32.xlu1 %v6074_v29, %s6177_s15  ;;  %v3897_v25 = vsel %vm1934_vm6, %v3865_v21, %v5763_v61 }
 0x33c   : > { %6090 = vrot.lane.b32.xlu0 %v6064_v10, %s6179_s24 }
 0x33d   : > { %v8722_v35 = vpop.permute.xlu1 %5815  ;;  %v3958_v24 = vsel %vm2066_vm10, %v3926_v22, %v5787_v8  ;;  %v3959_v23 = vsel %vm2066_vm10, %v3927_v20, %v5788_v45  ;;  %v3928_v45 = vsel %vm2000_vm8, %v3896_v50, %v5727_v28  ;;  %v3929_v8 = vsel %vm2000_vm8, %v3897_v25, %v5728_v39 }
 0x33e   : > { %v5791_v26 = vpop.permute.xlu0 %5790  ;;  %v3961_v34 = vsel %vm2066_vm10, %v3929_v8, %v5733_v38  ;;  %v5738_v20 = vunpack.i.h.bf16 %v8605_v42  ;;  %v5737_v22 = vunpack.i.l.bf16 %v8605_v42 }
 0x33f   : > { %v5793_v4 = vunpack.i.h.bf16 %v5791_v26  ;;  %v5792_v32 = vunpack.i.l.bf16 %v5791_v26  ;;  %6085 = vrot.lane.b32.xlu1 %v6084_v0, %s6178_s22 }
 0x340   : > { %6100 = vrot.lane.b32.xlu0 %v6074_v29, %s6180_s26  ;;  %v2825_v29 = vld [vmem:[#allocation3 + $0x1a2] sm:$0xff] }
 0x341   : > { %v3991_v53 = vsel %vm3978_vm15, %v3958_v24, %v5792_v32  ;;  %v3992_v37 = vsel %vm3978_vm15, %v3959_v23, %v5793_v4  ;;  %v8742_v10 = vpop.permute.xlu1 %5820  ;;  %v6114_v3 = vpack.i.bf16 %v2825_v29, %v2824_v62 }
 0x342   : > { %v4024_v33 = vsel %vm4011_vm1, %v3991_v53, %v5742_v13  ;;  %v4025_v52 = vsel %vm4011_vm1, %v3992_v37, %v5743_v30  ;;  %v8740_v56 = vpop.permute.xlu0 %5795  ;;  %v3994_v30 = vsel %vm3978_vm15, %v3961_v34, %v5738_v20  ;;  %v5817_v34 = vunpack.i.l.bf16 %v8722_v35 }
 0x343   : > { %v4057_v46 = vsel %vm4044_vm2, %v4024_v33, %v5747_v18  ;;  %v4058_v63 = vsel %vm4044_vm2, %v4025_v52, %v5748_v47  ;;  %6095 = vrot.lane.b32.xlu1 %v6094_v60, %s6179_s24 }
 0x344   : > { %6110 = vrot.lane.b32.xlu0 %v6084_v0, %s6181_s27  ;;  %v4090_v5 = vsel %vm4077_vm4, %v4057_v46, %v5752_v15  ;;  %v4091_v36 = vsel %vm4077_vm4, %v4058_v63, %v5753_v9  ;;  %v5732_v0 = vunpack.i.l.bf16 %v8589_v48 }
 0x345   : > { %v5831_v58 = vpop.permute.xlu1 %5830  ;;  %v4116_v7 = vpack.c.bf16 %v4091_v36, %v4090_v5 }
 0x346   : > { %v8758_v59 = vpop.permute.xlu0 %5800  ;;  %v3960_v51 = vsel %vm2066_vm10, %v3928_v45, %v5732_v0  ;;  %v5833_v14 = vunpack.i.h.bf16 %v5831_v58  ;;  %v5832_v26 = vunpack.i.l.bf16 %v5831_v58 }
 0x347   : > { %6105 = vrot.lane.b32.xlu1 %v6104_v57, %s6180_s26  ;;  %4796 = vmatprep.mubr.msk.bf16.mxu1 %vm4162_vm5, %v4116_v7  ;;  %v3993_v32 = vsel %vm3978_vm15, %v3960_v51, %v5737_v22  ;;  %v5818_v51 = vunpack.i.h.bf16 %v8722_v35  ;;  %s9020_s26 = scalar_lea.vmem %s9215_s9, %s4694_s14 }
 0x348   : > { %v4027_v23 = vsel %vm4011_vm1, %v3994_v30, %v5833_v14  ;;  %v4026_v61 = vsel %vm4011_vm1, %v3993_v32, %v5832_v26  ;;  %v5808_v14 = vunpack.i.h.bf16 %v8700_v55  ;;  %v5807_v26 = vunpack.i.l.bf16 %v8700_v55 }
 0x349   : > { %v5836_v40 = vpop.permute.xlu1 %5835  ;;  %v5823_v32 = vunpack.i.h.bf16 %v8742_v10  ;;  %v5822_v30 = vunpack.i.l.bf16 %v8742_v10 }
 0x34a   : > { %v8768_v60 = vpop.permute.xlu0 %5825  ;;  %v5838_v4 = vunpack.i.h.bf16 %v5836_v40  ;;  %v5837_v48 = vunpack.i.l.bf16 %v5836_v40 }
 0x34b   : > { %6115 = vrot.lane.b32.xlu1 %v6114_v3, %s6181_s27 }
 0x34c   : > { %v4059_v37 = vsel %vm4044_vm2, %v4026_v61, %v5837_v48  ;;  %v4060_v42 = vsel %vm4044_vm2, %v4027_v23, %v5838_v4  ;;  %v2555_v4 = vld [vmem:[#allocation3 + $0xd8] sm:$0xff]  ;;  %v2556_v48 = vld [vmem:[#allocation3 + $0xe0] sm:$0xff] }
 0x34d   : > { %v5841_v24 = vpop.permute.xlu1 %5840  ;;  %v3868_v61 = vsel %vm1868_vm3, %v2555_v4, %v5817_v34  ;;  %v5813_v4 = vunpack.i.h.bf16 %v8710_v31 }
 0x34e   : > { %v8777_v13 = vpop.permute.xlu0 %5845  ;;  %v5843_v27 = vunpack.i.h.bf16 %v5841_v24  ;;  %v5842_v53 = vunpack.i.l.bf16 %v5841_v24 }
 0x34f   : > { %v5848_v20 = vunpack.i.h.bf16 %v8777_v13  ;;  %v5847_v22 = vunpack.i.l.bf16 %v8777_v13 }
 0x350   : > { %v4092_v47 = vsel %vm4077_vm4, %v4059_v37, %v5842_v53  ;;  %v4093_v18 = vsel %vm4077_vm4, %v4060_v42, %v5843_v27 }
 0x351   : > { %v4117_v33 = vpack.c.bf16 %v4093_v18, %v4092_v47  ;;  %v8785_v11 = vpop.permute.xlu1 %5860 }
 0x352   : > { %v5851_v52 = vpop.permute.xlu0 %5850 }
 0x353   : > { %v5853_v12 = vunpack.i.h.bf16 %v5851_v52  ;;  %v5852_v43 = vunpack.i.l.bf16 %v5851_v52  ;;  %4797 = vmatmul.mubr.msk.bf16.gmra.mrb[12].mxu1 %vm4162_vm5, %v4117_v33 }
 0x355   : > { %v8788_v9 = vpop.permute.xlu1 %5865  ;;  %v3874_v63 = vsel %vm1868_vm3, %v8525_v1, %v5852_v43  ;;  %v3875_v50 = vsel %vm1868_vm3, %v8513_v2, %v5853_v12  ;;  %v3900_v12 = vsel %vm1934_vm6, %v3868_v61, %v5822_v30 }
 0x356   : > { %v5856_v21 = vpop.permute.xlu0 %5855 }
 0x357   : > { %v5858_v15 = vunpack.i.h.bf16 %v5856_v21  ;;  %v5857_v46 = vunpack.i.l.bf16 %v5856_v21 }
 0x359   : > { %v8795_v25 = vsel %vm1934_vm6, %v3874_v63, %v5857_v46  ;;  %v8798_v57 = vsel %vm1934_vm6, %v3875_v50, %v5858_v15  ;;  %v8800_v39 = vpop.permute.xlu1 %5885 }
 0x35a   : > { %v5871_v28 = vpop.permute.xlu0 %5870 }
 0x35b   : > { %v5873_v58 = vunpack.i.h.bf16 %v5871_v28  ;;  %v5872_v5 = vunpack.i.l.bf16 %v5871_v28 }
 0x35d   : > { %v8802_v36 = vpop.permute.xlu1 %5895  ;;  %v3878_v1 = vsel %vm1868_vm3, %v8601_v49, %v5872_v5  ;;  %v3879_v2 = vsel %vm1868_vm3, %v8591_v41, %v5873_v58  ;;  %v5828_v49 = vunpack.i.h.bf16 %v8768_v60  ;;  %v5827_v41 = vunpack.i.l.bf16 %v8768_v60 }
 0x35e   : > { %v5876_v62 = vpop.permute.xlu0 %5875  ;;  %v3869_v60 = vsel %vm1868_vm3, %v2556_v48, %v5818_v51  ;;  %v5812_v48 = vunpack.i.l.bf16 %v8710_v31  ;;  %v5897_v30 = vunpack.i.l.bf16 %v8802_v36 }
 0x35f   : > { %v5878_v29 = vunpack.i.h.bf16 %v5876_v62  ;;  %v5877_v45 = vunpack.i.l.bf16 %v5876_v62  ;;  %v3931_v37 = vsel %vm2000_vm8, %v8657_v6, %v5828_v49  ;;  %v3930_v13 = vsel %vm2000_vm8, %v8654_v44, %v5827_v41 }
 0x360   : > { %v3962_v10 = vsel %vm2066_vm10, %v3930_v13, %v5847_v22  ;;  %v3963_v18 = vsel %vm2066_vm10, %v3931_v37, %v5848_v20  ;;  %v3901_v43 = vsel %vm1934_vm6, %v3869_v60, %v5823_v32  ;;  %v3932_v41 = vsel %vm2000_vm8, %v3900_v12, %v5807_v26 }
 0x361   : > { %v8809_v8 = vsel %vm1934_vm6, %v3878_v1, %v5877_v45  ;;  %v8812_v7 = vsel %vm1934_vm6, %v3879_v2, %v5878_v29  ;;  %v8814_v0 = vpop.permute.xlu1 %5905  ;;  %v3933_v20 = vsel %vm2000_vm8, %v3901_v43, %v5808_v14  ;;  %v5898_v32 = vunpack.i.h.bf16 %v8802_v36 }
 0x362   : > { %v5881_v38 = vpop.permute.xlu0 %5880  ;;  %v3964_v26 = vsel %vm2066_vm10, %v3932_v41, %v5812_v48  ;;  %v3965_v14 = vsel %vm2066_vm10, %v3933_v20, %v5813_v4  ;;  %v5803_v43 = vunpack.i.h.bf16 %v8758_v59  ;;  %v5862_v4 = vunpack.i.l.bf16 %v8785_v11 }
 0x363   : > { %v5883_v24 = vunpack.i.h.bf16 %v5881_v38  ;;  %v5882_v35 = vunpack.i.l.bf16 %v5881_v38 }
 0x365   : > { %v8816_v40 = vpop.permute.xlu1 %5910  ;;  %v3996_v21 = vsel %vm3978_vm15, %v3963_v18, %v5883_v24  ;;  %v3995_v15 = vsel %vm3978_vm15, %v3962_v10, %v5882_v35 }
 0x366   : > { %v5891_v3 = vpop.permute.xlu0 %5890 }
 0x367   : > { %v5893_v27 = vunpack.i.h.bf16 %v5891_v3  ;;  %v5892_v53 = vunpack.i.l.bf16 %v5891_v3 }
 0x369   : > { %v5916_v55 = vpop.permute.xlu1 %5915  ;;  %v4028_v46 = vsel %vm4011_vm1, %v3995_v15, %v5892_v53  ;;  %v4029_v44 = vsel %vm4011_vm1, %v3996_v21, %v5893_v27  ;;  %v5802_v21 = vunpack.i.l.bf16 %v8758_v59 }
 0x36a   : > { %v5901_v23 = vpop.permute.xlu0 %5900  ;;  %v5918_v33 = vunpack.i.h.bf16 %v5916_v55  ;;  %v5917_v52 = vunpack.i.l.bf16 %v5916_v55 }
 0x36b   : > { %v5903_v42 = vunpack.i.h.bf16 %v5901_v23  ;;  %v5902_v47 = vunpack.i.l.bf16 %v5901_v23 }
 0x36c   : > { %v3880_v45 = vsel %vm1868_vm3, %v8666_v54, %v5917_v52  ;;  %v3881_v1 = vsel %vm1868_vm3, %v8649_v19, %v5918_v33  ;;  %v5888_v54 = vunpack.i.h.bf16 %v8800_v39  ;;  %v5887_v19 = vunpack.i.l.bf16 %v8800_v39 }
 0x36d   : > { %v5921_v28 = vpop.permute.xlu1 %5920  ;;  %v4061_v58 = vsel %vm4044_vm2, %v4028_v46, %v5902_v47  ;;  %v4062_v5 = vsel %vm4044_vm2, %v4029_v44, %v5903_v42  ;;  %v5798_v33 = vunpack.i.h.bf16 %v8740_v56  ;;  %v5797_v52 = vunpack.i.l.bf16 %v8740_v56  ;;  %v2557_v44 = vld [vmem:[#allocation3 + $0xf0] sm:$0xff] }
 0x36e   : > { %v5931_v6 = vpop.permute.xlu0 %5930  ;;  %v5923_v62 = vunpack.i.h.bf16 %v5921_v28  ;;  %v5922_v29 = vunpack.i.l.bf16 %v5921_v28  ;;  %v3998_v39 = vsel %vm3978_vm15, %v3965_v14, %v5888_v54  ;;  %v3997_v61 = vsel %vm3978_vm15, %v3964_v26, %v5887_v19 }
 0x36f   : > { %v5933_v63 = vunpack.i.h.bf16 %v5931_v6  ;;  %v5932_v50 = vunpack.i.l.bf16 %v5931_v6  ;;  %v4030_v31 = vsel %vm4011_vm1, %v3997_v61, %v5897_v30  ;;  %v4031_v27 = vsel %vm4011_vm1, %v3998_v39, %v5898_v32 }
 0x370   : > { %v8851_v51 = vsel %vm1934_vm6, %v3880_v45, %v5922_v29  ;;  %v8854_v34 = vsel %vm1934_vm6, %v3881_v1, %v5923_v62  ;;  %v5868_v39 = vunpack.i.h.bf16 %v8788_v9  ;;  %v5867_v61 = vunpack.i.l.bf16 %v8788_v9 }
 0x371   : > { %v4094_v2 = vsel %vm4077_vm4, %v4061_v58, %v5932_v50  ;;  %v4095_v38 = vsel %vm4077_vm4, %v4062_v5, %v5933_v63  ;;  %v5926_v22 = vpop.permute.xlu1 %5925  ;;  %v2558_v63 = vld [vmem:[#allocation3 + $0xf8] sm:$0xff]  ;;  %v3870_v58 = vsel %vm1868_vm3, %v2557_v44, %v5797_v52 }
 0x372   : > { %v4118_v3 = vpack.c.bf16 %v4095_v38, %v4094_v2  ;;  %v5941_v49 = vpop.permute.xlu0 %5940  ;;  %v5928_v24 = vunpack.i.h.bf16 %v5926_v22  ;;  %v5927_v35 = vunpack.i.l.bf16 %v5926_v22  ;;  %v3871_v5 = vsel %vm1868_vm3, %v2558_v63, %v5798_v33 }
 0x373   : > { %v5943_v6 = vunpack.i.h.bf16 %v5941_v49  ;;  %v5942_v46 = vunpack.i.l.bf16 %v5941_v49  ;;  %v3902_v45 = vsel %vm1934_vm6, %v3870_v58, %v5802_v21  ;;  %v3903_v1 = vsel %vm1934_vm6, %v3871_v5, %v5803_v43 }
 0x374   : > { %4800 = vmatprep.mubr.msk.bf16.mxu1 %vm4162_vm5, %v4118_v3  ;;  %v4064_v55 = vsel %vm4044_vm2, %v4031_v27, %v5928_v24  ;;  %v4063_v37 = vsel %vm4044_vm2, %v4030_v31, %v5927_v35  ;;  %v5863_v22 = vunpack.i.h.bf16 %v8785_v11 }
 0x375   : > { %v5936_v60 = vpop.permute.xlu1 %5935  ;;  %v3935_v3 = vsel %vm2000_vm8, %v3903_v1, %v5943_v6  ;;  %v3934_v49 = vsel %vm2000_vm8, %v3902_v45, %v5942_v46 }
 0x376   : > { %v5951_v23 = vpop.permute.xlu0 %5950  ;;  %v5938_v53 = vunpack.i.h.bf16 %v5936_v60  ;;  %v5937_v36 = vunpack.i.l.bf16 %v5936_v60 }
 0x377   : > { %v5953_v50 = vunpack.i.h.bf16 %v5951_v23  ;;  %v5952_v28 = vunpack.i.l.bf16 %v5951_v23 }
 0x378   : > { %v4096_v13 = vsel %vm4077_vm4, %v4063_v37, %v5937_v36  ;;  %v4097_v42 = vsel %vm4077_vm4, %v4064_v55, %v5938_v53 }
 0x379   : > { %v4119_v10 = vpack.c.bf16 %v4097_v42, %v4096_v13  ;;  %v8875_v18 = vpop.permute.xlu1 %5945  ;;  %v3966_v54 = vsel %vm2066_vm10, %v3934_v49, %v5952_v28  ;;  %v3967_v19 = vsel %vm2066_vm10, %v3935_v3, %v5953_v50 }
 0x37a   : > { %v5961_v47 = vpop.permute.xlu0 %5960  ;;  %v5948_v31 = vunpack.i.h.bf16 %v8875_v18  ;;  %v5947_v27 = vunpack.i.l.bf16 %v8875_v18 }
 0x37b   : > { %4801 = vmatmul.mubr.msk.bf16.gmra.mrb[16].mxu1 %vm4162_vm5, %v4119_v10  ;;  %v5963_v62 = vunpack.i.h.bf16 %v5961_v47  ;;  %v5962_v29 = vunpack.i.l.bf16 %v5961_v47  ;;  %v6127_v47 = vld [vmem:[#allocation3 + $0x108] sm:$0xff]  ;;  %v6128_v10 = vld [vmem:[#allocation3 + $0x110] sm:$0xff] }
 0x37c   : > { %v3872_v9 = vsel %vm1868_vm3, %v6127_v47, %v5862_v4  ;;  %v3873_v33 = vsel %vm1868_vm3, %v6128_v10, %v5863_v22 }
 0x37d   : > { %v8882_v15 = vpop.permute.xlu1 %5955  ;;  %v3999_v48 = vsel %vm3978_vm15, %v3966_v54, %v5962_v29  ;;  %v4000_v32 = vsel %vm3978_vm15, %v3967_v19, %v5963_v62  ;;  %v3904_v18 = vsel %vm1934_vm6, %v3872_v9, %v5867_v61  ;;  %v3905_v21 = vsel %vm1934_vm6, %v3873_v33, %v5868_v39 }
 0x37e   : > { %v5971_v12 = vpop.permute.xlu0 %5970  ;;  %v5958_v55 = vunpack.i.h.bf16 %v8882_v15  ;;  %v5957_v37 = vunpack.i.l.bf16 %v8882_v15  ;;  %v3937_v15 = vsel %vm2000_vm8, %v3905_v21, %v5948_v31  ;;  %v3936_v44 = vsel %vm2000_vm8, %v3904_v18, %v5947_v27 }
 0x37f   : > { %v5973_v59 = vunpack.i.h.bf16 %v5971_v12  ;;  %v5972_v2 = vunpack.i.l.bf16 %v5971_v12 }
 0x380   : > { %v3968_v28 = vsel %vm2066_vm10, %v3936_v44, %v5957_v37  ;;  %v3969_v58 = vsel %vm2066_vm10, %v3937_v15, %v5958_v55  ;;  %v5908_v55 = vunpack.i.h.bf16 %v8814_v0  ;;  %v5907_v37 = vunpack.i.l.bf16 %v8814_v0 }
 0x381   : > { %v5966_v38 = vpop.permute.xlu1 %5965  ;;  %v4032_v24 = vsel %vm4011_vm1, %v3999_v48, %v5972_v2  ;;  %v4033_v35 = vsel %vm4011_vm1, %v4000_v32, %v5973_v59 }
 0x382   : > { %v5981_v56 = vpop.permute.xlu0 %5980  ;;  %v5968_v52 = vunpack.i.h.bf16 %v5966_v38  ;;  %v5967_v12 = vunpack.i.l.bf16 %v5966_v38 }
 0x383   : > { %v5983_v41 = vunpack.i.h.bf16 %v5981_v56  ;;  %v5982_v20 = vunpack.i.l.bf16 %v5981_v56 }
 0x384   : > { %v4001_v62 = vsel %vm3978_vm15, %v3968_v28, %v5967_v12  ;;  %v4002_v29 = vsel %vm3978_vm15, %v3969_v58, %v5968_v52  ;;  %v5913_v52 = vunpack.i.h.bf16 %v8816_v40  ;;  %v5912_v12 = vunpack.i.l.bf16 %v8816_v40 }
 0x385   : > { %v5976_v23 = vpop.permute.xlu1 %5975  ;;  %v4065_v60 = vsel %vm4044_vm2, %v4032_v24, %v5982_v20  ;;  %v4066_v11 = vsel %vm4044_vm2, %v4033_v35, %v5983_v41  ;;  %v3876_v28 = vsel %vm1868_vm3, %v8562_v17, %v5907_v37  ;;  %v3877_v40 = vsel %vm1868_vm3, %v8554_v16, %v5908_v55 }
 0x386   : > { %v5991_v30 = vpop.permute.xlu0 %5990  ;;  %v5978_v6 = vunpack.i.h.bf16 %v5976_v23  ;;  %v5977_v46 = vunpack.i.l.bf16 %v5976_v23 }
 0x387   : > { %v5993_v26 = vunpack.i.h.bf16 %v5991_v30  ;;  %v5992_v14 = vunpack.i.l.bf16 %v5991_v30 }
 0x388   : > { %v4034_v45 = vsel %vm4011_vm1, %v4001_v62, %v5977_v46  ;;  %v4035_v1 = vsel %vm4011_vm1, %v4002_v29, %v5978_v6  ;;  %v3908_v29 = vsel %vm1934_vm6, %v3876_v28, %v5912_v12 }
 0x389   : > { %v4098_v53 = vsel %vm4077_vm4, %v4065_v60, %v5992_v14  ;;  %v4099_v36 = vsel %vm4077_vm4, %v4066_v11, %v5993_v26  ;;  %v5986_v43 = vpop.permute.xlu1 %5985 }
 0x38a   : > { %v4120_v13 = vpack.c.bf16 %v4099_v36, %v4098_v53  ;;  %v6001_v42 = vpop.permute.xlu0 %6000  ;;  %v5988_v63 = vunpack.i.h.bf16 %v5986_v43  ;;  %v5987_v50 = vunpack.i.l.bf16 %v5986_v43 }
 0x38b   : > { %v6003_v48 = vunpack.i.h.bf16 %v6001_v42  ;;  %v6002_v32 = vunpack.i.l.bf16 %v6001_v42 }
 0x38c   : > { %4804 = vmatprep.mubr.msk.bf16.mxu1 %vm4162_vm5, %v4120_v13  ;;  %v4067_v38 = vsel %vm4044_vm2, %v4034_v45, %v5987_v50  ;;  %v4068_v3 = vsel %vm4044_vm2, %v4035_v1, %v5988_v63 }
 0x38d   : > { %v5996_v56 = vpop.permute.xlu1 %5995  ;;  %v3939_v60 = vsel %vm2000_vm8, %v8798_v57, %v6003_v48  ;;  %v3938_v11 = vsel %vm2000_vm8, %v8795_v25, %v6002_v32 }
 0x38e   : > { %v6011_v5 = vpop.permute.xlu0 %6010  ;;  %v5998_v59 = vunpack.i.h.bf16 %v5996_v56  ;;  %v5997_v2 = vunpack.i.l.bf16 %v5996_v56  ;;  %v3909_v56 = vsel %vm1934_vm6, %v3877_v40, %v5913_v52 }
 0x38f   : > { %v6013_v30 = vunpack.i.h.bf16 %v6011_v5  ;;  %v6012_v24 = vunpack.i.l.bf16 %v6011_v5 }
 0x390   : > { %v4100_v49 = vsel %vm4077_vm4, %v4067_v38, %v5997_v2  ;;  %v4101_v41 = vsel %vm4077_vm4, %v4068_v3, %v5998_v59 }
 0x391   : > { %v4121_v54 = vpack.c.bf16 %v4101_v41, %v4100_v49  ;;  %v6006_v19 = vpop.permute.xlu1 %6005  ;;  %v3970_v53 = vsel %vm2066_vm10, %v3938_v11, %v6012_v24  ;;  %v3971_v36 = vsel %vm2066_vm10, %v3939_v60, %v6013_v30 }
 0x392   : > { %v6021_v20 = vpop.permute.xlu0 %6020  ;;  %v6008_v18 = vunpack.i.h.bf16 %v6006_v19  ;;  %v6007_v21 = vunpack.i.l.bf16 %v6006_v19 }
 0x393   : > { %4805 = vmatmul.mubr.msk.bf16.gmra.mrb[20].mxu1 %vm4162_vm5, %v4121_v54  ;;  %v6023_v35 = vunpack.i.h.bf16 %v6021_v20  ;;  %v6022_v26 = vunpack.i.l.bf16 %v6021_v20 }
 0x394   : > { %v3941_v59 = vsel %vm2000_vm8, %v3909_v56, %v6008_v18  ;;  %v3940_v2 = vsel %vm2000_vm8, %v3908_v29, %v6007_v21 }
 0x395   : > { %v6016_v4 = vpop.permute.xlu1 %6015  ;;  %v4003_v13 = vsel %vm3978_vm15, %v3970_v53, %v6022_v26  ;;  %v4004_v42 = vsel %vm3978_vm15, %v3971_v36, %v6023_v35 }
 0x396   : > { %v6031_v22 = vpop.permute.xlu0 %6030  ;;  %v6018_v15 = vunpack.i.h.bf16 %v6016_v4  ;;  %v6017_v44 = vunpack.i.l.bf16 %v6016_v4 }
 0x397   : > { %v6033_v23 = vunpack.i.h.bf16 %v6031_v22  ;;  %v6032_v39 = vunpack.i.l.bf16 %v6031_v22 }
 0x398   : > { %v3972_v3 = vsel %vm2066_vm10, %v3940_v2, %v6017_v44  ;;  %v3973_v16 = vsel %vm2066_vm10, %v3941_v59, %v6018_v15 }
 0x399   : > { %v6026_v61 = vpop.permute.xlu1 %6025  ;;  %v4036_v57 = vsel %vm4011_vm1, %v4003_v13, %v6032_v39  ;;  %v4037_v9 = vsel %vm4011_vm1, %v4004_v42, %v6033_v23 }
 0x39a   : > { %v6041_v14 = vpop.permute.xlu0 %6040  ;;  %v6028_v58 = vunpack.i.h.bf16 %v6026_v61  ;;  %v6027_v5 = vunpack.i.l.bf16 %v6026_v61 }
 0x39b   : > { %v6043_v31 = vunpack.i.h.bf16 %v6041_v14  ;;  %v6042_v27 = vunpack.i.l.bf16 %v6041_v14 }
 0x39c   : > { %v4005_v41 = vsel %vm3978_vm15, %v3972_v3, %v6027_v5  ;;  %v4006_v20 = vsel %vm3978_vm15, %v3973_v16, %v6028_v58 }
 0x39d   : > { %v6036_v33 = vpop.permute.xlu1 %6035  ;;  %v4069_v43 = vsel %vm4044_vm2, %v4036_v57, %v6042_v27  ;;  %v4070_v0 = vsel %vm4044_vm2, %v4037_v9, %v6043_v31 }
 0x39e   : > { %v6051_v47 = vpop.permute.xlu0 %6050  ;;  %v6038_v45 = vunpack.i.h.bf16 %v6036_v33  ;;  %v6037_v1 = vunpack.i.l.bf16 %v6036_v33 }
 0x39f   : > { %v6053_v25 = vunpack.i.h.bf16 %v6051_v47  ;;  %v6052_v10 = vunpack.i.l.bf16 %v6051_v47 }
 0x3a0   : > { %v4038_v19 = vsel %vm4011_vm1, %v4005_v41, %v6037_v1  ;;  %v4039_v22 = vsel %vm4011_vm1, %v4006_v20, %v6038_v45 }
 0x3a1   : > { %v4102_v6 = vsel %vm4077_vm4, %v4069_v43, %v6052_v10  ;;  %v4103_v46 = vsel %vm4077_vm4, %v4070_v0, %v6053_v25  ;;  %v6046_v62 = vpop.permute.xlu1 %6045 }
 0x3a2   : > { %v4122_v63 = vpack.c.bf16 %v4103_v46, %v4102_v6  ;;  %v6061_v50 = vpop.permute.xlu0 %6060  ;;  %v6048_v38 = vunpack.i.h.bf16 %v6046_v62  ;;  %v6047_v17 = vunpack.i.l.bf16 %v6046_v62 }
 0x3a3   : > { %v6063_v60 = vunpack.i.h.bf16 %v6061_v50  ;;  %v6062_v11 = vunpack.i.l.bf16 %v6061_v50 }
 0x3a4   : > { %4808 = vmatprep.mubr.msk.bf16.mxu1 %vm4162_vm5, %v4122_v63  ;;  %v4071_v32 = vsel %vm4044_vm2, %v4038_v19, %v6047_v17  ;;  %v4072_v30 = vsel %vm4044_vm2, %v4039_v22, %v6048_v38 }
 0x3a5   : > { %v6056_v54 = vpop.permute.xlu1 %6055  ;;  %v3943_v47 = vsel %vm2000_vm8, %v8812_v7, %v6063_v60  ;;  %v3942_v57 = vsel %vm2000_vm8, %v8809_v8, %v6062_v11 }
 0x3a6   : > { %v6071_v49 = vpop.permute.xlu0 %6070  ;;  %v6058_v4 = vunpack.i.h.bf16 %v6056_v54  ;;  %v6057_v48 = vunpack.i.l.bf16 %v6056_v54 }
 0x3a7   : > { %v6073_v31 = vunpack.i.h.bf16 %v6071_v49  ;;  %v6072_v27 = vunpack.i.l.bf16 %v6071_v49 }
 0x3a8   : > { %v4104_v24 = vsel %vm4077_vm4, %v4071_v32, %v6057_v48  ;;  %v4105_v35 = vsel %vm4077_vm4, %v4072_v30, %v6058_v4  ;;  %v8997_v30 = vld [vmem:[%s9213_s7] ss:$0 sm:$0xff] }
 0x3a9   : > { %v4123_v14 = vpack.c.bf16 %v4105_v35, %v4104_v24  ;;  %v6066_v23 = vpop.permute.xlu1 %6065  ;;  %v3974_v10 = vsel %vm2066_vm10, %v3942_v57, %v6072_v27  ;;  %v3975_v33 = vsel %vm2066_vm10, %v3943_v47, %v6073_v31  ;;  %v9002_v35 = vld [vmem:[%s9214_s8] ss:$0 sm:$0xff]  ;;  %v6129_v31 = vld [vmem:[%s6350_s19 + $0x10] sm:$0xff]  ;;  %v6131_v57 = vld [vmem:[%s6350_s19 + $0x18] sm:$0xff] }
 0x3aa   : > { %v6081_v26 = vpop.permute.xlu0 %6080  ;;  %v6068_v15 = vunpack.i.h.bf16 %v6066_v23  ;;  %v6067_v44 = vunpack.i.l.bf16 %v6066_v23  ;;  %v4488_v27 = vsel %vm444_vm0, %v6129_v31, 0.0 }
 0x3ab   : > { %4809 = vmatmul.mubr.msk.bf16.gmra.mrb[24].mxu1 %vm4162_vm5, %v4123_v14  ;;  %v6083_v53 = vunpack.i.h.bf16 %v6081_v26  ;;  %v6082_v36 = vunpack.i.l.bf16 %v6081_v26 }
 0x3ac   : > { %v3944_v1 = vsel %vm2000_vm8, %v8851_v51, %v6067_v44  ;;  %v3945_v59 = vsel %vm2000_vm8, %v8854_v34, %v6068_v15 }
 0x3ad   : > { %v6076_v61 = vpop.permute.xlu1 %6075  ;;  %v4007_v52 = vsel %vm3978_vm15, %v3974_v10, %v6082_v36  ;;  %v4008_v12 = vsel %vm3978_vm15, %v3975_v33, %v6083_v53 }
 0x3ae   : > { %v6091_v39 = vpop.permute.xlu0 %6090  ;;  %v6078_v28 = vunpack.i.h.bf16 %v6076_v61  ;;  %v6077_v40 = vunpack.i.l.bf16 %v6076_v61 }
 0x3af   : > { %v6093_v37 = vunpack.i.h.bf16 %v6091_v39  ;;  %v6092_v13 = vunpack.i.l.bf16 %v6091_v39 }
 0x3b0   : > { %v3976_v17 = vsel %vm2066_vm10, %v3944_v1, %v6077_v40  ;;  %v3977_v3 = vsel %vm2066_vm10, %v3945_v59, %v6078_v28  ;;  %v6133_v28 = vld [vmem:[%s6350_s19 + $0x30] sm:$0xff]  ;;  %v6135_v59 = vld [vmem:[%s6350_s19 + $0x38] sm:$0xff] }
 0x3b1   : > { %v6086_v42 = vpop.permute.xlu1 %6085  ;;  %v4040_v0 = vsel %vm4011_vm1, %v4007_v52, %v6092_v13  ;;  %v4041_v18 = vsel %vm4011_vm1, %v4008_v12, %v6093_v37  ;;  %v6130_v37 = vld [vmem:[%s6350_s19] sm:$0xff]  ;;  %v6132_v52 = vld [vmem:[%s6350_s19 + $0x8] sm:$0xff]  ;;  %v4492_v40 = vsel %vm444_vm0, %v6133_v28, 0.0 }
 0x3b2   : > { %v6101_v55 = vpop.permute.xlu0 %6100  ;;  %v6088_v5 = vunpack.i.h.bf16 %v6086_v42  ;;  %v6087_v62 = vunpack.i.l.bf16 %v6086_v42  ;;  %v4486_v13 = vsel %vm444_vm0, %v6130_v37, 0.0  ;;  %v4487_v12 = vsel %vm444_vm0, %v6132_v52, 0.0 }
 0x3b3   : > { %v6103_v9 = vunpack.i.h.bf16 %v6101_v55  ;;  %v6102_v25 = vunpack.i.l.bf16 %v6101_v55 }
 0x3b4   : > { %v4009_v16 = vsel %vm3978_vm15, %v3976_v17, %v6087_v62  ;;  %v4010_v49 = vsel %vm3978_vm15, %v3977_v3, %v6088_v5 }
 0x3b5   : > { %v6096_v6 = vpop.permute.xlu1 %6095  ;;  %v4073_v8 = vsel %vm4044_vm2, %v4040_v0, %v6102_v25  ;;  %v4074_v46 = vsel %vm4044_vm2, %v4041_v18, %v6103_v9  ;;  %v4489_v9 = vsel %vm444_vm0, %v6131_v57, 0.0 }
 0x3b6   : > { %v6111_v43 = vpop.permute.xlu0 %6110  ;;  %v6098_v56 = vunpack.i.h.bf16 %v6096_v6  ;;  %v6097_v45 = vunpack.i.l.bf16 %v6096_v6 }
 0x3b7   : > { %v6113_v21 = vunpack.i.h.bf16 %v6111_v43  ;;  %v6112_v7 = vunpack.i.l.bf16 %v6111_v43 }
 0x3b8   : > { %v4042_v20 = vsel %vm4011_vm1, %v4009_v16, %v6097_v45  ;;  %v4043_v54 = vsel %vm4011_vm1, %v4010_v49, %v6098_v56  ;;  %v6136_v16 = vld [vmem:[%s6350_s19 + $0x28] sm:$0xff] }
 0x3b9   : > { %v4106_v63 = vsel %vm4077_vm4, %v4073_v8, %v6112_v7  ;;  %v4107_v50 = vsel %vm4077_vm4, %v4074_v46, %v6113_v21  ;;  %v6106_v29 = vpop.permute.xlu1 %6105  ;;  %v4491_v49 = vsel %vm444_vm0, %v6136_v16, 0.0 }
 0x3ba   : > { %v4124_v58 = vpack.c.bf16 %v4107_v50, %v4106_v63  ;;  %v6108_v2 = vunpack.i.h.bf16 %v6106_v29  ;;  %v6107_v38 = vunpack.i.l.bf16 %v6106_v29  ;;  %v6134_v29 = vld [vmem:[%s6350_s19 + $0x20] sm:$0xff] }
 0x3bb   : > { %v4490_v56 = vsel %vm444_vm0, %v6134_v29, 0.0 }
 0x3bc   : > { %4812 = vmatprep.mubr.msk.bf16.mxu1 %vm4162_vm5, %v4124_v58  ;;  %v4075_v22 = vsel %vm4044_vm2, %v4042_v20, %v6107_v38  ;;  %v4076_v34 = vsel %vm4044_vm2, %v4043_v54, %v6108_v2  ;;  %v4493_v2 = vsel %vm444_vm0, %v6135_v59, 0.0 }
 0x3bd   : > { %v6116_v41 = vpop.permute.xlu1 %6115 }
 0x3be   : > { %v6118_v19 = vunpack.i.h.bf16 %v6116_v41  ;;  %v6117_v51 = vunpack.i.l.bf16 %v6116_v41 }
 0x3c0   : > { %v4108_v4 = vsel %vm4077_vm4, %v4075_v22, %v6117_v51  ;;  %v4109_v48 = vsel %vm4077_vm4, %v4076_v34, %v6118_v19 }
 0x3c1   : > { %v4125_v32 = vpack.c.bf16 %v4109_v48, %v4108_v4 }
 0x3c3   : > { %4813 = vmatmul.mubr.msk.bf16.gmra.mrb[28].mxu1 %vm4162_vm5, %v4125_v32 }
 0x3ca   : > { %v4786_v24 = vpop.f32.mrb[0].mxu1 }
 0x3cb   : > { %v4385_v26 = vmul.f32 %v4786_v24, %v8997_v30  ;;  %v4249_v14 = vpop.f32.mrb[1].mxu1 }
 0x3cc   : > { %v4383_v23 = vmul.f32 %v8997_v30, %v4249_v14  ;;  %v4787_v39 = vpop.f32.mrb[2].mxu1  ;;  %v6137_v14 = vld [vmem:[%s6350_s19 + $0x50] sm:$0xff] }
 0x3cd   : > { %v4424_v61 = vadd.f32 %v9002_v35, %v4385_v26  ;;  %v4386_v60 = vmul.f32 %v4787_v39, %v8997_v30  ;;  %v4252_v11 = vpop.f32.mrb[3].mxu1 }
 0x3ce   : > { %v4422_v53 = vadd.f32 %v9002_v35, %v4383_v23  ;;  %v4384_v36 = vmul.f32 %v8997_v30, %v4252_v11  ;;  %v4496_v23 = vsel %vm444_vm0, %v6137_v14, 0.0  ;;  %v6138_v11 = vld [vmem:[%s6350_s19 + $0x40] sm:$0xff] }
 0x3cf   : > { %v4456_v55 = vmul.f32 0.7, %v4424_v61  ;;  %v4425_v42 = vadd.f32 %v9002_v35, %v4386_v60  ;;  %v4494_v31 = vsel %vm444_vm0, %v6138_v11, 0.0 }
 0x3d0   : > { %v4454_v47 = vmul.f32 0.7, %v4422_v53  ;;  %v4423_v25 = vadd.f32 %v9002_v35, %v4384_v36  ;;  %v6139_v36 = vld [vmem:[%s6350_s19 + $0x58] sm:$0xff] }
 0x3d1   : > { %v4520_v10 = vadd.f32 %v4488_v27, %v4456_v55  ;;  %v4457_v33 = vmul.f32 0.7, %v4425_v42  ;;  %v4497_v55 = vsel %vm444_vm0, %v6139_v36, 0.0 }
 0x3d2   : > { %v4518_v43 = vadd.f32 %v4486_v13, %v4454_v47  ;;  %v4455_v0 = vmul.f32 0.7, %v4423_v25  ;;  %v6140_v47 = vld [vmem:[%s6350_s19 + $0x48] sm:$0xff] }
 0x3d3   : > { %4552 = vst.msk [vmem:[%s9020_s26 + $0x10] sm:$0xff] %vm1868_vm3, %v4520_v10  ;;  %v4521_v18 = vadd.f32 %v4489_v9, %v4457_v33  ;;  %v4495_v57 = vsel %vm444_vm0, %v6140_v47, 0.0 }
 0x3d4   : > { %4550 = vst.msk [vmem:[%s9020_s26] sm:$0xff] %vm1868_vm3, %v4518_v43  ;;  %v4519_v21 = vadd.f32 %v4487_v12, %v4455_v0 }
 0x3d5   : > { %4553 = vst.msk [vmem:[%s9020_s26 + $0x18] sm:$0xff] %vm1868_vm3, %v4521_v18 }
 0x3d6   : > { %4551 = vst.msk [vmem:[%s9020_s26 + $0x8] sm:$0xff] %vm1868_vm3, %v4519_v21 }
 0x3ea   : > { %v4790_v7 = vpop.f32.mrb[4].mxu1 }
 0x3eb   : > { %v4389_v6 = vmul.f32 %v4790_v7, %v8997_v30  ;;  %v4265_v8 = vpop.f32.mrb[5].mxu1 }
 0x3ec   : > { %v4387_v46 = vmul.f32 %v8997_v30, %v4265_v8  ;;  %v4791_v15 = vpop.f32.mrb[6].mxu1  ;;  %v6141_v8 = vld [vmem:[%s6350_s19 + $0x70] sm:$0xff] }
 0x3ed   : > { %v4428_v44 = vadd.f32 %v9002_v35, %v4389_v6  ;;  %v4390_v63 = vmul.f32 %v4791_v15, %v8997_v30  ;;  %v4268_v50 = vpop.f32.mrb[7].mxu1 }
 0x3ee   : > { %v4426_v58 = vadd.f32 %v9002_v35, %v4387_v46  ;;  %v4388_v5 = vmul.f32 %v8997_v30, %v4268_v50  ;;  %v4500_v46 = vsel %vm444_vm0, %v6141_v8, 0.0  ;;  %v6142_v50 = vld [vmem:[%s6350_s19 + $0x60] sm:$0xff] }
 0x3ef   : > { %v4460_v62 = vmul.f32 0.7, %v4428_v44  ;;  %v4429_v45 = vadd.f32 %v9002_v35, %v4390_v63  ;;  %v4498_v28 = vsel %vm444_vm0, %v6142_v50, 0.0 }
 0x3f0   : > { %v4458_v1 = vmul.f32 0.7, %v4426_v58  ;;  %v4427_v38 = vadd.f32 %v9002_v35, %v4388_v5  ;;  %v6143_v5 = vld [vmem:[%s6350_s19 + $0x78] sm:$0xff] }
 0x3f1   : > { %v4524_v17 = vadd.f32 %v4492_v40, %v4460_v62  ;;  %v4461_v3 = vmul.f32 0.7, %v4429_v45  ;;  %v4501_v62 = vsel %vm444_vm0, %v6143_v5, 0.0 }
 0x3f2   : > { %v4522_v41 = vadd.f32 %v4490_v56, %v4458_v1  ;;  %v4459_v20 = vmul.f32 0.7, %v4427_v38  ;;  %v6144_v1 = vld [vmem:[%s6350_s19 + $0x68] sm:$0xff] }
 0x3f3   : > { %4556 = vst.msk [vmem:[%s9020_s26 + $0x30] sm:$0xff] %vm1868_vm3, %v4524_v17  ;;  %v4525_v54 = vadd.f32 %v4493_v2, %v4461_v3  ;;  %v4499_v59 = vsel %vm444_vm0, %v6144_v1, 0.0 }
 0x3f4   : > { %4554 = vst.msk [vmem:[%s9020_s26 + $0x20] sm:$0xff] %vm1868_vm3, %v4522_v41  ;;  %v4523_v19 = vadd.f32 %v4491_v49, %v4459_v20 }
 0x3f5   : > { %4557 = vst.msk [vmem:[%s9020_s26 + $0x38] sm:$0xff] %vm1868_vm3, %v4525_v54 }
 0x3f6   : > { %4555 = vst.msk [vmem:[%s9020_s26 + $0x28] sm:$0xff] %vm1868_vm3, %v4523_v19 }
 0x40a   : > { %v4794_v51 = vpop.f32.mrb[8].mxu1 }
 0x40b   : > { %v4393_v22 = vmul.f32 %v4794_v51, %v8997_v30  ;;  %v4281_v34 = vpop.f32.mrb[9].mxu1 }
 0x40c   : > { %v4391_v4 = vmul.f32 %v8997_v30, %v4281_v34  ;;  %v4795_v48 = vpop.f32.mrb[10].mxu1  ;;  %v6145_v34 = vld [vmem:[%s6350_s19 + $0x90] sm:$0xff] }
 0x40d   : > { %v4432_v32 = vadd.f32 %v9002_v35, %v4393_v22  ;;  %v4394_v24 = vmul.f32 %v4795_v48, %v8997_v30  ;;  %v4284_v26 = vpop.f32.mrb[11].mxu1 }
 0x40e   : > { %v4430_v39 = vadd.f32 %v9002_v35, %v4391_v4  ;;  %v4392_v61 = vmul.f32 %v8997_v30, %v4284_v26  ;;  %v4504_v4 = vsel %vm444_vm0, %v6145_v34, 0.0  ;;  %v6146_v26 = vld [vmem:[%s6350_s19 + $0x80] sm:$0xff] }
 0x40f   : > { %v4464_v60 = vmul.f32 0.7, %v4432_v32  ;;  %v4433_v27 = vadd.f32 %v9002_v35, %v4394_v24  ;;  %v4502_v14 = vsel %vm444_vm0, %v6146_v26, 0.0 }
 0x410   : > { %v4462_v53 = vmul.f32 0.7, %v4430_v39  ;;  %v4431_v37 = vadd.f32 %v9002_v35, %v4392_v61  ;;  %v6147_v61 = vld [vmem:[%s6350_s19 + $0x98] sm:$0xff] }
 0x411   : > { %v4528_v13 = vadd.f32 %v4496_v23, %v4464_v60  ;;  %v4465_v42 = vmul.f32 0.7, %v4433_v27  ;;  %v4505_v60 = vsel %vm444_vm0, %v6147_v61, 0.0 }
 0x412   : > { %v4526_v9 = vadd.f32 %v4494_v31, %v4462_v53  ;;  %v4463_v25 = vmul.f32 0.7, %v4431_v37  ;;  %v6148_v53 = vld [vmem:[%s6350_s19 + $0x88] sm:$0xff] }
 0x413   : > { %4560 = vst.msk [vmem:[%s9020_s26 + $0x50] sm:$0xff] %vm1868_vm3, %v4528_v13  ;;  %v4529_v10 = vadd.f32 %v4497_v55, %v4465_v42  ;;  %v4503_v36 = vsel %vm444_vm0, %v6148_v53, 0.0 }
 0x414   : > { %4558 = vst.msk [vmem:[%s9020_s26 + $0x40] sm:$0xff] %vm1868_vm3, %v4526_v9  ;;  %v4527_v33 = vadd.f32 %v4495_v57, %v4463_v25 }
 0x415   : > { %4561 = vst.msk [vmem:[%s9020_s26 + $0x58] sm:$0xff] %vm1868_vm3, %v4529_v10 }
 0x416   : > { %4559 = vst.msk [vmem:[%s9020_s26 + $0x48] sm:$0xff] %vm1868_vm3, %v4527_v33 }
 0x426   : > { %v4798_v52 = vpop.f32.mrb[12].mxu1 }
 0x427   : > { %v4397_v12 = vmul.f32 %v4798_v52, %v8997_v30  ;;  %v4297_v43 = vpop.f32.mrb[13].mxu1 }
 0x428   : > { %v4395_v0 = vmul.f32 %v8997_v30, %v4297_v43  ;;  %v4799_v18 = vpop.f32.mrb[14].mxu1  ;;  %v6149_v43 = vld [vmem:[%s6350_s19 + $0xb0] sm:$0xff] }
 0x429   : > { %v4436_v21 = vadd.f32 %v9002_v35, %v4397_v12  ;;  %v4398_v7 = vmul.f32 %v4799_v18, %v8997_v30  ;;  %v4300_v6 = vpop.f32.mrb[15].mxu1 }
 0x42a   : > { %v4434_v15 = vadd.f32 %v9002_v35, %v4395_v0  ;;  %v4396_v44 = vmul.f32 %v8997_v30, %v4300_v6  ;;  %v4508_v0 = vsel %vm444_vm0, %v6149_v43, 0.0  ;;  %v6150_v6 = vld [vmem:[%s6350_s19 + $0xa0] sm:$0xff] }
 0x42b   : > { %v4468_v63 = vmul.f32 0.7, %v4436_v21  ;;  %v4437_v40 = vadd.f32 %v9002_v35, %v4398_v7  ;;  %v4506_v8 = vsel %vm444_vm0, %v6150_v6, 0.0 }
 0x42c   : > { %v4466_v58 = vmul.f32 0.7, %v4434_v15  ;;  %v4435_v29 = vadd.f32 %v9002_v35, %v4396_v44  ;;  %v6151_v44 = vld [vmem:[%s6350_s19 + $0xb8] sm:$0xff] }
 0x42d   : > { %v4532_v56 = vadd.f32 %v4500_v46, %v4468_v63  ;;  %v4469_v45 = vmul.f32 0.7, %v4437_v40  ;;  %v4509_v63 = vsel %vm444_vm0, %v6151_v44, 0.0 }
 0x42e   : > { %v4530_v2 = vadd.f32 %v4498_v28, %v4466_v58  ;;  %v4467_v38 = vmul.f32 0.7, %v4435_v29  ;;  %v6152_v58 = vld [vmem:[%s6350_s19 + $0xa8] sm:$0xff] }
 0x42f   : > { %4564 = vst.msk [vmem:[%s9020_s26 + $0x70] sm:$0xff] %vm1868_vm3, %v4532_v56  ;;  %v4533_v17 = vadd.f32 %v4501_v62, %v4469_v45  ;;  %v4507_v5 = vsel %vm444_vm0, %v6152_v58, 0.0 }
 0x430   : > { %4562 = vst.msk [vmem:[%s9020_s26 + $0x60] sm:$0xff] %vm1868_vm3, %v4530_v2  ;;  %v4531_v3 = vadd.f32 %v4499_v59, %v4467_v38 }
 0x431   : > { %4565 = vst.msk [vmem:[%s9020_s26 + $0x78] sm:$0xff] %vm1868_vm3, %v4533_v17 }
 0x432   : > { %4563 = vst.msk [vmem:[%s9020_s26 + $0x68] sm:$0xff] %vm1868_vm3, %v4531_v3 }
 0x44e   : > { %v4802_v16 = vpop.f32.mrb[16].mxu1 }
 0x44f   : > { %v4401_v49 = vmul.f32 %v4802_v16, %v8997_v30  ;;  %v4313_v41 = vpop.f32.mrb[17].mxu1 }
 0x450   : > { %v4399_v20 = vmul.f32 %v8997_v30, %v4313_v41  ;;  %v4803_v54 = vpop.f32.mrb[18].mxu1  ;;  %v6153_v41 = vld [vmem:[%s6350_s19 + $0xd0] sm:$0xff] }
 0x451   : > { %v4440_v19 = vadd.f32 %v9002_v35, %v4401_v49  ;;  %v4402_v51 = vmul.f32 %v4803_v54, %v8997_v30  ;;  %v4316_v22 = vpop.f32.mrb[19].mxu1 }
 0x452   : > { %v4438_v48 = vadd.f32 %v9002_v35, %v4399_v20  ;;  %v4400_v32 = vmul.f32 %v8997_v30, %v4316_v22  ;;  %v4512_v20 = vsel %vm444_vm0, %v6153_v41, 0.0  ;;  %v6154_v22 = vld [vmem:[%s6350_s19 + $0xc0] sm:$0xff] }
 0x453   : > { %v4472_v24 = vmul.f32 0.7, %v4440_v19  ;;  %v4441_v23 = vadd.f32 %v9002_v35, %v4402_v51  ;;  %v4510_v34 = vsel %vm444_vm0, %v6154_v22, 0.0 }
 0x454   : > { %v4470_v39 = vmul.f32 0.7, %v4438_v48  ;;  %v4439_v11 = vadd.f32 %v9002_v35, %v4400_v32  ;;  %v6155_v32 = vld [vmem:[%s6350_s19 + $0xd8] sm:$0xff] }
 0x455   : > { %v4536_v31 = vadd.f32 %v4504_v4, %v4472_v24  ;;  %v4473_v27 = vmul.f32 0.7, %v4441_v23  ;;  %v4513_v24 = vsel %vm444_vm0, %v6155_v32, 0.0 }
 0x456   : > { %v4534_v55 = vadd.f32 %v4502_v14, %v4470_v39  ;;  %v4471_v37 = vmul.f32 0.7, %v4439_v11  ;;  %v6156_v39 = vld [vmem:[%s6350_s19 + $0xc8] sm:$0xff] }
 0x457   : > { %4568 = vst.msk [vmem:[%s9020_s26 + $0x90] sm:$0xff] %vm1868_vm3, %v4536_v31  ;;  %v4537_v13 = vadd.f32 %v4505_v60, %v4473_v27  ;;  %v4511_v61 = vsel %vm444_vm0, %v6156_v39, 0.0 }
 0x458   : > { %4566 = vst.msk [vmem:[%s9020_s26 + $0x80] sm:$0xff] %vm1868_vm3, %v4534_v55  ;;  %v4535_v42 = vadd.f32 %v4503_v36, %v4471_v37 }
 0x459   : > { %4569 = vst.msk [vmem:[%s9020_s26 + $0x98] sm:$0xff] %vm1868_vm3, %v4537_v13 }
 0x45a   : > { %4567 = vst.msk [vmem:[%s9020_s26 + $0x88] sm:$0xff] %vm1868_vm3, %v4535_v42 }
 0x466   : > { %v4806_v47 = vpop.f32.mrb[20].mxu1 }
 0x467   : > { %v4405_v57 = vmul.f32 %v4806_v47, %v8997_v30  ;;  %v4329_v9 = vpop.f32.mrb[21].mxu1 }
 0x468   : > { %v4403_v25 = vmul.f32 %v8997_v30, %v4329_v9  ;;  %v4807_v10 = vpop.f32.mrb[22].mxu1  ;;  %v6157_v9 = vld [vmem:[%s6350_s19 + $0xf0] sm:$0xff] }
 0x469   : > { %v4444_v33 = vadd.f32 %v9002_v35, %v4405_v57  ;;  %v4406_v52 = vmul.f32 %v4807_v10, %v8997_v30  ;;  %v4332_v12 = vpop.f32.mrb[23].mxu1 }
 0x46a   : > { %v4442_v18 = vadd.f32 %v9002_v35, %v4403_v25  ;;  %v4404_v21 = vmul.f32 %v8997_v30, %v4332_v12  ;;  %v4516_v25 = vsel %vm444_vm0, %v6157_v9, 0.0  ;;  %v6158_v12 = vld [vmem:[%s6350_s19 + $0xe0] sm:$0xff] }
 0x46b   : > { %v4476_v7 = vmul.f32 0.7, %v4444_v33  ;;  %v4445_v46 = vadd.f32 %v9002_v35, %v4406_v52  ;;  %v4514_v43 = vsel %vm444_vm0, %v6158_v12, 0.0 }
 0x46c   : > { %v4474_v15 = vmul.f32 0.7, %v4442_v18  ;;  %v4443_v50 = vadd.f32 %v9002_v35, %v4404_v21  ;;  %v6159_v21 = vld [vmem:[%s6350_s19 + $0xf8] sm:$0xff] }
 0x46d   : > { %v4540_v28 = vadd.f32 %v4508_v0, %v4476_v7  ;;  %v4477_v40 = vmul.f32 0.7, %v4445_v46  ;;  %v4517_v7 = vsel %vm444_vm0, %v6159_v21, 0.0 }
 0x46e   : > { %v4538_v62 = vadd.f32 %v4506_v8, %v4474_v15  ;;  %v4475_v29 = vmul.f32 0.7, %v4443_v50  ;;  %v6160_v15 = vld [vmem:[%s6350_s19 + $0xe8] sm:$0xff] }
 0x46f   : > { %4572 = vst.msk [vmem:[%s9020_s26 + $0xb0] sm:$0xff] %vm1868_vm3, %v4540_v28  ;;  %v4541_v56 = vadd.f32 %v4509_v63, %v4477_v40 }
 0x470   : > { %4570 = vst.msk [vmem:[%s9020_s26 + $0xa0] sm:$0xff] %vm1868_vm3, %v4538_v62  ;;  %v4539_v45 = vadd.f32 %v4507_v5, %v4475_v29 }
 0x471   : > { %4573 = vst.msk [vmem:[%s9020_s26 + $0xb8] sm:$0xff] %vm1868_vm3, %v4541_v56 }
 0x472   : > { %4571 = vst.msk [vmem:[%s9020_s26 + $0xa8] sm:$0xff] %vm1868_vm3, %v4539_v45 }
 0x47e   : > { %v4810_v1 = vpop.f32.mrb[24].mxu1 }
 0x47f   : > { %v4409_v59 = vmul.f32 %v4810_v1, %v8997_v30  ;;  %v4345_v2 = vpop.f32.mrb[25].mxu1 }
 0x480   : > { %v4407_v38 = vmul.f32 %v8997_v30, %v4345_v2  ;;  %v4811_v17 = vpop.f32.mrb[26].mxu1 }
 0x481   : > { %v4448_v3 = vadd.f32 %v9002_v35, %v4409_v59  ;;  %v4410_v16 = vmul.f32 %v4811_v17, %v8997_v30  ;;  %v4348_v49 = vpop.f32.mrb[27].mxu1 }
 0x482   : > { %v4446_v54 = vadd.f32 %v9002_v35, %v4407_v38  ;;  %v4408_v19 = vmul.f32 %v8997_v30, %v4348_v49 }
 0x483   : > { %v4480_v51 = vmul.f32 0.7, %v4448_v3  ;;  %v4449_v4 = vadd.f32 %v9002_v35, %v4410_v16 }
 0x484   : > { %v4478_v48 = vmul.f32 0.7, %v4446_v54  ;;  %v4447_v26 = vadd.f32 %v9002_v35, %v4408_v19 }
 0x485   : > { %v4544_v14 = vadd.f32 %v4512_v20, %v4480_v51  ;;  %v4481_v23 = vmul.f32 0.7, %v4449_v4 }
 0x486   : > { %v4542_v60 = vadd.f32 %v4510_v34, %v4478_v48  ;;  %v4479_v11 = vmul.f32 0.7, %v4447_v26 }
 0x487   : > { %4576 = vst.msk [vmem:[%s9020_s26 + $0xd0] sm:$0xff] %vm1868_vm3, %v4544_v14  ;;  %v4545_v31 = vadd.f32 %v4513_v24, %v4481_v23 }
 0x488   : > { %4574 = vst.msk [vmem:[%s9020_s26 + $0xc0] sm:$0xff] %vm1868_vm3, %v4542_v60  ;;  %v4543_v27 = vadd.f32 %v4511_v61, %v4479_v11 }
 0x489   : > { %4577 = vst.msk [vmem:[%s9020_s26 + $0xd8] sm:$0xff] %vm1868_vm3, %v4545_v31 }
 0x48a   : > { %4575 = vst.msk [vmem:[%s9020_s26 + $0xc8] sm:$0xff] %vm1868_vm3, %v4543_v27 }
 0x496   : > { %v4814_v53 = vpop.f32.mrb[28].mxu1 }
 0x497   : > { %v4413_v36 = vmul.f32 %v4814_v53, %v8997_v30  ;;  %v4361_v55 = vpop.f32.mrb[29].mxu1 }
 0x498   : > { %v4411_v37 = vmul.f32 %v8997_v30, %v4361_v55  ;;  %v4815_v13 = vpop.f32.mrb[30].mxu1 }
 0x499   : > { %v4452_v42 = vadd.f32 %v9002_v35, %v4413_v36  ;;  %v4414_v47 = vmul.f32 %v4815_v13, %v8997_v30  ;;  %v4364_v57 = vpop.f32.mrb[31].mxu1 }
 0x49a   : > { %v4450_v10 = vadd.f32 %v9002_v35, %v4411_v37  ;;  %v4412_v33 = vmul.f32 %v8997_v30, %v4364_v57  ;;  %v4515_v30 = vsel %vm444_vm0, %v6160_v15, 0.0 }
 0x49b   : > { %v4484_v52 = vmul.f32 0.7, %v4452_v42  ;;  %v4453_v0 = vadd.f32 %v9002_v35, %v4414_v47 }
 0x49c   : > { %v4482_v18 = vmul.f32 0.7, %v4450_v10  ;;  %v4451_v6 = vadd.f32 %v9002_v35, %v4412_v33 }
 0x49d   : > { %v4548_v8 = vadd.f32 %v4516_v25, %v4484_v52  ;;  %v4485_v46 = vmul.f32 0.7, %v4453_v0 }
 0x49e   : > { %v4546_v44 = vadd.f32 %v4514_v43, %v4482_v18  ;;  %v4483_v63 = vmul.f32 0.7, %v4451_v6 }
 0x49f   : > { %4580 = vst.msk [vmem:[%s9020_s26 + $0xf0] sm:$0xff] %vm1868_vm3, %v4548_v8  ;;  %v4549_v50 = vadd.f32 %v4517_v7, %v4485_v46 }
 0x4a0   : > { %4578 = vst.msk [vmem:[%s9020_s26 + $0xe0] sm:$0xff] %vm1868_vm3, %v4546_v44  ;;  %v4547_v28 = vadd.f32 %v4515_v30, %v4483_v63 }
 0x4a1   : > { %4581 = vst.msk [vmem:[%s9020_s26 + $0xf8] sm:$0xff] %vm1868_vm3, %v4549_v50 }
 0x4a2   : > { %4579 = vst.msk [vmem:[%s9020_s26 + $0xe8] sm:$0xff] %vm1868_vm3, %v4547_v28 }
 0x4a3 PF: > { %s19_s30 = sadd.s32 1, %s6167_s30  }
 0x4a4   : > { %p16_p4 = scmp.ge.s32.totalorder %s19_s30, 4  }
 0x4a6   :  { %18 = sbr.rel (!%p16_p4) target bundleno = 1 (0x1), region = 92 }

</bundles_post_ra>
